<compile_context>
chip_gen: v5e
topology: v5e:2x2
jax: 0.10.0
libtpu: 0.0.40
codegen_flags: <defaults>
</compile_context>

<pallas_src>
import functools
import math

import numpy as np
import jax
import jax.numpy as jnp
import jax.scipy.linalg as jsp_linalg
from jax.experimental import pallas as pl
from jax.experimental.pallas import tpu as pltpu


_LANE = 128
_SUBLANE = 8
# Per-core budget for weight operands resident in VMEM (v7x-safe: 64 MiB/core).
_WEIGHT_VMEM_BUDGET = 40 * 1024 * 1024


def _round_up(n, m):
    return ((n + m - 1) // m) * m


def _pad2d(a, rows, cols):
    """Zero-pad a 2-D array up to (rows, cols); no-op copy skipped if aligned."""
    r, c = a.shape
    if r == rows and c == cols:
        return a
    return jnp.zeros((rows, cols), a.dtype).at[:r, :c].set(a)


def gen_uni_kernel(urT_ref, uiT_ref, xr_ref, xi_ref, o_ref, *, normalize_input):
    """One (batch-tile, k-tile) step of  out = normalize( normalize(x) @ U^T ).

    urT_ref : (tk, dp)  real(U)^T block      (weight_dtype)
    uiT_ref : (tk, dp)  imag(U)^T block      (weight_dtype)
    xr_ref  : (bt, tk)  real(x) block        (f32)
    xi_ref  : (bt, tk)  imag(x) block        (f32)
    o_ref   : (bt, 2*dp) [y_r | y_i] output block, revisited across the k axis
              (acts as the f32 accumulator).
    """
    k = pl.program_id(1)
    nk = pl.num_programs(1)
    dp = urT_ref.shape[1]

    xr = xr_ref[...]
    xi = xi_ref[...]

    if normalize_input:
        # Whole row is visible in this k-block (nk == 1): faithful pre-norm.
        ss_x = jnp.sum(xr * xr + xi * xi, axis=1, keepdims=True)
        inv_nx = jax.lax.rsqrt(jnp.maximum(ss_x, 1e-30))  # guard zero-pad rows
        xr = xr * inv_nx
        xi = xi * inv_nx

    w_dtype = urT_ref.dtype
    xr_c = xr.astype(w_dtype)
    xi_c = xi.astype(w_dtype)
    urT = urT_ref[...]
    uiT = uiT_ref[...]

    # Complex matmul as 4 real MXU dots with f32 accumulation.
    yr = (jnp.dot(xr_c, urT, preferred_element_type=jnp.float32)
          - jnp.dot(xi_c, uiT, preferred_element_type=jnp.float32))
    yi = (jnp.dot(xr_c, uiT, preferred_element_type=jnp.float32)
          + jnp.dot(xi_c, urT, preferred_element_type=jnp.float32))

    @pl.when(k == 0)
    def _init():
        o_ref[:, :dp] = yr
        o_ref[:, dp:] = yi

    @pl.when(k > 0)
    def _accumulate():
        o_ref[:, :dp] = o_ref[:, :dp] + yr
        o_ref[:, dp:] = o_ref[:, dp:] + yi

    @pl.when(k == nk - 1)
    def _finalize():
        y = o_ref[...]
        # Padded lanes are zero, so the concat sum IS the complex row norm^2.
        ss_y = jnp.sum(y * y, axis=1, keepdims=True)
        o_ref[...] = y * jax.lax.rsqrt(jnp.maximum(ss_y, 1e-30))


def _project_unitary(uni):
    """Unitary (polar) factor of `uni` via QDWH -- equals u @ v.H of the SVD.

    Pure QR/Cholesky/matmul, so it runs at MXU rate on TPU and avoids the slow
    (2D)^3 real-embedded SVD used previously.
    """
    u, _ = jsp_linalg.polar(uni.astype(jnp.complex64))
    return u


def _forward_impl(uni, x, *, weight_dtype=jnp.float32):
    d = uni.shape[0]
    b = x.shape[0]

    u_polar = _project_unitary(uni)                       # (d, d) complex64
    urT = jnp.real(u_polar).T.astype(weight_dtype)
    uiT = jnp.imag(u_polar).T.astype(weight_dtype)
    wt_bytes = jnp.dtype(weight_dtype).itemsize

    # ----- tiling decisions -------------------------------------------------
    dp0 = _round_up(d, _LANE)
    if 2 * dp0 * dp0 * wt_bytes <= _WEIGHT_VMEM_BUDGET:
        tk = dp = dp0
        nk = 1                                            # weights fully resident
    else:
        # Stream (tk, dp) weight blocks (double-buffered) against MXU compute.
        tk = max(_LANE,
                 (_WEIGHT_VMEM_BUDGET // (4 * dp0 * wt_bytes)) // _LANE * _LANE)
        dp = _round_up(dp0, tk)
        nk = dp // tk

    bt = min(512 if nk == 1 else 256, _round_up(b, _SUBLANE))
    bp = _round_up(b, bt)
    nb = bp // bt

    # ----- operand padding (skipped when already aligned) --------------------
    urT_p = _pad2d(urT, dp, dp)
    uiT_p = _pad2d(uiT, dp, dp)
    xr_p = _pad2d(jnp.real(x).astype(jnp.float32), bp, dp)
    xi_p = _pad2d(jnp.imag(x).astype(jnp.float32), bp, dp)

    # ----- block specs --------------------------------------------------------
    def _w_spec():
        if nk == 1:
            # Grid-invariant weight: single VMEM buffer (no double-buffer waste).
            return pl.BlockSpec((tk, dp), lambda i, k: (k, 0),
                                pipeline_mode=pl.Buffered(1))
        return pl.BlockSpec((tk, dp), lambda i, k: (k, 0))

    # ----- explicit VMEM budget ----------------------------------------------
    w_bufs = 1 if nk == 1 else 2
    vmem_needed = (2 * w_bufs * tk * dp * wt_bytes        # UrT + UiT blocks
                   + 2 * 2 * bt * tk * 4                  # xr, xi (double-buffered)
                   + 2 * bt * 2 * dp * 4)                 # output block
    vmem_limit = int(min(128 * 1024 * 1024,
                         max(32 * 1024 * 1024, vmem_needed + (4 << 20))))

    kernel = functools.partial(gen_uni_kernel, normalize_input=(nk == 1))

    out = pl.pallas_call(
        kernel,
        out_shape=jax.ShapeDtypeStruct((bp, 2 * dp), jnp.float32),
        grid_spec=pltpu.PrefetchScalarGridSpec(
            num_scalar_prefetch=0,
            grid=(nb, nk),                                # reduction axis last
            in_specs=[_w_spec(), _w_spec(),
                      pl.BlockSpec((bt, tk), lambda i, k: (i, k)),
                      pl.BlockSpec((bt, tk), lambda i, k: (i, k))],
            out_specs=pl.BlockSpec((bt, 2 * dp), lambda i, k: (i, 0)),
        ),
        compiler_params=pltpu.CompilerParams(
            dimension_semantics=("parallel", "arbitrary"),
            vmem_limit_bytes=vmem_limit),
    )(urT_p, uiT_p, xr_p, xi_p)

    yr = out[:b, :d]
    yi = out[:b, dp:dp + d]
    return jax.lax.complex(yr, yi)                        # (B, D) complex64


gen_uni_forward = jax.jit(_forward_impl, static_argnames=("weight_dtype",))


def reference_forward(uni_complex, x_complex):
    """Pure numpy reference mirroring the PyTorch module."""
    uni = np.asarray(uni_complex)
    x = np.asarray(x_complex)
    u, _, vh = np.linalg.svd(uni)
    U = u @ vh
    nx = x / np.linalg.norm(x, axis=1, keepdims=True)
    y = nx @ U.T
    return y / np.linalg.norm(y, axis=1, keepdims=True)


if __name__ == "__main__":
    image_size = 16
    dim = 2 ** int(math.ceil(math.log2(image_size)))      # 16
    batch = 2

    key = jax.random.PRNGKey(0)
    k_ur, k_ui, k_xr, k_xi = jax.random.split(key, 4)

    # Deterministic xavier-uniform init of the complex parameter uni (dim, dim).
    gain = math.sqrt(6.0 / (dim + dim))
    uni_r = jax.random.uniform(k_ur, (dim, dim), minval=-gain, maxval=gain,
                               dtype=jnp.float32)
    uni_i = jax.random.uniform(k_ui, (dim, dim), minval=-gain, maxval=gain,
                               dtype=jnp.float32)
    uni = (np.asarray(uni_r) + 1j * np.asarray(uni_i)).astype(np.complex64)

    # Complex input x of shape (batch, dim).
    x_r = jax.random.normal(k_xr, (batch, dim), dtype=jnp.float32)
    x_i = jax.random.normal(k_xi, (batch, dim), dtype=jnp.float32)
    x = (np.asarray(x_r) + 1j * np.asarray(x_i)).astype(np.complex64)

    out = gen_uni_forward(jnp.asarray(uni), jnp.asarray(x))
    out = jax.block_until_ready(out)
    out_np = np.asarray(out)

    # (1) Kernel math check: apply the SAME device-computed U in numpy.
    u_dev = np.asarray(jax.block_until_ready(_project_unitary(jnp.asarray(uni))))
    nx = x / np.linalg.norm(x, axis=1, keepdims=True)
    yy = nx @ u_dev.T
    ref_kernel = yy / np.linalg.norm(yy, axis=1, keepdims=True)
    np.testing.assert_allclose(out_np, ref_kernel, rtol=1e-4, atol=1e-4)

    # (2) End-to-end check vs numpy LAPACK SVD reference (different polar
    #     algorithm on device -> slightly looser tolerance).
    ref_full = reference_forward(uni, x)
    np.testing.assert_allclose(out_np, ref_full, rtol=2e-3, atol=2e-3)

    print("KERNEL_OK")
</pallas_src>

<mosaic_0001>
module attributes {stable_mosaic.version = 11 : i64} {
  func.func @gen_uni_kernel(%arg0: i32, %arg1: i32, %arg2: memref<128x128xf32, #tpu.memory_space<vmem>>, %arg3: memref<128x128xf32, #tpu.memory_space<vmem>>, %arg4: memref<8x128xf32, #tpu.memory_space<vmem>>, %arg5: memref<8x128xf32, #tpu.memory_space<vmem>>, %arg6: memref<8x256xf32, #tpu.memory_space<vmem>>) attributes {dimension_semantics = [#tpu.dimension_semantics<parallel>, #tpu.dimension_semantics<arbitrary>], iteration_bounds = array<i64: 1, 1>, scalar_prefetch = 0 : i64, scratch_operands = 0 : i64, tpu.core_type = #tpu.core_type<tc>, window_params = [{pipeline_mode = #tpu.pipeline_mode<synchronous>, transform_indices = @transform_0, window_bounds = array<i64: 128, 128>}, {pipeline_mode = #tpu.pipeline_mode<synchronous>, transform_indices = @transform_1, window_bounds = array<i64: 128, 128>}, {transform_indices = @transform_2, window_bounds = array<i64: 8, 128>}, {transform_indices = @transform_3, window_bounds = array<i64: 8, 128>}, {transform_indices = @transform_4, window_bounds = array<i64: 8, 256>}]} {
    %c0 = arith.constant 0 : index
    %c0_0 = arith.constant 0 : index
    %0 = vector.load %arg4[%c0, %c0_0] : memref<8x128xf32, #tpu.memory_space<vmem>>, vector<8x128xf32>
    %c0_1 = arith.constant 0 : index
    %c0_2 = arith.constant 0 : index
    %1 = vector.load %arg5[%c0_1, %c0_2] : memref<8x128xf32, #tpu.memory_space<vmem>>, vector<8x128xf32>
    %2 = arith.mulf %0, %0 : vector<8x128xf32>
    %3 = arith.mulf %1, %1 : vector<8x128xf32>
    %4 = arith.addf %2, %3 : vector<8x128xf32>
    %cst = arith.constant dense<0.000000e+00> : vector<8xf32>
    %5 = vector.multi_reduction <add>, %4, %cst [1] : vector<8x128xf32> to vector<8xf32>
    %6 = vector.shape_cast %5 : vector<8xf32> to vector<8x1xf32>
    %cst_3 = arith.constant 1.000000e-30 : f32
    %7 = vector.broadcast %cst_3 : f32 to vector<8x1xf32>
    %8 = arith.maximumf %6, %7 : vector<8x1xf32>
    %9 = math.rsqrt %8 : vector<8x1xf32>
    %10 = vector.broadcast %9 : vector<8x1xf32> to vector<8x128xf32>
    %11 = arith.mulf %0, %10 : vector<8x128xf32>
    %12 = vector.broadcast %9 : vector<8x1xf32> to vector<8x128xf32>
    %13 = arith.mulf %1, %12 : vector<8x128xf32>
    %c0_4 = arith.constant 0 : index
    %c0_5 = arith.constant 0 : index
    %14 = vector.load %arg2[%c0_4, %c0_5] : memref<128x128xf32, #tpu.memory_space<vmem>>, vector<128x128xf32>
    %c0_6 = arith.constant 0 : index
    %c0_7 = arith.constant 0 : index
    %15 = vector.load %arg3[%c0_6, %c0_7] : memref<128x128xf32, #tpu.memory_space<vmem>>, vector<128x128xf32>
    %cst_8 = arith.constant dense<0.000000e+00> : vector<8x128xf32>
    %16 = tpu.matmul %11, %14, %cst_8 {dimension_numbers = #tpu.dot_dimension_numbers<[1], [0], [0], [1], [0, 0, 1, 1], [], []>} : vector<8x128xf32>, vector<128x128xf32>, vector<8x128xf32> -> vector<8x128xf32>
    %cst_9 = arith.constant dense<0.000000e+00> : vector<8x128xf32>
    %17 = tpu.matmul %13, %15, %cst_9 {dimension_numbers = #tpu.dot_dimension_numbers<[1], [0], [0], [1], [0, 0, 1, 1], [], []>} : vector<8x128xf32>, vector<128x128xf32>, vector<8x128xf32> -> vector<8x128xf32>
    %18 = arith.subf %16, %17 : vector<8x128xf32>
    %cst_10 = arith.constant dense<0.000000e+00> : vector<8x128xf32>
    %19 = tpu.matmul %11, %15, %cst_10 {dimension_numbers = #tpu.dot_dimension_numbers<[1], [0], [0], [1], [0, 0, 1, 1], [], []>} : vector<8x128xf32>, vector<128x128xf32>, vector<8x128xf32> -> vector<8x128xf32>
    %cst_11 = arith.constant dense<0.000000e+00> : vector<8x128xf32>
    %20 = tpu.matmul %13, %14, %cst_11 {dimension_numbers = #tpu.dot_dimension_numbers<[1], [0], [0], [1], [0, 0, 1, 1], [], []>} : vector<8x128xf32>, vector<128x128xf32>, vector<8x128xf32> -> vector<8x128xf32>
    %21 = arith.addf %19, %20 : vector<8x128xf32>
    %c0_i32 = arith.constant 0 : i32
    %22 = arith.cmpi eq, %arg1, %c0_i32 : i32
    %23 = arith.extui %22 : i1 to i32
    %c0_i32_12 = arith.constant 0 : i32
    %24 = arith.cmpi ne, %23, %c0_i32_12 : i32
    scf.if %24 {
      %c0_17 = arith.constant 0 : index
      %c0_18 = arith.constant 0 : index
      %31 = vector.load %arg6[%c0_17, %c0_18] : memref<8x256xf32, #tpu.memory_space<vmem>>, vector<8x128xf32>
      tpu.vector_store %arg6[%c0_17, %c0_18], %18 {strides = array<i32>} : memref<8x256xf32, #tpu.memory_space<vmem>>, vector<8x128xf32>,
      %c0_19 = arith.constant 0 : index
      %c128 = arith.constant 128 : index
      %32 = vector.load %arg6[%c0_19, %c128] : memref<8x256xf32, #tpu.memory_space<vmem>>, vector<8x128xf32>
      tpu.vector_store %arg6[%c0_19, %c128], %21 {strides = array<i32>} : memref<8x256xf32, #tpu.memory_space<vmem>>, vector<8x128xf32>,
    } else {
    }
    %c0_i32_13 = arith.constant 0 : i32
    %25 = arith.cmpi sgt, %arg1, %c0_i32_13 : i32
    %26 = arith.extui %25 : i1 to i32
    %c0_i32_14 = arith.constant 0 : i32
    %27 = arith.cmpi ne, %26, %c0_i32_14 : i32
    scf.if %27 {
      %c0_17 = arith.constant 0 : index
      %c0_18 = arith.constant 0 : index
      %31 = vector.load %arg6[%c0_17, %c0_18] : memref<8x256xf32, #tpu.memory_space<vmem>>, vector<8x128xf32>
      %32 = arith.addf %31, %18 : vector<8x128xf32>
      %c0_19 = arith.constant 0 : index
      %c0_20 = arith.constant 0 : index
      %33 = vector.load %arg6[%c0_19, %c0_20] : memref<8x256xf32, #tpu.memory_space<vmem>>, vector<8x128xf32>
      tpu.vector_store %arg6[%c0_19, %c0_20], %32 {strides = array<i32>} : memref<8x256xf32, #tpu.memory_space<vmem>>, vector<8x128xf32>,
      %c0_21 = arith.constant 0 : index
      %c128 = arith.constant 128 : index
      %34 = vector.load %arg6[%c0_21, %c128] : memref<8x256xf32, #tpu.memory_space<vmem>>, vector<8x128xf32>
      %35 = arith.addf %34, %21 : vector<8x128xf32>
      %c0_22 = arith.constant 0 : index
      %c128_23 = arith.constant 128 : index
      %36 = vector.load %arg6[%c0_22, %c128_23] : memref<8x256xf32, #tpu.memory_space<vmem>>, vector<8x128xf32>
      tpu.vector_store %arg6[%c0_22, %c128_23], %35 {strides = array<i32>} : memref<8x256xf32, #tpu.memory_space<vmem>>, vector<8x128xf32>,
    } else {
    }
    %c0_i32_15 = arith.constant 0 : i32
    %28 = arith.cmpi eq, %arg1, %c0_i32_15 : i32
    %29 = arith.extui %28 : i1 to i32
    %c0_i32_16 = arith.constant 0 : i32
    %30 = arith.cmpi ne, %29, %c0_i32_16 : i32
    scf.if %30 {
      %c0_17 = arith.constant 0 : index
      %c0_18 = arith.constant 0 : index
      %31 = vector.load %arg6[%c0_17, %c0_18] : memref<8x256xf32, #tpu.memory_space<vmem>>, vector<8x256xf32>
      %32 = arith.mulf %31, %31 : vector<8x256xf32>
      %cst_19 = arith.constant dense<0.000000e+00> : vector<8xf32>
      %33 = vector.multi_reduction <add>, %32, %cst_19 [1] : vector<8x256xf32> to vector<8xf32>
      %34 = vector.shape_cast %33 : vector<8xf32> to vector<8x1xf32>
      %cst_20 = arith.constant 1.000000e-30 : f32
      %35 = vector.broadcast %cst_20 : f32 to vector<8x1xf32>
      %36 = arith.maximumf %34, %35 : vector<8x1xf32>
      %37 = math.rsqrt %36 : vector<8x1xf32>
      %38 = vector.broadcast %37 : vector<8x1xf32> to vector<8x256xf32>
      %39 = arith.mulf %31, %38 : vector<8x256xf32>
      %c0_21 = arith.constant 0 : index
      %c0_22 = arith.constant 0 : index
      %40 = vector.load %arg6[%c0_21, %c0_22] : memref<8x256xf32, #tpu.memory_space<vmem>>, vector<8x256xf32>
      tpu.vector_store %arg6[%c0_21, %c0_22], %39 {strides = array<i32>} : memref<8x256xf32, #tpu.memory_space<vmem>>, vector<8x256xf32>,
    } else {
    }
    return
  }
  func.func @transform_0(%arg0: i32, %arg1: i32) -> (i32, i32) {
    %c0_i32 = arith.constant 0 : i32
    %c0_i32_0 = arith.constant 0 : i32
    return %arg1, %c0_i32 : i32, i32
  }
  func.func @transform_1(%arg0: i32, %arg1: i32) -> (i32, i32) {
    %c0_i32 = arith.constant 0 : i32
    %c0_i32_0 = arith.constant 0 : i32
    return %arg1, %c0_i32 : i32, i32
  }
  func.func @transform_2(%arg0: i32, %arg1: i32) -> (i32, i32) {
    %c0_i32 = arith.constant 0 : i32
    return %arg0, %arg1 : i32, i32
  }
  func.func @transform_3(%arg0: i32, %arg1: i32) -> (i32, i32) {
    %c0_i32 = arith.constant 0 : i32
    return %arg0, %arg1 : i32, i32
  }
  func.func @transform_4(%arg0: i32, %arg1: i32) -> (i32, i32) {
    %c0_i32 = arith.constant 0 : i32
    %c0_i32_0 = arith.constant 0 : i32
    return %arg0, %c0_i32 : i32, i32
  }
}

</mosaic_0001>

<bundles_post_ra>
// kernel: custom-call.3
= control target key start
LH: loop header
LB: loop body
LE: loop exit
PB: predicated region body
PF: predicated region fallthrough
CT: control target
= control target key end

     0   :  { %2 = vsyncpa [#allocation0], 0  ;;  %s55_s0 = inlined_call_operand.hbm [shape: c64[2,16], index: 0, kind: input, shape index: {}]   ;;  %s56_s1 = inlined_call_operand.vmem [shape: f32[2,16], index: 1, kind: output, shape index: {}]  }
   0x1   :  { %s4_s8 = sshll.u32 %s55_s0, 4  ;;  %s6_s11 = sshll.u32 %s56_s1, 4  ;;  %s5_s8 = int_to_ptr.hbm [resolvable:$true] %s4_s8  ;;  %s7_s11 = int_to_ptr.vmem [resolvable:$true] %s6_s11 }
   0x2   :  { %9 = dma.hbm_to_vmem [thread:$0]  %s5_s8, 32, %s7_s11, [#allocation0] }
   0x3   :  { %37 = dma.done.wait [#allocation0], 32  }
   0x4   :  { %38 = vsyncadd [#allocation0], 4294967264 }
   0x5   :  { %12 = vsyncpa [#allocation0], 1 }

// kernel: custom-call.6
= control target key start
LH: loop header
LB: loop body
LE: loop exit
PB: predicated region body
PF: predicated region fallthrough
CT: control target
= control target key end

     0   :  { %s56_s0 = inlined_call_operand.hbm [shape: c64[2,16], index: 0, kind: input, shape index: {}]   ;;  %s57_s1 = inlined_call_operand.vmem [shape: f32[2,16], index: 1, kind: output, shape index: {}]  }
   0x1   :  { %s2_s8 = scalar_lea.hbm %s56_s0, 2 }
   0x2   :  { %3 = vsyncpa [#allocation0], 0  ;;  %s5_s9 = sshll.u32 %s2_s8, 4  ;;  %s7_s12 = sshll.u32 %s57_s1, 4  ;;  %s6_s9 = int_to_ptr.hbm [resolvable:$true] %s5_s9  ;;  %s8_s12 = int_to_ptr.vmem [resolvable:$true] %s7_s12 }
   0x3   :  { %10 = dma.hbm_to_vmem [thread:$0]  %s6_s9, 32, %s8_s12, [#allocation0] }
   0x4   :  { %38 = dma.done.wait [#allocation0], 32  }
   0x5   :  { %39 = vsyncadd [#allocation0], 4294967264 }
   0x6   :  { %13 = vsyncpa [#allocation0], 1 }

// kernel: custom-call.2
= control target key start
LH: loop header
LB: loop body
LE: loop exit
PB: predicated region body
PF: predicated region fallthrough
CT: control target
= control target key end

     0   :  { %s35_s0 = inlined_call_operand.vmem [shape: c64[16,16], index: 0, kind: input, shape index: {}]   ;;  %s36_s1 = inlined_call_operand.vmem [shape: f32[16,16], index: 1, kind: output, shape index: {}]  }
   0x1   :  { %v10_v0 = vld [vmem:[%s35_s0 + $0x10] sm:$0xff]  ;;  %v11_v1 = vld [vmem:[%s35_s0 + $0x18] sm:$0xff] }
   0x2   :  { %4 = vst [vmem:[%s36_s1] sm:$0xff] %v10_v0 }
   0x3   :  { %12 = vst [vmem:[%s36_s1 + $0x8] sm:$0xff] %v11_v1 }

// kernel: custom-call
= control target key start
LH: loop header
LB: loop body
LE: loop exit
PB: predicated region body
PF: predicated region fallthrough
CT: control target
= control target key end

     0   :  { %s32_s0 = inlined_call_operand.vmem [shape: c64[16,16], index: 0, kind: input, shape index: {}]   ;;  %s33_s1 = inlined_call_operand.vmem [shape: f32[16,16], index: 1, kind: output, shape index: {}]  }
   0x1   :  { %v2_v0 = vld [vmem:[%s32_s0] sm:$0xff]  ;;  %v8_v1 = vld [vmem:[%s32_s0 + $0x8] sm:$0xff] }
   0x2   :  { %3 = vst [vmem:[%s33_s1] sm:$0xff] %v2_v0 }
   0x3   :  { %9 = vst [vmem:[%s33_s1 + $0x8] sm:$0xff] %v8_v1 }

// kernel: mul.215
= control target key start
LH: loop header
LB: loop body
LE: loop exit
PB: predicated region body
PF: predicated region fallthrough
CT: control target
= control target key end

     0   :  { %s26_s0 = inlined_call_operand.<no memory space> [shape: f32[], index: 0, kind: input, shape index: {}]   ;;  %s27_s1 = inlined_call_operand.vmem [shape: f32[16,16], index: 1, kind: output, shape index: {}]  }
   0x1   :  { %v2_v0 = vstv %s26_s0 }
   0x2   :  { %3 = vst [vmem:[%s27_s1] sm:$0xff] %v2_v0 }
   0x3   :  { %6 = vst [vmem:[%s27_s1 + $0x8] sm:$0xff] %v2_v0 }

// kernel: custom-call.46
= control target key start
LH: loop header
LB: loop body
LE: loop exit
PB: predicated region body
PF: predicated region fallthrough
CT: control target
= control target key end

     0   :  { %v1309_v8 = vmov 0.0   ;;  %s1858_s0 = inlined_call_operand.vmem [shape: f32[32,16], index: 0, kind: input, shape index: {}]   ;;  %s1859_s1 = inlined_call_operand.vmem [shape: f32[32,16], index: 1, kind: input, shape index: {}]   ;;  %s1860_s2 = inlined_call_operand.vmem [shape: f32[32,16], index: 2, kind: output, shape index: {0}]   ;;  %s1861_s3 = inlined_call_operand.vmem [shape: f32[32,16], index: 3, kind: output, shape index: {1}]   ;;  %s1862_s4 = inlined_call_operand.vmem [shape: f32[16], index: 4, kind: output, shape index: {2}]   ;;  %s1863_s5 = inlined_call_operand.vmem [shape: f32[16], index: 5, kind: output, shape index: {3}]  }
   0x1   :  { %v41_v0 = vld [vmem:[%s1858_s0] sm:$0xff]  ;;  %v43_v1 = vld [vmem:[%s1858_s0 + $0x8] sm:$0xff]  ;;  %v45_v2 = vld [vmem:[%s1858_s0 + $0x10] sm:$0xff]  ;;  %125 = vst [vmem:[#allocation4] sm:$0x1] %v1309_v8 }
   0x2   :  { %v47_v3 = vld [vmem:[%s1858_s0 + $0x18] sm:$0xff]  ;;  %98 = vst [vmem:[#allocation2] sm:$0xff] %v41_v0  ;;  %v86_v4 = vld [vmem:[%s1859_s1] sm:$0xff]  ;;  %v88_v5 = vld [vmem:[%s1859_s1 + $0x8] sm:$0xff]  ;;  %s1366_s0 = smov 0  }
   0x3   :  { %102 = vst [vmem:[#allocation2 + $0x8] sm:$0xff] %v43_v1  ;;  %v90_v6 = vld [vmem:[%s1859_s1 + $0x10] sm:$0xff]  ;;  %v92_v7 = vld [vmem:[%s1859_s1 + $0x18] sm:$0xff] }
   0x4   :  { %106 = vst [vmem:[#allocation2 + $0x10] sm:$0xff] %v45_v2 }
   0x5   :  { %110 = vst [vmem:[#allocation2 + $0x18] sm:$0xff] %v47_v3 }
   0x6   :  { %112 = vst [vmem:[#allocation3] sm:$0xff] %v86_v4 }
   0x7   :  { %116 = vst [vmem:[#allocation3 + $0x8] sm:$0xff] %v88_v5 }
   0x8   :  { %120 = vst [vmem:[#allocation3 + $0x10] sm:$0xff] %v90_v6 }
   0x9   :  { %124 = vst [vmem:[#allocation3 + $0x18] sm:$0xff] %v92_v7 }
   0xa   :  { %126 = vst [vmem:[#allocation6] sm:$0x1] %v1309_v8 }
   0xb LB: > { %v135_v9 = vlaneseq  ;;  %v133_v10 = vld [vmem:[#allocation2] sm:$0xff]  ;;  %v1375_v13 = vstv %s1307_s0  ;;  %v154_v14 = vld [vmem:[#allocation2 + $0x8] sm:$0xff]  ;;  %v176_v17 = vld [vmem:[#allocation2 + $0x10] sm:$0xff]  ;;  %s243_s1 = scalar_lea.vmem [#allocation2], %s1307_s0  ;;  %s244_s9 = scalar_lea.vmem [#allocation3], %s1307_s0  ;;  %s1307_s0 = sphi %s1366_s0, %s132_s0  }
   0xc   : > { %v198_v29 = vld [vmem:[#allocation2 + $0x18] sm:$0xff]  ;;  %v1390_v60 = vld [vmem:[%s243_s1] ss:$0 sm:$0xff]  ;;  %s1436_s10 = smov [#allocation3]  ;;  %s358_s11 = smov [#allocation2] }
   0xd   : > { %v134_v11 = vld [vmem:[#allocation3] sm:$0xff]  ;;  %v1372_v12 = vshrl.u32 %v135_v9, 7  ;;  %v247_v0 = vand.u32 2147483647, %v1390_v60  ;;  %vm317_vm14 = vcmp.lt.f32.partialorder %v1390_v60, 0.0  ;;  %s730_s12 = scalar_lea.vmem [#allocation9], %s1307_s0 }
   0xe   : > { %v155_v15 = vld [vmem:[#allocation3 + $0x8] sm:$0xff]  ;;  %s1665_s13 = smov [#allocation9]  ;;  %s1667_s14 = smov [#allocation2] }
   0xf   : > { %vm139_vm0 = vcmp.gt.s32.totalorder %v1372_v12, %v1375_v13  ;;  %v158_v16 = vadd.s32 8, %v1372_v12  ;;  %v177_v18 = vld [vmem:[#allocation3 + $0x10] sm:$0xff]  ;;  %v180_v19 = vadd.s32 16, %v1372_v12  ;;  %v202_v22 = vadd.s32 24, %v1372_v12  ;;  %s1669_s15 = smov [#allocation3]  ;;  %s729_s16 = scalar_lea.vmem [#allocation8], %s1307_s0 }
  0x10   : > { %v140_v20 = vsel %vm139_vm0, %v133_v10, 0.0  ;;  %v141_v21 = vsel %vm139_vm0, %v134_v11, 0.0  ;;  %v199_v34 = vld [vmem:[#allocation3 + $0x18] sm:$0xff]  ;;  %v1393_v61 = vld [vmem:[%s244_s9] ss:$0 sm:$0xff]  ;;  %v362_v12 = vmov %v1372_v12  ;;  %s1687_s17 = smov [#allocation8] }
  0x11   : > { %v142_v23 = vxor.u32 2147483648, %v141_v21  ;;  %v145_v24 = vmul.f32 %v140_v20, %v140_v20  ;;  %vm160_vm1 = vcmp.gt.s32.totalorder %v158_v16, %v1375_v13  ;;  %vm182_vm2 = vcmp.gt.s32.totalorder %v180_v19, %v1375_v13 }
  0x12   : > { %v161_v25 = vsel %vm160_vm1, %v154_v14, 0.0  ;;  %v162_v26 = vsel %vm160_vm1, %v155_v15, 0.0  ;;  %v183_v27 = vsel %vm182_vm2, %v176_v17, 0.0  ;;  %v184_v28 = vsel %vm182_vm2, %v177_v18, 0.0 }
  0x13   : > { %v146_v30 = vmul.f32 %v142_v23, %v141_v21  ;;  %v163_v31 = vxor.u32 2147483648, %v162_v26  ;;  %v166_v32 = vmul.f32 %v161_v25, %v161_v25  ;;  %v185_v33 = vxor.u32 2147483648, %v184_v28 }
  0x14   : > { %v188_v35 = vmul.f32 %v183_v27, %v183_v27  ;;  %vm204_vm3 = vcmp.gt.s32.totalorder %v202_v22, %v1375_v13  ;;  %v248_v1 = vand.u32 2147483647, %v1393_v61  ;;  %vm352_vm13 = vcmp.eq.f32.partialorder %v1393_v61, 0.0 }
  0x15   : > { %v147_v36 = vsub.f32 %v145_v24, %v146_v30  ;;  %v167_v37 = vmul.f32 %v163_v31, %v162_v26  ;;  %v189_v38 = vmul.f32 %v185_v33, %v184_v28  ;;  %v207_v39 = vsel %vm204_vm3, %v198_v29, 0.0 }
  0x16   : > { %v208_v40 = vsel %vm204_vm3, %v199_v34, 0.0  ;;  %v212_v44 = vmul.f32 %v207_v39, %v207_v39  ;;  %v249_v5 = vmax.f32 %v247_v0, %v248_v1 }
  0x17   : > { %v168_v41 = vsub.f32 %v166_v32, %v167_v37  ;;  %v190_v42 = vsub.f32 %v188_v35, %v189_v38  ;;  %v209_v43 = vxor.u32 2147483648, %v208_v40 }
  0x19   : > { %v173_v45 = vadd.f32 %v168_v41, %v147_v36  ;;  %v213_v46 = vmul.f32 %v209_v43, %v208_v40 }
  0x1b   : > { %v195_v47 = vadd.f32 %v190_v42, %v173_v45  ;;  %v214_v48 = vsub.f32 %v212_v44, %v213_v46 }
  0x1d   : > { %v219_v49 = vadd.f32 %v214_v48, %v195_v47 }
  0x1f   : > { %v220_v50 = vrot.slane %v219_v49, 4 }
  0x21   : > { %v221_v51 = vadd.f32 %v220_v50, %v219_v49 }
  0x23   : > { %v222_v52 = vrot.slane %v221_v51, 2 }
  0x25   : > { %v223_v53 = vadd.f32 %v222_v52, %v221_v51 }
  0x27   : > { %v224_v54 = vrot.slane %v223_v53, 1 }
  0x29   : > { %v1385_v55 = vadd.f32 %v224_v54, %v223_v53 }
  0x2b   : > { %1289 = vrsqrt.f32 %v1385_v55  ;;  %vm233_vm4 = vcmp.eq.f32.partialorder %v1385_v55, inf  ;;  %v236_v2 = vand.u32 2147483648, %v1385_v55  ;;  %vm235_vm5 = vcmp.eq.f32.partialorder %v1385_v55, 0.0 }
  0x2c   : > { %vm1410_vm15 = vmand %vm235_vm5, %vm352_vm13 }
  0x31   : > { %v1290_v56 = vpop.eup %1289 }
  0x32   : > { %v227_v57 = vmul.f32 %v1290_v56, %v1385_v55 }
  0x34   : > { %v228_v58 = vmul.f32 %v1290_v56, %v227_v57 }
  0x36   : > { %v229_v59 = vmul.f32 0.5, %v228_v58  ;;  %v639_v58 = vadd.s32 24, %v362_v12 }
  0x38   : > { %v230_v62 = vsub.f32 1.5, %v229_v59 }
  0x3a   : > { %v231_v63 = vmul.f32 %v1290_v56, %v230_v62 }
  0x3c   : > { %v232_v3 = vmul.f32 %v231_v63, %v1385_v55  ;;  %v1245_v63 = vld [vmem:[%s1436_s10 + $0x10] sm:$0xff] }
  0x3e   : > { %v234_v4 = vsel %vm233_vm4, %v1385_v55, %v232_v3  ;;  %v547_v55 = vadd.s32 16, %v362_v12 }
  0x3f   : > { %v237_v6 = vsel %vm235_vm5, %v236_v2, %v234_v4 }
  0x40   : > { %v250_v7 = vand.u32 2147483647, %v237_v6  ;;  %vm549_vm5 = vcmp.gt.s32.totalorder %v547_v55, %v1375_v13  ;;  %v455_v6 = vadd.s32 8, %v362_v12 }
  0x41   : > { %v1449_v4 = vsel %vm549_vm5, %v1245_v63, 0.0 }
  0x42   : > { %v251_v8 = vmax.f32 %v249_v5, %v250_v7 }
  0x44   : > { %1291 = vrcp.f32 %v251_v8  ;;  %v263_v14 = vand.u32 2147483648, %v251_v8  ;;  %vm257_vm6 = vweird.f32 %v251_v8  ;;  %v261_v16 = vand.u32 2147483647, %v251_v8 }
  0x45   : > { %vm302_vm12 = vcmp.eq.f32.partialorder %v251_v8, 0.0 }
  0x46   : > { %v264_v18 = vor.u32 1.1754944e-38, %v263_v14  ;;  %vm262_vm9 = vcmp.eq.f32.partialorder %v261_v16, 8.507059e+37  ;;  %v1247_v16 = vld [vmem:[%s1436_s10 + $0x18] sm:$0xff] }
  0x4a   : > { %v1292_v10 = vpop.eup %1291 }
  0x4b   : > { %v253_v11 = vmul.f32 %v1292_v10, %v251_v8  ;;  %vm258_vm7 = vweird.f32 %v1292_v10 }
  0x4c   : > { %vm259_vm8 = vmor %vm257_vm6, %vm258_vm7  ;;  %vm367_vm6 = vcmp.gt.s32.totalorder %v362_v12, %v1375_v13  ;;  %vm641_vm7 = vcmp.gt.s32.totalorder %v639_v58, %v1375_v13  ;;  %v759_v12 = vmov %v1372_v12 }
  0x4d   : > { %v254_v15 = vsub.f32 1.0, %v253_v11 }
  0x4f   : > { %v255_v17 = vmul.f32 %v1292_v10, %v254_v15  ;;  %v363_v15 = vld [vmem:[%s358_s11] sm:$0xff] }
  0x51   : > { %v256_v19 = vadd.f32 %v1292_v10, %v255_v17  ;;  %v1246_v17 = vld [vmem:[%s358_s11 + $0x18] sm:$0xff] }
  0x53   : > { %v260_v20 = vsel %vm259_vm8, %v1292_v10, %v256_v19  ;;  %vm642_vm8 = vcmp.lt.s32.totalorder %v639_v58, 32 }
  0x54   : > { %v265_v21 = vsel %vm262_vm9, %v264_v18, %v260_v20  ;;  %vm643_vm9 = vmand %vm641_vm7, %vm642_vm8 }
  0x55   : > { %v266_v22 = vmul.f32 %v265_v21, %v247_v0  ;;  %v282_v23 = vmul.f32 %v265_v21, %v248_v1  ;;  %v299_v24 = vmul.f32 %v265_v21, %v250_v7  ;;  %v364_v0 = vld [vmem:[%s1436_s10] sm:$0xff]  ;;  %v1244_v7 = vld [vmem:[%s358_s11 + $0x10] sm:$0xff]  ;;  %v1243_v21 = vld [vmem:[%s1436_s10 + $0x8] sm:$0xff] }
  0x56   : > { %v1453_v5 = vsel %vm367_vm6, %v364_v0, 0.0  ;;  %v1464_v20 = vsel %vm549_vm5, %v1244_v7, 0.0 }
  0x57   : > { %v267_v25 = vmul.f32 %v266_v22, %v266_v22  ;;  %v283_v26 = vmul.f32 %v282_v23, %v282_v23  ;;  %v300_v27 = vmul.f32 %v299_v24, %v299_v24  ;;  %v428_v10 = vand.u32 2147483648, %v1453_v5 }
  0x58   : > { %v1470_v23 = vsel %vm367_vm6, %v363_v15, 0.0 }
  0x59   : > { %v284_v28 = vadd.f32 %v283_v26, %v267_v25  ;;  %v429_v24 = vor.u32 inf, %v428_v10  ;;  %v1472_v25 = vsel %vm643_vm9, %v1247_v16, 0.0  ;;  %v1242_v26 = vld [vmem:[%s358_s11 + $0x8] sm:$0xff] }
  0x5b   : > { %v301_v29 = vadd.f32 %v300_v27, %v284_v28  ;;  %v1477_v28 = vsel %vm643_vm9, %v1246_v17, 0.0 }
  0x5c   : > { %vm706_vm9 = vcmp.eq.f32.partialorder %v1477_v28, 0.0 }
  0x5d   : > { %1293 = vrsqrt.f32 %v301_v29  ;;  %vm310_vm10 = vcmp.eq.f32.partialorder %v301_v29, inf  ;;  %v313_v36 = vand.u32 2147483648, %v301_v29  ;;  %vm312_vm11 = vcmp.eq.f32.partialorder %v301_v29, 0.0 }
  0x63   : > { %v1294_v30 = vpop.eup %1293 }
  0x64   : > { %v304_v31 = vmul.f32 %v1294_v30, %v301_v29 }
  0x66   : > { %v305_v32 = vmul.f32 %v1294_v30, %v304_v31 }
  0x68   : > { %v306_v33 = vmul.f32 0.5, %v305_v32 }
  0x6a   : > { %v307_v34 = vsub.f32 1.5, %v306_v33 }
  0x6c   : > { %v308_v35 = vmul.f32 %v1294_v30, %v307_v34 }
  0x6e   : > { %v309_v37 = vmul.f32 %v308_v35, %v301_v29  ;;  %v426_v35 = vand.u32 2147483648, %v1470_v23 }
  0x70   : > { %v311_v38 = vsel %vm310_vm10, %v301_v29, %v309_v37  ;;  %vm457_vm10 = vcmp.gt.s32.totalorder %v455_v6, %v1375_v13  ;;  %v704_v29 = vand.u32 2147483648, %v1472_v25 }
  0x71   : > { %v314_v39 = vsel %vm312_vm11, %v313_v36, %v311_v38  ;;  %vm614_vm11 = vcmp.eq.f32.partialorder %v1449_v4, 0.0  ;;  %v459_v32 = vsel %vm457_vm10, %v1243_v21, 0.0  ;;  %v1485_v33 = vsel %vm457_vm10, %v1242_v26, 0.0 }
  0x72   : > { %v315_v40 = vmul.f32 %v314_v39, %v251_v8  ;;  %v610_v8 = vand.u32 2147483648, %v1449_v4  ;;  %v518_v34 = vand.u32 2147483648, %v459_v32  ;;  %vm612_vm10 = vcmp.eq.f32.partialorder %v1464_v20, 0.0 }
  0x74   : > { %v316_v41 = vsel %vm302_vm12, 0.0, %v315_v40  ;;  %v611_v22 = vor.u32 inf, %v610_v8  ;;  %vm432_vm12 = vcmp.eq.f32.partialorder %v1453_v5, 0.0  ;;  %v1493_v40 = vand.u32 127, %v135_v9 }
  0x75   : > { %v318_v42 = vxor.u32 2147483648, %v316_v41  ;;  %v1507_v9 = vsel %vm432_vm12, nan, %v429_v24  ;;  %v516_v24 = vand.u32 2147483648, %v1485_v33  ;;  %vm520_vm12 = vcmp.eq.f32.partialorder %v1485_v33, 0.0 }
  0x76   : > { %vm1524_vm6 = vcmp.eq.s32.totalorder %v1493_v40, %v1375_v13 }
  0x77   : > { %v1414_v44 = vsel %vm317_vm14, %v316_v41, %v318_v42  ;;  %v1497_v41 = vsel %vm614_vm11, nan, %v611_v22  ;;  %v705_v42 = vor.u32 inf, %v704_v29  ;;  %vm708_vm14 = vcmp.eq.f32.partialorder %v1472_v25, 0.0 }
  0x78   : > { %v1420_v45 = vsel %vm1410_vm15, %v1390_v60, %v1414_v44 }
  0x79   : > { %v1424_v46 = vsub.f32 %v1390_v60, %v1420_v45  ;;  %v1515_v0 = vsel %vm708_vm14, nan, %v705_v42 }
  0x7b   : > { %v372_v47 = vand.u32 2147483647, %v1424_v46 }
  0x7d   : > { %vm1427_vm0 = vcmp.lt.f32.partialorder %v372_v47, %v248_v1 }
  0x7e   : > { %v376_v49 = vsel %vm1427_vm0, %v1393_v61, %v1424_v46  ;;  %v375_v62 = vsel %vm1427_vm0, %v1424_v46, %v1393_v61 }
  0x7f   : > { %1295 = vrcp.f32 %v376_v49  ;;  %v388_v52 = vand.u32 2147483648, %v376_v49  ;;  %vm382_vm1 = vweird.f32 %v376_v49  ;;  %v386_v54 = vand.u32 2147483647, %v376_v49 }
  0x81   : > { %v389_v57 = vor.u32 1.1754944e-38, %v388_v52  ;;  %vm387_vm4 = vcmp.eq.f32.partialorder %v386_v54, 8.507059e+37  ;;  %v519_v52 = vor.u32 inf, %v518_v34 }
  0x85   : > { %v1296_v50 = vpop.eup %1295 }
  0x86   : > { %v378_v51 = vmul.f32 %v1296_v50, %v376_v49  ;;  %vm383_vm2 = vweird.f32 %v1296_v50 }
  0x87   : > { %vm384_vm3 = vmor %vm382_vm1, %vm383_vm2  ;;  %vm423_vm1 = vcmp.eq.f32.partialorder %v1424_v46, 0.0  ;;  %vm522_vm2 = vcmp.eq.f32.partialorder %v459_v32, 0.0 }
  0x88   : > { %v379_v53 = vsub.f32 1.0, %v378_v51  ;;  %vm1570_vm11 = vmand %vm423_vm1, %vm352_vm13  ;;  %vm326_vm13 = vweird.f32 %v1414_v44 }
  0x8a   : > { %v380_v56 = vmul.f32 %v1296_v50, %v379_v53  ;;  %v427_v53 = vor.u32 inf, %v426_v35 }
  0x8c   : > { %v381_v59 = vadd.f32 %v1296_v50, %v380_v56 }
  0x8e   : > { %v385_v1 = vsel %vm384_vm3, %v1296_v50, %v381_v59  ;;  %vm430_vm3 = vcmp.eq.f32.partialorder %v1470_v23, 0.0 }
  0x8f   : > { %v390_v2 = vsel %vm387_vm4, %v389_v57, %v385_v1 }
  0x90   : > { %v391_v3 = vmul.f32 %v390_v2, %v375_v62 }
  0x92   : > { %v392_v11 = vmul.f32 %v391_v3, %v1424_v46  ;;  %v394_v14 = vmul.f32 %v391_v3, %v1393_v61  ;;  %v578_v30 = vmul.f32 %v1464_v20, %v391_v3  ;;  %v1482_v31 = vmul.f32 %v1449_v4, %v391_v3 }
  0x93   : > { %v396_v36 = vmul.f32 %v391_v3, %v1470_v23  ;;  %v398_v37 = vmul.f32 %v391_v3, %v1453_v5  ;;  %v672_v38 = vmul.f32 %v1477_v28, %v391_v3  ;;  %v674_v39 = vmul.f32 %v1472_v25, %v391_v3 }
  0x94   : > { %v393_v18 = vadd.f32 %v392_v11, %v1393_v61  ;;  %v395_v19 = vadd.f32 %v394_v14, %v1424_v46  ;;  %v600_v47 = vsub.f32 %v1482_v31, %v1464_v20  ;;  %v602_v49 = vsub.f32 %v1449_v4, %v578_v30 }
  0x95   : > { %v486_v50 = vmul.f32 %v1485_v33, %v391_v3  ;;  %v488_v51 = vmul.f32 %v459_v32, %v391_v3  ;;  %v418_v55 = vsub.f32 %v398_v37, %v1470_v23  ;;  %v420_v56 = vsub.f32 %v1453_v5, %v396_v36 }
  0x96   : > { %v401_v27 = vsel %vm1427_vm0, %v393_v18, %v395_v19  ;;  %v694_v57 = vsub.f32 %v674_v39, %v1477_v28  ;;  %v696_v58 = vsub.f32 %v1472_v25, %v672_v38  ;;  %v603_v1 = vsel %vm1427_vm0, %v600_v47, %v602_v49 }
  0x97   : > { %1297 = vrcp.f32 %v401_v27  ;;  %v411_v62 = vand.u32 2147483647, %v401_v27  ;;  %v413_v63 = vand.u32 2147483648, %v401_v27  ;;  %v508_v2 = vsub.f32 %v488_v51, %v1485_v33 }
  0x98   : > { %v510_v3 = vsub.f32 %v459_v32, %v486_v50  ;;  %vm407_vm4 = vweird.f32 %v401_v27  ;;  %1299 = vrcp.f32 %v1414_v44  ;;  %v421_v8 = vsel %vm1427_vm0, %v418_v55, %v420_v56 }
  0x99   : > { %v697_v10 = vsel %vm1427_vm0, %v694_v57, %v696_v58  ;;  %v397_v11 = vadd.f32 %v396_v36, %v1453_v5  ;;  %v399_v14 = vadd.f32 %v398_v37, %v1470_v23  ;;  %vm1534_vm7 = vcmp.eq.f32.partialorder %v411_v62, 8.507059e+37 }
  0x9a   : > { %v414_v17 = vor.u32 1.1754944e-38, %v413_v63  ;;  %v523_v18 = vsel %vm522_vm2, nan, %v519_v52  ;;  %v511_v21 = vsel %vm1427_vm0, %v508_v2, %v510_v3  ;;  %v487_v22 = vadd.f32 %v486_v50, %v459_v32 }
  0x9b   : > { %v489_v5 = vadd.f32 %v488_v51, %v1485_v33  ;;  %v673_v29 = vadd.f32 %v672_v38, %v1472_v25  ;;  %v675_v34 = vadd.f32 %v674_v39, %v1477_v28  ;;  %v400_v35 = vsel %vm1427_vm0, %v397_v11, %v399_v14 }
  0x9c   : > { %v702_v36 = vand.u32 2147483648, %v1477_v28  ;;  %v579_v32 = vadd.f32 %v578_v30, %v1449_v4  ;;  %v581_v23 = vadd.f32 %v1482_v31, %v1464_v20  ;;  %v608_v25 = vand.u32 2147483648, %v1464_v20 }
  0x9d   : > { %v1298_v54 = vpop.eup %1297  ;;  %v490_v30 = vsel %vm1427_vm0, %v487_v22, %v489_v5  ;;  %v517_v39 = vor.u32 inf, %v516_v24  ;;  %v676_v52 = vsel %vm1427_vm0, %v673_v29, %v675_v34  ;;  %v330_v3 = vand.u32 2147483647, %v1414_v44 }
  0x9e   : > { %v403_v59 = vmul.f32 %v1298_v54, %v401_v27  ;;  %vm408_vm5 = vweird.f32 %v1298_v54  ;;  %v431_v27 = vsel %vm430_vm3, nan, %v427_v53  ;;  %v1556_v37 = vpop.eup %1299  ;;  %v703_v53 = vor.u32 inf, %v702_v36 }
  0x9f   : > { %vm1539_vm8 = vmor %vm407_vm4, %vm408_vm5  ;;  %v322_v46 = vmul.f32 %v1556_v37, %v1414_v44  ;;  %v582_v56 = vsel %vm1427_vm0, %v579_v32, %v581_v23  ;;  %v609_v57 = vor.u32 inf, %v608_v25  ;;  %v521_v63 = vsel %vm520_vm12, nan, %v517_v39 }
  0xa0   : > { %v404_v6 = vsub.f32 1.0, %v403_v59  ;;  %vm327_vm0 = vweird.f32 %v1556_v37  ;;  %vm331_vm1 = vcmp.eq.f32.partialorder %v330_v3, 8.507059e+37  ;;  %v336_v22 = vxor.u32 2147483648, %v1393_v61 }
  0xa1   : > { %v323_v33 = vsub.f32 1.0, %v322_v46  ;;  %vm1625_vm14 = vmor %vm326_vm13, %vm327_vm0  ;;  %v320_v5 = vsub.f32 %v1414_v44, %v1390_v60  ;;  %v748_v46 = vld [vmem:[#allocation6] ss:$0 sm:$0xff]  ;;  %vm1718_vm2 = vcmp.gt.s32.totalorder %v1493_v40, %v1375_v13 }
  0xa2   : > { %v405_v15 = vmul.f32 %v1298_v54, %v404_v6  ;;  %v332_v6 = vand.u32 2147483648, %v1414_v44 }
  0xa4   : > { %v406_v26 = vadd.f32 %v1298_v54, %v405_v15 }
  0xa6   : > { %v410_v42 = vsel %vm1539_vm8, %v1298_v54, %v406_v26 }
  0xa7   : > { %v415_v38 = vsel %vm1534_vm7, %v414_v17, %v410_v42  ;;  %v613_v17 = vsel %vm612_vm10, nan, %v609_v57 }
  0xa8   : > { %v604_v31 = vmul.f32 %v603_v1, %v415_v38  ;;  %v422_v47 = vmul.f32 %v421_v8, %v415_v38  ;;  %v698_v49 = vmul.f32 %v697_v10, %v415_v38  ;;  %v512_v50 = vmul.f32 %v511_v21, %v415_v38 }
  0xa9   : > { %v416_v51 = vmul.f32 %v415_v38, %v400_v35  ;;  %v506_v62 = vmul.f32 %v490_v30, %v415_v38  ;;  %v707_v10 = vsel %vm706_vm9, nan, %v703_v53  ;;  %v692_v16 = vmul.f32 %v676_v52, %v415_v38 }
  0xaa   : > { %v617_v54 = vsel %vm1570_vm11, %v1497_v41, %v604_v31  ;;  %v435_v55 = vsel %vm1570_vm11, %v1507_v9, %v422_v47  ;;  %v711_v48 = vsel %vm1570_vm11, %v1515_v0, %v698_v49  ;;  %v525_v1 = vsel %vm1570_vm11, %v523_v18, %v512_v50 }
  0xab   : > { %v620_v58 = vsel %vm1410_vm15, 0.0, %v617_v54  ;;  %v438_v59 = vsel %vm1410_vm15, 0.0, %v435_v55  ;;  %v434_v2 = vsel %vm1570_vm11, %v431_v27, %v416_v51  ;;  %v714_v0 = vsel %vm1410_vm15, 0.0, %v711_v48  ;;  %v1250_v48 = vld [vmem:[%s1667_s14 + $0x8] sm:$0xff] }
  0xac   : > { %v626_v41 = vsel %vm1524_vm6, %v620_v58, 0.0  ;;  %v444_v9 = vsel %vm1524_vm6, %v438_v59, 0.0  ;;  %v437_v8 = vsel %vm1410_vm15, 0.0, %v434_v2  ;;  %v528_v11 = vsel %vm1410_vm15, 0.0, %v525_v1  ;;  %v1251_v2 = vld [vmem:[%s1669_s15 + $0x8] sm:$0xff] }
  0xad   : > { %629 = vadd.xlane.f32.xlu1 %v626_v41  ;;  %447 = vadd.xlane.f32.xlu0 %v444_v9  ;;  %v443_v14 = vsel %vm1524_vm6, %v437_v8, 0.0  ;;  %v524_v15 = vsel %vm1570_vm11, %v521_v63, %v506_v62  ;;  %v598_v28 = vmul.f32 %v582_v56, %v415_v38  ;;  %v324_v18 = vmul.f32 %v1556_v37, %v323_v33  ;;  %v763_v41 = vld [vmem:[%s1667_s14] sm:$0xff]  ;;  %v1254_v33 = vld [vmem:[%s1667_s14 + $0x10] sm:$0xff] }
  0xae   : > { %445 = vadd.xlane.f32.xlu2 %v443_v14  ;;  %v333_v21 = vor.u32 1.1754944e-38, %v332_v6  ;;  %v720_v24 = vsel %vm1524_vm6, %v714_v0, 0.0  ;;  %v534_v20 = vsel %vm1524_vm6, %v528_v11, 0.0  ;;  %v527_v26 = vsel %vm1410_vm15, 0.0, %v524_v15  ;;  %v764_v9 = vld [vmem:[%s1669_s15] sm:$0xff]  ;;  %v1258_v0 = vld [vmem:[%s1667_s14 + $0x18] sm:$0xff]  ;;  %s1709_s14 = smov %s1667_s14 }
  0xaf   : > { %v325_v27 = vadd.f32 %v1556_v37, %v324_v18  ;;  %v710_v29 = vsel %vm1570_vm11, %v707_v10, %v692_v16  ;;  %v616_v61 = vsel %vm1570_vm11, %v613_v17, %v598_v28  ;;  %v533_v44 = vsel %vm1524_vm6, %v527_v26, 0.0  ;;  %v747_v8 = vld [vmem:[#allocation4] ss:$0 sm:$0xff]  ;;  %v1255_v10 = vld [vmem:[%s1669_s15 + $0x10] sm:$0xff]  ;;  %v1259_v11 = vld [vmem:[%s1669_s15 + $0x18] sm:$0xff]  ;;  %s1712_s15 = smov %s1669_s15  ;;  %s1014_s18 = scalar_lea.vmem %s1709_s14, %s1307_s0 }
  0xb0   : > { %v713_v32 = vsel %vm1410_vm15, 0.0, %v710_v29  ;;  %v619_v42 = vsel %vm1410_vm15, 0.0, %v616_v61  ;;  %v1310_v50 = vmov 0.0   ;;  %v1311_v56 = vmov 1.0   ;;  %s1015_s19 = scalar_lea.vmem %s1712_s15, %s1307_s0  ;;  %s132_s0 = sadd.s32 1, %s1307_s0  }
  0xb1   : > { %v329_v60 = vsel %vm1625_vm14, %v1556_v37, %v325_v27  ;;  %v719_v25 = vsel %vm1524_vm6, %v713_v32, 0.0  ;;  %v625_v38 = vsel %vm1524_vm6, %v619_v42, 0.0  ;;  %v817_v15 = vadd.s32 24, %v759_v12  ;;  %p129_p0 = scmp.ge.s32.totalorder %s132_s0, 16  }
  0xb2   : > { %v334_v34 = vsel %vm331_vm1, %v333_v21, %v329_v60  ;;  %v859_v12 = vmov %v1372_v12 }
  0xb3   : > { %v351_v35 = vmul.f32 %v336_v22, %v334_v34  ;;  %v335_v36 = vmul.f32 %v334_v34, %v320_v5  ;;  %vm897_vm3 = vcmp.ge.s32.totalorder %v859_v12, %v1375_v13 }
  0xb4   : > { %vm1750_vm8 = vmand %vm1524_vm6, %vm897_vm3 }
  0xb5   : > { %723 = vadd.xlane.f32.xlu1 %v720_v24  ;;  %537 = vadd.xlane.f32.xlu0 %v534_v20  ;;  %v356_v23 = vsel %vm1410_vm15, 0.0, %v351_v35  ;;  %v355_v37 = vsel %vm1410_vm15, 0.0, %v335_v36  ;;  %vm836_vm15 = vcmp.lt.s32.totalorder %v817_v15, 32 }
  0xb6   : > { %535 = vadd.xlane.f32.xlu2 %v533_v44  ;;  %v738_v4 = vsel %vm1524_vm6, %v356_v23, 0.0  ;;  %v737_v30 = vsel %vm1524_vm6, %v355_v37, 0.0 }
  0xbd   : > { %721 = vadd.xlane.f32.xlu1 %v719_v25  ;;  %627 = vadd.xlane.f32.xlu0 %v625_v38 }
  0xbe   : > { %741 = vadd.xlane.f32.xlu2 %v738_v4 }
  0xc5   : > { %739 = vadd.xlane.f32.xlu0 %v737_v30 }
 0x120   : > { %v630_v39 = vpop.xlane.xlu1 %629  ;;  %v448_v43 = vpop.xlane.xlu0 %447 }
 0x121   : > { %634 = vst [vmem:[#allocation9 + $0x10] sm:$0xff] %v630_v39  ;;  %v446_v31 = vpop.xlane.xlu2 %445 }
 0x122   : > { %450 = vst [vmem:[#allocation9] sm:$0xff] %v448_v43 }
 0x123   : > { %449 = vst [vmem:[#allocation8] sm:$0xff] %v446_v31 }
 0x128   : > { %v724_v47 = vpop.xlane.xlu1 %723  ;;  %v538_v49 = vpop.xlane.xlu0 %537 }
 0x129   : > { %728 = vst [vmem:[#allocation9 + $0x18] sm:$0xff] %v724_v47  ;;  %v536_v51 = vpop.xlane.xlu2 %535 }
 0x12a   : > { %542 = vst [vmem:[#allocation9 + $0x8] sm:$0xff] %v538_v49 }
 0x12b   : > { %732 = vst [vmem:[%s730_s12] sm:$0x1] %v1310_v50 }
 0x12c   : > { %541 = vst [vmem:[#allocation8 + $0x8] sm:$0xff] %v536_v51 }
 0x130   : > { %v722_v52 = vpop.xlane.xlu1 %721  ;;  %v628_v53 = vpop.xlane.xlu0 %627 }
 0x131   : > { %727 = vst [vmem:[#allocation8 + $0x18] sm:$0xff] %v722_v52  ;;  %v1676_v59 = vpop.xlane.xlu2 %741 }
 0x132   : > { %633 = vst [vmem:[#allocation8 + $0x10] sm:$0xff] %v628_v53  ;;  %v762_v54 = vld [vmem:[%s1665_s13] sm:$0xff]  ;;  %v1249_v55 = vld [vmem:[%s1665_s13 + $0x8] sm:$0xff]  ;;  %v1253_v57 = vld [vmem:[%s1665_s13 + $0x10] sm:$0xff]  ;;  %v750_v63 = vsel %vm1524_vm6, %v1676_v59, %v748_v46 }
 0x133   : > { %731 = vst [vmem:[%s729_s16] sm:$0x1] %v1311_v56  ;;  %v1257_v58 = vld [vmem:[%s1665_s13 + $0x18] sm:$0xff]  ;;  %v765_v62 = vxor.u32 2147483648, %v762_v54  ;;  %v784_v1 = vxor.u32 2147483648, %v1249_v55  ;;  %v805_v3 = vxor.u32 2147483648, %v1253_v57  ;;  %s1706_s13 = smov %s1665_s13 }
 0x134   : > { %752 = vst [vmem:[#allocation6] sm:$0x1] %v750_v63  ;;  %v826_v6 = vxor.u32 2147483648, %v1257_v58 }
 0x135   : > { %v769_v14 = vmul.f32 %v765_v62, %v764_v9  ;;  %v772_v28 = vmul.f32 %v765_v62, %v763_v41  ;;  %v788_v17 = vmul.f32 %v1251_v2, %v784_v1  ;;  %v791_v18 = vmul.f32 %v1250_v48, %v784_v1 }
 0x136   : > { %v809_v24 = vmul.f32 %v1255_v10, %v805_v3  ;;  %v812_v20 = vmul.f32 %v1254_v33, %v805_v3  ;;  %v830_v26 = vmul.f32 %v1259_v11, %v826_v6  ;;  %v833_v27 = vmul.f32 %v1258_v0, %v826_v6 }
 0x137   : > { %v860_v1 = vxor.u32 2147483648, %v1676_v59  ;;  %v903_v3 = vadd.s32 8, %v859_v12  ;;  %v940_v6 = vadd.s32 16, %v859_v12 }
 0x138   : > { %v740_v16 = vpop.xlane.xlu0 %739 }
 0x139   : > { %v749_v19 = vsel %vm1524_vm6, %v740_v16, %v747_v8  ;;  %v1700_v8 = vadd.s32 24, %v859_v12  ;;  %vm934_vm4 = vcmp.ge.s32.totalorder %v903_v3, %v1375_v13  ;;  %vm971_vm5 = vcmp.ge.s32.totalorder %v940_v6, %v1375_v13  ;;  %v1269_v12 = vld [vmem:[%s1712_s15 + $0x10] sm:$0xff] }
 0x13a   : > { %v761_v21 = vld [vmem:[%s1687_s17] sm:$0xff]  ;;  %v1248_v22 = vld [vmem:[%s1687_s17 + $0x8] sm:$0xff]  ;;  %v1252_v5 = vld [vmem:[%s1687_s17 + $0x10] sm:$0xff]  ;;  %751 = vst [vmem:[#allocation4] sm:$0x1] %v749_v19 }
 0x13b   : > { %v768_v29 = vmul.f32 %v763_v41, %v761_v21  ;;  %v771_v61 = vmul.f32 %v764_v9, %v761_v21  ;;  %v787_v60 = vmul.f32 %v1250_v48, %v1248_v22  ;;  %v790_v44 = vmul.f32 %v1251_v2, %v1248_v22  ;;  %v1256_v34 = vld [vmem:[%s1687_s17 + $0x18] sm:$0xff]  ;;  %s1703_s17 = smov %s1687_s17  ;;  %v1261_v19 = vld [vmem:[%s1706_s13 + $0x8] sm:$0xff]  ;;  %v884_v21 = vld [vmem:[%s1709_s14] sm:$0xff] }
 0x13c   : > { %v808_v35 = vmul.f32 %v1254_v33, %v1252_v5  ;;  %v811_v36 = vmul.f32 %v1255_v10, %v1252_v5  ;;  %v829_v32 = vmul.f32 %v1258_v0, %v1256_v34  ;;  %v832_v42 = vmul.f32 %v1259_v11, %v1256_v34  ;;  %v1262_v34 = vld [vmem:[%s1709_s14 + $0x8] sm:$0xff]  ;;  %vm1759_vm9 = vmand %vm1524_vm6, %vm934_vm4 }
 0x13d   : > { %v770_v23 = vsub.f32 %v768_v29, %v769_v14  ;;  %v773_v37 = vadd.f32 %v772_v28, %v771_v61  ;;  %v789_v25 = vsub.f32 %v787_v60, %v788_v17  ;;  %v792_v38 = vadd.f32 %v791_v18, %v790_v44  ;;  %v873_v17 = vld [vmem:[%s1703_s17] sm:$0xff]  ;;  %vm1768_vm10 = vmand %vm1524_vm6, %vm971_vm5 }
 0x13e   : > { %v831_v4 = vsub.f32 %v829_v32, %v830_v26  ;;  %v834_v30 = vadd.f32 %v833_v27, %v832_v42  ;;  %v810_v31 = vsub.f32 %v808_v35, %v809_v24  ;;  %v813_v47 = vadd.f32 %v812_v20, %v811_v36  ;;  %v874_v18 = vld [vmem:[%s1706_s13] sm:$0xff]  ;;  %v1266_v20 = vld [vmem:[%s1703_s17 + $0x10] sm:$0xff]  ;;  %v1263_v35 = vld [vmem:[%s1712_s15 + $0x8] sm:$0xff] }
 0x13f   : > { %v794_v39 = vadd.f32 %v789_v25, %v770_v23  ;;  %v795_v43 = vadd.f32 %v792_v38, %v773_v37  ;;  %vm1008_vm7 = vcmp.ge.s32.totalorder %v1700_v8, %v1375_v13  ;;  %v1267_v26 = vld [vmem:[%s1706_s13 + $0x10] sm:$0xff]  ;;  %v885_v27 = vld [vmem:[%s1712_s15] sm:$0xff]  ;;  %v1272_v37 = vld [vmem:[%s1703_s17 + $0x18] sm:$0xff] }
 0x140   : > { %v837_v51 = vsel %vm836_vm15, %v831_v4, 0.0  ;;  %v838_v52 = vsel %vm836_vm15, %v834_v30, 0.0  ;;  %v1268_v25 = vld [vmem:[%s1709_s14 + $0x10] sm:$0xff]  ;;  %vm1009_vm11 = vmand %vm1524_vm6, %vm1008_vm7 }
 0x141   : > { %v815_v49 = vadd.f32 %v810_v31, %v794_v39  ;;  %v816_v50 = vadd.f32 %v813_v47, %v795_v43  ;;  %v1273_v43 = vld [vmem:[%s1706_s13 + $0x18] sm:$0xff]  ;;  %v1028_v28 = vld [vmem:[#allocation4] sm:$0x1] (%p129_p0) }
 0x142   :  { %1031 = vst [vmem:[#allocation5] sm:$0x1] (%p129_p0), %v1028_v28 }
 0x143   : > { %v839_v53 = vadd.f32 %v837_v51, %v815_v49  ;;  %v840_v46 = vadd.f32 %v838_v52, %v816_v50 }
 0x145   : > { %v841_v54 = vrot.slane %v839_v53, 4  ;;  %v847_v55 = vrot.slane %v840_v46, 4 }
 0x147   : > { %v842_v56 = vadd.f32 %v841_v54, %v839_v53  ;;  %v848_v57 = vadd.f32 %v847_v55, %v840_v46 }
 0x149   : > { %v843_v58 = vrot.slane %v842_v56, 2  ;;  %v849_v62 = vrot.slane %v848_v57, 2 }
 0x14b   : > { %v844_v63 = vadd.f32 %v843_v58, %v842_v56  ;;  %v850_v41 = vadd.f32 %v849_v62, %v848_v57 }
 0x14d   : > { %v845_v9 = vrot.slane %v844_v63, 1  ;;  %v851_v48 = vrot.slane %v850_v41, 1 }
 0x14f   : > { %v846_v2 = vadd.f32 %v845_v9, %v844_v63  ;;  %v852_v33 = vadd.f32 %v851_v48, %v850_v41 }
 0x151   : > { %v864_v10 = vmul.f32 %v860_v1, %v852_v33  ;;  %v866_v0 = vmul.f32 %v860_v1, %v846_v2  ;;  %v863_v11 = vmul.f32 %v846_v2, %v740_v16  ;;  %v867_v59 = vmul.f32 %v852_v33, %v740_v16  ;;  %v1260_v16 = vld [vmem:[%s1703_s17 + $0x8] sm:$0xff]  ;;  %v1274_v2 = vld [vmem:[%s1709_s14 + $0x18] sm:$0xff] }
 0x153   : > { %v1714_v14 = vsub.f32 %v863_v11, %v864_v10  ;;  %v868_v15 = vadd.f32 %v867_v59, %v866_v0 }
 0x155   : > { %v877_v40 = vmul.f32 %v873_v17, %v1714_v14  ;;  %v878_v22 = vmul.f32 %v874_v18, %v868_v15  ;;  %v880_v5 = vmul.f32 %v873_v17, %v868_v15  ;;  %v881_v24 = vmul.f32 %v874_v18, %v1714_v14 }
 0x156   : > { %v912_v29 = vmul.f32 %v1260_v16, %v1714_v14  ;;  %v913_v61 = vmul.f32 %v1261_v19, %v868_v15  ;;  %v915_v60 = vmul.f32 %v1260_v16, %v868_v15  ;;  %v916_v44 = vmul.f32 %v1261_v19, %v1714_v14 }
 0x157   : > { %v879_v36 = vsub.f32 %v877_v40, %v878_v22  ;;  %v882_v32 = vadd.f32 %v881_v24, %v880_v5  ;;  %v949_v42 = vmul.f32 %v1266_v20, %v1714_v14  ;;  %v950_v23 = vmul.f32 %v1267_v26, %v868_v15 }
 0x158   : > { %v914_v38 = vsub.f32 %v912_v29, %v913_v61  ;;  %v917_v4 = vadd.f32 %v916_v44, %v915_v60  ;;  %v952_v30 = vmul.f32 %v1266_v20, %v868_v15  ;;  %v953_v39 = vmul.f32 %v1267_v26, %v1714_v14 }
 0x159   : > { %v888_v47 = vsub.f32 %v884_v21, %v879_v36  ;;  %v889_v49 = vsub.f32 %v885_v27, %v882_v32  ;;  %v951_v50 = vsub.f32 %v949_v42, %v950_v23  ;;  %v986_v51 = vmul.f32 %v1272_v37, %v1714_v14 }
 0x15a   : > { %v925_v53 = vsub.f32 %v1262_v34, %v914_v38  ;;  %v926_v46 = vsub.f32 %v1263_v35, %v917_v4  ;;  %v954_v54 = vadd.f32 %v953_v39, %v952_v30  ;;  %v987_v55 = vmul.f32 %v1273_v43, %v868_v15 }
 0x15b   : > { %v890_v57 = vsel %vm1718_vm2, %v888_v47, %v884_v21  ;;  %v891_v58 = vsel %vm1718_vm2, %v889_v49, %v885_v27  ;;  %v962_v62 = vsub.f32 %v1268_v25, %v951_v50  ;;  %v989_v63 = vmul.f32 %v1272_v37, %v868_v15  ;;  %v1275_v15 = vld [vmem:[%s1712_s15 + $0x18] sm:$0xff] }
 0x15c   : > { %v899_v41 = vsel %vm1750_vm8, %v873_v17, %v890_v57  ;;  %v900_v9 = vsel %vm1750_vm8, %v874_v18, %v891_v58  ;;  %v927_v48 = vsel %vm1718_vm2, %v925_v53, %v1262_v34  ;;  %v928_v1 = vsel %vm1718_vm2, %v926_v46, %v1263_v35  ;;  %v1146_v35 = vld [vmem:[#allocation5] sm:$0x1] (%p129_p0) }
 0x15d   : > { %901 = vst [vmem:[%s1709_s14] sm:$0xff] %v899_v41  ;;  %v936_v33 = vsel %vm1759_vm9, %v1260_v16, %v927_v48  ;;  %v937_v3 = vsel %vm1759_vm9, %v1261_v19, %v928_v1  ;;  %v963_v6 = vsub.f32 %v1269_v12, %v954_v54  ;;  %v964_v10 = vsel %vm1718_vm2, %v962_v62, %v1268_v25 }
 0x15e   : > { %902 = vst [vmem:[%s1712_s15] sm:$0xff] %v900_v9  ;;  %v973_v0 = vsel %vm1768_vm10, %v1266_v20, %v964_v10  ;;  %v988_v11 = vsub.f32 %v986_v51, %v987_v55  ;;  %v990_v59 = vmul.f32 %v1273_v43, %v1714_v14 }
 0x15f   : > { %1264 = vst [vmem:[%s1709_s14 + $0x8] sm:$0xff] %v936_v33  ;;  %v965_v17 = vsel %vm1718_vm2, %v963_v6, %v1269_v12 }
 0x160   : > { %1265 = vst [vmem:[%s1712_s15 + $0x8] sm:$0xff] %v937_v3  ;;  %v974_v14 = vsel %vm1768_vm10, %v1267_v26, %v965_v17  ;;  %v991_v18 = vadd.f32 %v990_v59, %v989_v63  ;;  %v999_v16 = vsub.f32 %v1274_v2, %v988_v11  ;;  %v1034_v26 = vld [vmem:[#allocation6] sm:$0x1] (%p129_p0) }
 0x161   : > { %1270 = vst [vmem:[%s1709_s14 + $0x10] sm:$0xff] %v973_v0 }
 0x162   : > { %1271 = vst [vmem:[%s1712_s15 + $0x10] sm:$0xff] %v974_v14  ;;  %v1000_v19 = vsub.f32 %v1275_v15, %v991_v18  ;;  %v1001_v21 = vsel %vm1718_vm2, %v999_v16, %v1274_v2 }
 0x163   : > { %v1010_v40 = vsel %vm1009_vm11, %v1272_v37, %v1001_v21  ;;  %1037 = vst [vmem:[#allocation7] sm:$0x1] (%p129_p0), %v1034_v26 }
 0x164   : > { %v1002_v13 = vsel %vm1718_vm2, %v1000_v19, %v1275_v15  ;;  %1276 = vst [vmem:[%s1709_s14 + $0x18] sm:$0xff] %v1010_v40 }
 0x165   : > { %v1011_v8 = vsel %vm1009_vm11, %v1273_v43, %v1002_v13  ;;  %1147 = vst [vmem:[%s1862_s4] sm:$0x1] (%p129_p0), %v1146_v35 }
 0x166   : > { %1277 = vst [vmem:[%s1712_s15 + $0x18] sm:$0xff] %v1011_v8 }
 0x16a   :  { %v1181_v36 = vld [vmem:[#allocation7] sm:$0x1] (%p129_p0) }
 0x16b   : > { %v1016_v22 = vld [vmem:[%s1014_s18] ss:$0 sm:$0xff]  ;;  %131 = sbr.rel (!%p129_p0) target bundleno = 11 (0xb), region = 314  ;;  %1182 = vst [vmem:[%s1863_s5] sm:$0x1] (%p129_p0), %v1181_v36 }
 0x16c   : > { %v1022_v5 = vsel %vm1524_vm6, %v1420_v45, %v1016_v22 }
 0x16d   : > { %v1017_v24 = vld [vmem:[%s1015_s19] ss:$0 sm:$0xff]  ;;  %1024 = vst [vmem:[%s1014_s18] sm:$0x1] %v1022_v5 }
 0x16e   : > { %v1023_v20 = vsel %vm1524_vm6, 0.0, %v1017_v24 }
 0x16f   : > { %1025 = vst [vmem:[%s1015_s19] sm:$0x1] %v1023_v20 }
 0x174   :  { %v1072_v27 = vld [vmem:[#allocation2] sm:$0xff]  ;;  %v1074_v29 = vld [vmem:[#allocation2 + $0x8] sm:$0xff]  ;;  %v1076_v61 = vld [vmem:[#allocation2 + $0x10] sm:$0xff] }
 0x175   :  { %1073 = vst [vmem:[%s1860_s2] sm:$0xff] %v1072_v27  ;;  %v1078_v45 = vld [vmem:[#allocation2 + $0x18] sm:$0xff] }
 0x176   :  { %1075 = vst [vmem:[%s1860_s2 + $0x8] sm:$0xff] %v1074_v29  ;;  %v1117_v7 = vld [vmem:[#allocation3] sm:$0xff]  ;;  %v1119_v60 = vld [vmem:[#allocation3 + $0x8] sm:$0xff]  ;;  %v1121_v44 = vld [vmem:[#allocation3 + $0x10] sm:$0xff] }
 0x177   :  { %1077 = vst [vmem:[%s1860_s2 + $0x10] sm:$0xff] %v1076_v61  ;;  %v1123_v34 = vld [vmem:[#allocation3 + $0x18] sm:$0xff] }
 0x178   :  { %1079 = vst [vmem:[%s1860_s2 + $0x18] sm:$0xff] %v1078_v45 }
 0x179   :  { %1118 = vst [vmem:[%s1861_s3] sm:$0xff] %v1117_v7 }
 0x17a   :  { %1120 = vst [vmem:[%s1861_s3 + $0x8] sm:$0xff] %v1119_v60 }
 0x17b   :  { %1122 = vst [vmem:[%s1861_s3 + $0x10] sm:$0xff] %v1121_v44 }
 0x17c   :  { %1124 = vst [vmem:[%s1861_s3 + $0x18] sm:$0xff] %v1123_v34 }

// kernel: custom-call.47
= control target key start
LH: loop header
LB: loop body
LE: loop exit
PB: predicated region body
PF: predicated region fallthrough
CT: control target
= control target key end

     0   :  { %s1386_s0 = inlined_call_operand.vmem [shape: f32[16,16], index: 0, kind: input, shape index: {}]   ;;  %s1387_s1 = inlined_call_operand.vmem [shape: f32[16,16], index: 1, kind: input, shape index: {}]   ;;  %s1388_s2 = inlined_call_operand.vmem [shape: f32[16,16], index: 2, kind: output, shape index: {0}]   ;;  %s1389_s3 = inlined_call_operand.vmem [shape: f32[16,16], index: 3, kind: output, shape index: {1}]  }
   0x1   :  { %s14_s14 = scalar_lea.vmem %s1386_s0, 8 }
   0x2   :  { %p782_p0 = scmp.gt.s32.totalorder %s1386_s0, %s14_s14 }
   0x3   :  { %s1199_s17 = smov (!%p782_p0), [#allocation0]   ;;  %s1203_s20 = smov (!%p782_p0), %s1386_s0  }
   0x4   :  { %783 = sbr.rel (%p782_p0) target bundleno = 17 (0x11), region = 164 }
   0x9 LB: > { %v48_v0 = vld [vmem:[%s1205_s20] sm:$0xff]  ;;  %s50_s20 = scalar_lea.vmem %s1205_s20, 8   ;;  %s1205_s20 = sphi %s1203_s20, %s50_s20   ;;  %s1201_s17 = sphi %s1199_s17, %s51_s17  }
   0xa   : > { %49 = vst [vmem:[%s1201_s17] sm:$0xff] %v48_v0  ;;  %s51_s17 = scalar_lea.vmem %s1201_s17, 8   ;;  %p45_p1 = scmp.gt.s32.totalorder %s50_s20, %s14_s14 }
   0xc   :  { %47 = sbr.rel (!%p45_p1) target bundleno = 9 (0x9), region = 170 }
  0x11 PF:  { %s70_s23 = scalar_lea.vmem %s1387_s1, 8 }
  0x12   :  { %p802_p2 = scmp.gt.s32.totalorder %s1387_s1, %s70_s23 }
  0x13   :  { %s1207_s0 = smov (!%p802_p2), [#allocation1]   ;;  %s1211_s28 = smov (!%p802_p2), %s1387_s1  }
  0x14   :  { %803 = sbr.rel (%p802_p2) target bundleno = 33 (0x21), region = 186 }
  0x19 LB: > { %v104_v1 = vld [vmem:[%s1213_s28] sm:$0xff]  ;;  %s106_s28 = scalar_lea.vmem %s1213_s28, 8   ;;  %s1213_s28 = sphi %s1211_s28, %s106_s28   ;;  %s1209_s0 = sphi %s1207_s0, %s107_s0  }
  0x1a   : > { %105 = vst [vmem:[%s1209_s0] sm:$0xff] %v104_v1  ;;  %s107_s0 = scalar_lea.vmem %s1209_s0, 8   ;;  %p101_p3 = scmp.gt.s32.totalorder %s106_s28, %s70_s23 }
  0x1c   :  { %103 = sbr.rel (!%p101_p3) target bundleno = 25 (0x19), region = 192 }
  0x21 PF:  { %v117_v2 = vlaneseq  ;;  %v141_v3 = vld [vmem:[#allocation0 + $0x1] ss:$0 sm:$0xff]  ;;  %v142_v4 = vld [vmem:[#allocation1 + $0x1] ss:$0 sm:$0xff]  ;;  %vm143_vm0 = vcmask 130048   ;;  %s1215_s30 = smov %s1388_s2   ;;  %s1219_s4 = smov [#allocation2]  }
  0x22   :  { %v123_v7 = vld [vmem:[#allocation0] sm:$0xff]  ;;  %v124_v8 = vld [vmem:[#allocation1] sm:$0xff]  ;;  %v144_v9 = vsel %vm143_vm0, %v141_v3, 0.0  ;;  %v145_v10 = vsel %vm143_vm0, %v142_v4, 0.0 }
  0x23   :  { %v1270_v5 = vand.u32 127, %v117_v2  ;;  %v1272_v6 = vshrl.u32 %v117_v2, 7  ;;  %v166_v22 = vld [vmem:[#allocation0 + $0x2] ss:$0 sm:$0xff]  ;;  %v167_v23 = vld [vmem:[#allocation1 + $0x2] ss:$0 sm:$0xff] }
  0x24   :  { %v169_v25 = vsel %vm143_vm0, %v166_v22, 0.0  ;;  %v170_v28 = vsel %vm143_vm0, %v167_v23, 0.0  ;;  %v191_v36 = vld [vmem:[#allocation0 + $0x3] ss:$0 sm:$0xff]  ;;  %v192_v37 = vld [vmem:[#allocation1 + $0x3] ss:$0 sm:$0xff] }
  0x25   :  { %vm122_vm1 = vcmp.eq.s32.totalorder %v1270_v5, %v1272_v6  ;;  %vm127_vm2 = vcmp.eq.s32.totalorder %v1270_v5, 0  ;;  %vm148_vm3 = vcmp.eq.s32.totalorder %v1270_v5, 1  ;;  %vm173_vm4 = vcmp.eq.s32.totalorder %v1270_v5, 2  ;;  %v216_v50 = vld [vmem:[#allocation0 + $0x4] ss:$0 sm:$0xff] }
  0x26   :  { %v128_v11 = vsel %vm127_vm2, %v123_v7, 1.0  ;;  %v129_v12 = vsel %vm127_vm2, %v124_v8, 0.0  ;;  %v194_v39 = vsel %vm143_vm0, %v191_v36, 0.0  ;;  %v195_v42 = vsel %vm143_vm0, %v192_v37, 0.0  ;;  %v217_v51 = vld [vmem:[#allocation1 + $0x4] ss:$0 sm:$0xff] }
  0x27   :  { %v130_v13 = vsel %vm122_vm1, %v128_v11, 0.0  ;;  %v131_v14 = vsel %vm122_vm1, %v129_v12, 0.0  ;;  %vm198_vm5 = vcmp.eq.s32.totalorder %v1270_v5, 3  ;;  %v219_v53 = vsel %vm143_vm0, %v216_v50, 0.0  ;;  %v241_v63 = vld [vmem:[#allocation0 + $0x5] ss:$0 sm:$0xff] }
  0x28   :  { %v151_v15 = vmul.f32 %v144_v9, %v130_v13  ;;  %v152_v16 = vmul.f32 %v145_v10, %v131_v14  ;;  %v154_v18 = vmul.f32 %v144_v9, %v131_v14  ;;  %v155_v19 = vmul.f32 %v145_v10, %v130_v13  ;;  %v242_v0 = vld [vmem:[#allocation1 + $0x5] ss:$0 sm:$0xff] }
  0x29   :  { %v220_v54 = vsel %vm143_vm0, %v217_v51, 0.0  ;;  %vm223_vm6 = vcmp.eq.s32.totalorder %v1270_v5, 4  ;;  %v244_v1 = vsel %vm143_vm0, %v241_v63, 0.0  ;;  %v245_v2 = vsel %vm143_vm0, %v242_v0, 0.0 }
  0x2a   :  { %v153_v17 = vsub.f32 %v151_v15, %v152_v16  ;;  %v156_v20 = vadd.f32 %v155_v19, %v154_v18  ;;  %v266_v15 = vld [vmem:[#allocation0 + $0x6] ss:$0 sm:$0xff]  ;;  %v267_v16 = vld [vmem:[#allocation1 + $0x6] ss:$0 sm:$0xff]  ;;  %vm248_vm7 = vcmp.eq.s32.totalorder %v1270_v5, 5  ;;  %vm273_vm8 = vcmp.eq.s32.totalorder %v1270_v5, 6 }
  0x2b   :  { %v270_v18 = vsel %vm143_vm0, %v267_v16, 0.0  ;;  %vm298_vm10 = vcmp.eq.s32.totalorder %v1270_v5, 7  ;;  %vm323_vm11 = vcmp.eq.s32.totalorder %v1270_v5, 8  ;;  %vm363_vm12 = vcmp.eq.s32.totalorder %v1270_v5, 9 }
  0x2c   :  { %158 = vadd.xlane.f32.xlu0 %v153_v17  ;;  %v269_v17 = vsel %vm143_vm0, %v266_v15, 0.0  ;;  %vm403_vm13 = vcmp.eq.s32.totalorder %v1270_v5, 10  ;;  %vm443_vm14 = vcmp.eq.s32.totalorder %v1270_v5, 11  ;;  %vm483_vm15 = vcmp.eq.s32.totalorder %v1270_v5, 12 }
  0x2d   :  { %vm523_vm1 = vcmp.eq.s32.totalorder %v1270_v5, 13  ;;  %vm563_vm2 = vcmp.eq.s32.totalorder %v1270_v5, 14 }
  0x34   :  { %160 = vadd.xlane.f32.xlu0 %v156_v20 }
  0x9f   :  { %v159_v21 = vpop.xlane.xlu0 %158 }
  0xa0   :  { %v162_v24 = vsel %vm148_vm3, %v159_v21, %v130_v13 }
  0xa1   :  { %v176_v29 = vmul.f32 %v169_v25, %v162_v24  ;;  %v180_v33 = vmul.f32 %v170_v28, %v162_v24 }
  0xa7   :  { %v161_v26 = vpop.xlane.xlu0 %160 }
  0xa8   :  { %v163_v27 = vsel %vm148_vm3, %v161_v26, %v131_v14 }
  0xa9   :  { %v177_v30 = vmul.f32 %v170_v28, %v163_v27  ;;  %v179_v32 = vmul.f32 %v169_v25, %v163_v27 }
  0xab   :  { %v178_v31 = vsub.f32 %v176_v29, %v177_v30  ;;  %v181_v34 = vadd.f32 %v180_v33, %v179_v32  ;;  %v291_v29 = vld [vmem:[#allocation0 + $0x7] ss:$0 sm:$0xff]  ;;  %v292_v30 = vld [vmem:[#allocation1 + $0x7] ss:$0 sm:$0xff] }
  0xac   :  { %v295_v32 = vsel %vm143_vm0, %v292_v30, 0.0 }
  0xad   :  { %183 = vadd.xlane.f32.xlu1 %v178_v31  ;;  %v294_v31 = vsel %vm143_vm0, %v291_v29, 0.0 }
  0xb5   :  { %185 = vadd.xlane.f32.xlu1 %v181_v34 }
 0x120   :  { %v184_v35 = vpop.xlane.xlu1 %183 }
 0x121   :  { %v187_v38 = vsel %vm173_vm4, %v184_v35, %v162_v24 }
 0x122   :  { %v201_v43 = vmul.f32 %v194_v39, %v187_v38  ;;  %v205_v47 = vmul.f32 %v195_v42, %v187_v38 }
 0x128   :  { %v186_v40 = vpop.xlane.xlu1 %185 }
 0x129   :  { %v188_v41 = vsel %vm173_vm4, %v186_v40, %v163_v27 }
 0x12a   :  { %v202_v44 = vmul.f32 %v195_v42, %v188_v41  ;;  %v204_v46 = vmul.f32 %v194_v39, %v188_v41 }
 0x12c   :  { %v203_v45 = vsub.f32 %v201_v43, %v202_v44  ;;  %v206_v48 = vadd.f32 %v205_v47, %v204_v46  ;;  %v317_v43 = vld [vmem:[#allocation1 + $0x8] ss:$0 sm:$0xff]  ;;  %v316_v44 = vld [vmem:[#allocation0 + $0x8] ss:$0 sm:$0xff] }
 0x12d   :  { %v320_v46 = vsel %vm143_vm0, %v317_v43, 0.0 }
 0x12e   :  { %208 = vadd.xlane.f32.xlu2 %v203_v45  ;;  %v136_v45 = vadd.s32 8, %v1272_v6  ;;  %v342_v47 = vmul.f32 0.0, %v320_v46 }
 0x130   :  { %vm137_vm9 = vcmp.eq.s32.totalorder %v1270_v5, %v136_v45 }
 0x136   :  { %210 = vadd.xlane.f32.xlu2 %v206_v48  ;;  %v319_v48 = vsel %vm143_vm0, %v316_v44, 0.0 }
 0x1a1   :  { %v209_v49 = vpop.xlane.xlu2 %208 }
 0x1a2   :  { %v212_v52 = vsel %vm198_vm5, %v209_v49, %v187_v38  ;;  %v1231_v49 = vmov 0.0  }
 0x1a3   :  { %v230_v58 = vmul.f32 %v220_v54, %v212_v52  ;;  %v226_v59 = vmul.f32 %v219_v53, %v212_v52  ;;  %v138_v50 = vsel %vm137_vm9, 1.0, %v1231_v49 }
 0x1a4   :  { %v341_v51 = vmul.f32 %v319_v48, %v138_v50  ;;  %v345_v63 = vmul.f32 %v320_v46, %v138_v50 }
 0x1a9   :  { %v211_v55 = vpop.xlane.xlu2 %210 }
 0x1aa   :  { %v213_v56 = vsel %vm198_vm5, %v211_v55, %v188_v41 }
 0x1ab   :  { %v229_v57 = vmul.f32 %v219_v53, %v213_v56  ;;  %v227_v60 = vmul.f32 %v220_v54, %v213_v56 }
 0x1ad   :  { %v231_v61 = vadd.f32 %v230_v58, %v229_v57  ;;  %v228_v62 = vsub.f32 %v226_v59, %v227_v60 }
 0x1af   :  { %235 = vadd.xlane.f32.xlu1 %v231_v61  ;;  %233 = vadd.xlane.f32.xlu0 %v228_v62  ;;  %v344_v62 = vmul.f32 0.0, %v319_v48 }
 0x1b1   :  { %v346_v0 = vadd.f32 %v345_v63, %v344_v62 }
 0x222   :  { %v236_v3 = vpop.xlane.xlu1 %235  ;;  %v234_v4 = vpop.xlane.xlu0 %233 }
 0x223   :  { %v238_v7 = vsel %vm223_vm6, %v236_v3, %v213_v56  ;;  %v237_v8 = vsel %vm223_vm6, %v234_v4, %v212_v52  ;;  %v343_v52 = vsub.f32 %v341_v51, %v342_v47  ;;  %v436_v51 = vld [vmem:[#allocation0 + $0xb] ss:$0 sm:$0xff] }
 0x224   :  { %v254_v9 = vmul.f32 %v244_v1, %v238_v7  ;;  %v255_v10 = vmul.f32 %v245_v2, %v237_v8  ;;  %v251_v11 = vmul.f32 %v244_v1, %v237_v8  ;;  %v252_v12 = vmul.f32 %v245_v2, %v238_v7  ;;  %v356_v1 = vld [vmem:[#allocation0 + $0x9] ss:$0 sm:$0xff]  ;;  %v357_v2 = vld [vmem:[#allocation1 + $0x9] ss:$0 sm:$0xff] }
 0x225   :  { %v359_v3 = vsel %vm143_vm0, %v356_v1, 0.0  ;;  %v360_v4 = vsel %vm143_vm0, %v357_v2, 0.0 }
 0x226   :  { %v256_v13 = vadd.f32 %v255_v10, %v254_v9  ;;  %v253_v14 = vsub.f32 %v251_v11, %v252_v12 }
 0x228   :  { %260 = vadd.xlane.f32.xlu0 %v256_v13  ;;  %258 = vadd.xlane.f32.xlu2 %v253_v14 }
 0x29b   :  { %v261_v19 = vpop.xlane.xlu0 %260  ;;  %v259_v20 = vpop.xlane.xlu2 %258 }
 0x29c   :  { %v263_v21 = vsel %vm248_vm7, %v261_v19, %v238_v7  ;;  %v262_v22 = vsel %vm248_vm7, %v259_v20, %v237_v8 }
 0x29d   :  { %v279_v23 = vmul.f32 %v269_v17, %v263_v21  ;;  %v280_v24 = vmul.f32 %v270_v18, %v262_v22  ;;  %v276_v25 = vmul.f32 %v269_v17, %v262_v22  ;;  %v277_v26 = vmul.f32 %v270_v18, %v263_v21 }
 0x29f   :  { %v281_v27 = vadd.f32 %v280_v24, %v279_v23  ;;  %v278_v28 = vsub.f32 %v276_v25, %v277_v26 }
 0x2a1   :  { %285 = vadd.xlane.f32.xlu2 %v281_v27  ;;  %283 = vadd.xlane.f32.xlu1 %v278_v28  ;;  %v396_v27 = vld [vmem:[#allocation0 + $0xa] ss:$0 sm:$0xff]  ;;  %v397_v28 = vld [vmem:[#allocation1 + $0xa] ss:$0 sm:$0xff] }
 0x2a2   :  { %v399_v29 = vsel %vm143_vm0, %v396_v27, 0.0  ;;  %v400_v30 = vsel %vm143_vm0, %v397_v28, 0.0 }
 0x314   :  { %v286_v33 = vpop.xlane.xlu2 %285  ;;  %v284_v34 = vpop.xlane.xlu1 %283 }
 0x315   :  { %v288_v35 = vsel %vm273_vm8, %v286_v33, %v263_v21  ;;  %v287_v36 = vsel %vm273_vm8, %v284_v34, %v262_v22 }
 0x316   :  { %v304_v37 = vmul.f32 %v294_v31, %v288_v35  ;;  %v305_v38 = vmul.f32 %v295_v32, %v287_v36  ;;  %v301_v39 = vmul.f32 %v294_v31, %v287_v36  ;;  %v302_v40 = vmul.f32 %v295_v32, %v288_v35 }
 0x318   :  { %v306_v41 = vadd.f32 %v305_v38, %v304_v37  ;;  %v303_v42 = vsub.f32 %v301_v39, %v302_v40 }
 0x31a   :  { %310 = vadd.xlane.f32.xlu1 %v306_v41  ;;  %308 = vadd.xlane.f32.xlu0 %v303_v42 }
 0x322   :  { %348 = vadd.xlane.f32.xlu1 %v343_v52  ;;  %v437_v52 = vld [vmem:[#allocation1 + $0xb] ss:$0 sm:$0xff] }
 0x38d   :  { %v311_v53 = vpop.xlane.xlu1 %310  ;;  %v309_v54 = vpop.xlane.xlu0 %308 }
 0x38e   :  { %v313_v55 = vsel %vm298_vm10, %v311_v53, %v288_v35  ;;  %v312_v56 = vsel %vm298_vm10, %v309_v54, %v287_v36  ;;  %v439_v53 = vsel %vm143_vm0, %v436_v51, 0.0  ;;  %v440_v54 = vsel %vm143_vm0, %v437_v52, 0.0 }
 0x38f   :  { %v329_v57 = vmul.f32 %v319_v48, %v313_v55  ;;  %v330_v6 = vmul.f32 %v320_v46, %v312_v56  ;;  %v326_v58 = vmul.f32 %v319_v48, %v312_v56  ;;  %v327_v59 = vmul.f32 %v320_v46, %v313_v55 }
 0x391   :  { %v331_v60 = vadd.f32 %v330_v6, %v329_v57  ;;  %v328_v61 = vsub.f32 %v326_v58, %v327_v59 }
 0x393   :  { %335 = vadd.xlane.f32.xlu0 %v331_v60  ;;  %333 = vadd.xlane.f32.xlu2 %v328_v61 }
 0x395   :  { %v349_v15 = vpop.xlane.xlu1 %348 }
 0x396   :  { %v352_v18 = vsel %vm323_vm11, %v349_v15, %v138_v50 }
 0x397   :  { %v385_v20 = vmul.f32 %v360_v4, %v352_v18  ;;  %v381_v21 = vmul.f32 %v359_v3, %v352_v18 }
 0x39b   :  { %350 = vadd.xlane.f32.xlu2 %v346_v0 }
 0x406   :  { %v336_v7 = vpop.xlane.xlu0 %335  ;;  %v334_v8 = vpop.xlane.xlu2 %333 }
 0x407   :  { %v338_v9 = vsel %vm323_vm11, %v336_v7, %v313_v55  ;;  %v337_v10 = vsel %vm323_vm11, %v334_v8, %v312_v56 }
 0x408   :  { %v369_v11 = vmul.f32 %v359_v3, %v338_v9  ;;  %v370_v12 = vmul.f32 %v360_v4, %v337_v10  ;;  %v366_v13 = vmul.f32 %v359_v3, %v337_v10  ;;  %v367_v14 = vmul.f32 %v360_v4, %v338_v9 }
 0x40a   :  { %v371_v16 = vadd.f32 %v370_v12, %v369_v11  ;;  %v368_v17 = vsub.f32 %v366_v13, %v367_v14  ;;  %v476_v12 = vld [vmem:[#allocation0 + $0xc] ss:$0 sm:$0xff]  ;;  %v477_v13 = vld [vmem:[#allocation1 + $0xc] ss:$0 sm:$0xff] }
 0x40b   :  { %v479_v14 = vsel %vm143_vm0, %v476_v12, 0.0  ;;  %v480_v15 = vsel %vm143_vm0, %v477_v13, 0.0 }
 0x40c   :  { %375 = vadd.xlane.f32.xlu1 %v371_v16  ;;  %373 = vadd.xlane.f32.xlu0 %v368_v17 }
 0x40e   :  { %v351_v19 = vpop.xlane.xlu2 %350 }
 0x40f   :  { %v353_v22 = vsel %vm323_vm11, %v351_v19, 0.0 }
 0x410   :  { %v382_v23 = vmul.f32 %v360_v4, %v353_v22  ;;  %v384_v24 = vmul.f32 %v359_v3, %v353_v22 }
 0x412   :  { %v386_v25 = vadd.f32 %v385_v20, %v384_v24  ;;  %v383_v26 = vsub.f32 %v381_v21, %v382_v23 }
 0x414   :  { %390 = vadd.xlane.f32.xlu0 %v386_v25  ;;  %388 = vadd.xlane.f32.xlu2 %v383_v26 }
 0x47f   :  { %v376_v31 = vpop.xlane.xlu1 %375  ;;  %v374_v32 = vpop.xlane.xlu0 %373 }
 0x480   :  { %v378_v33 = vsel %vm363_vm12, %v376_v31, %v338_v9  ;;  %v377_v34 = vsel %vm363_vm12, %v374_v32, %v337_v10 }
 0x481   :  { %v406_v35 = vmul.f32 %v399_v29, %v377_v34  ;;  %v407_v36 = vmul.f32 %v400_v30, %v378_v33  ;;  %v409_v37 = vmul.f32 %v399_v29, %v378_v33  ;;  %v410_v38 = vmul.f32 %v400_v30, %v377_v34 }
 0x483   :  { %v408_v39 = vsub.f32 %v406_v35, %v407_v36  ;;  %v411_v40 = vadd.f32 %v410_v38, %v409_v37  ;;  %v516_v36 = vld [vmem:[#allocation0 + $0xd] ss:$0 sm:$0xff]  ;;  %v517_v37 = vld [vmem:[#allocation1 + $0xd] ss:$0 sm:$0xff] }
 0x484   :  { %v519_v38 = vsel %vm143_vm0, %v516_v36, 0.0 }
 0x485   :  { %413 = vadd.xlane.f32.xlu1 %v408_v39  ;;  %415 = vadd.xlane.f32.xlu2 %v411_v40  ;;  %v520_v39 = vsel %vm143_vm0, %v517_v37, 0.0 }
 0x487   :  { %v391_v41 = vpop.xlane.xlu0 %390  ;;  %v389_v42 = vpop.xlane.xlu2 %388 }
 0x488   :  { %v393_v43 = vsel %vm363_vm12, %v391_v41, %v353_v22  ;;  %v392_v44 = vsel %vm363_vm12, %v389_v42, %v352_v18 }
 0x489   :  { %v424_v45 = vmul.f32 %v399_v29, %v393_v43  ;;  %v425_v46 = vmul.f32 %v400_v30, %v392_v44  ;;  %v421_v47 = vmul.f32 %v399_v29, %v392_v44  ;;  %v422_v48 = vmul.f32 %v400_v30, %v393_v43 }
 0x48b   :  { %v426_v49 = vadd.f32 %v425_v46, %v424_v45  ;;  %v423_v50 = vsub.f32 %v421_v47, %v422_v48 }
 0x48d   :  { %430 = vadd.xlane.f32.xlu1 %v426_v49  ;;  %428 = vadd.xlane.f32.xlu0 %v423_v50 }
 0x4f8   :  { %v414_v55 = vpop.xlane.xlu1 %413  ;;  %v416_v56 = vpop.xlane.xlu2 %415 }
 0x4f9   :  { %v417_v57 = vsel %vm403_vm13, %v414_v55, %v377_v34  ;;  %v418_v6 = vsel %vm403_vm13, %v416_v56, %v378_v33 }
 0x4fa   :  { %v449_v58 = vmul.f32 %v439_v53, %v418_v6  ;;  %v450_v59 = vmul.f32 %v440_v54, %v417_v57  ;;  %v446_v60 = vmul.f32 %v439_v53, %v417_v57  ;;  %v447_v61 = vmul.f32 %v440_v54, %v418_v6 }
 0x4fc   :  { %v451_v62 = vadd.f32 %v450_v59, %v449_v58  ;;  %v448_v63 = vsub.f32 %v446_v60, %v447_v61  ;;  %v556_v59 = vld [vmem:[#allocation0 + $0xe] ss:$0 sm:$0xff]  ;;  %v557_v60 = vld [vmem:[#allocation1 + $0xe] ss:$0 sm:$0xff] }
 0x4fd   :  { %v559_v61 = vsel %vm143_vm0, %v556_v59, 0.0 }
 0x4fe   :  { %455 = vadd.xlane.f32.xlu0 %v451_v62  ;;  %453 = vadd.xlane.f32.xlu2 %v448_v63  ;;  %v560_v62 = vsel %vm143_vm0, %v557_v60, 0.0 }
 0x500   :  { %v431_v0 = vpop.xlane.xlu1 %430  ;;  %v429_v1 = vpop.xlane.xlu0 %428 }
 0x501   :  { %v433_v2 = vsel %vm403_vm13, %v431_v0, %v393_v43  ;;  %v432_v3 = vsel %vm403_vm13, %v429_v1, %v392_v44 }
 0x502   :  { %v461_v4 = vmul.f32 %v439_v53, %v432_v3  ;;  %v462_v7 = vmul.f32 %v440_v54, %v433_v2  ;;  %v464_v8 = vmul.f32 %v439_v53, %v433_v2  ;;  %v465_v9 = vmul.f32 %v440_v54, %v432_v3 }
 0x504   :  { %v463_v10 = vsub.f32 %v461_v4, %v462_v7  ;;  %v466_v11 = vadd.f32 %v465_v9, %v464_v8 }
 0x506   :  { %468 = vadd.xlane.f32.xlu1 %v463_v10  ;;  %470 = vadd.xlane.f32.xlu2 %v466_v11 }
 0x571   :  { %v456_v16 = vpop.xlane.xlu0 %455  ;;  %v454_v17 = vpop.xlane.xlu2 %453 }
 0x572   :  { %v458_v18 = vsel %vm443_vm14, %v456_v16, %v418_v6  ;;  %v457_v19 = vsel %vm443_vm14, %v454_v17, %v417_v57 }
 0x573   :  { %v489_v20 = vmul.f32 %v479_v14, %v458_v18  ;;  %v490_v21 = vmul.f32 %v480_v15, %v457_v19  ;;  %v486_v22 = vmul.f32 %v479_v14, %v457_v19  ;;  %v487_v23 = vmul.f32 %v480_v15, %v458_v18 }
 0x575   :  { %v491_v24 = vadd.f32 %v490_v21, %v489_v20  ;;  %v488_v25 = vsub.f32 %v486_v22, %v487_v23  ;;  %v596_v21 = vld [vmem:[#allocation0 + $0xf] ss:$0 sm:$0xff]  ;;  %v597_v22 = vld [vmem:[#allocation1 + $0xf] ss:$0 sm:$0xff] }
 0x576   :  { %v599_v23 = vsel %vm143_vm0, %v596_v21, 0.0 }
 0x577   :  { %495 = vadd.xlane.f32.xlu1 %v491_v24  ;;  %493 = vadd.xlane.f32.xlu0 %v488_v25  ;;  %v600_v24 = vsel %vm143_vm0, %v597_v22, 0.0  ;;  %vm603_vm0 = vcmp.eq.s32.totalorder %v1270_v5, 15 }
 0x579   :  { %v469_v26 = vpop.xlane.xlu1 %468  ;;  %v471_v27 = vpop.xlane.xlu2 %470 }
 0x57a   :  { %v472_v28 = vsel %vm443_vm14, %v469_v26, %v432_v3  ;;  %v473_v29 = vsel %vm443_vm14, %v471_v27, %v433_v2 }
 0x57b   :  { %v504_v30 = vmul.f32 %v479_v14, %v473_v29  ;;  %v505_v31 = vmul.f32 %v480_v15, %v472_v28  ;;  %v501_v32 = vmul.f32 %v479_v14, %v472_v28  ;;  %v502_v33 = vmul.f32 %v480_v15, %v473_v29 }
 0x57d   :  { %v506_v34 = vadd.f32 %v505_v31, %v504_v30  ;;  %v503_v35 = vsub.f32 %v501_v32, %v502_v33 }
 0x57f   :  { %510 = vadd.xlane.f32.xlu0 %v506_v34  ;;  %508 = vadd.xlane.f32.xlu2 %v503_v35 }
 0x5ea   :  { %v496_v40 = vpop.xlane.xlu1 %495  ;;  %v494_v41 = vpop.xlane.xlu0 %493 }
 0x5eb   :  { %v498_v42 = vsel %vm483_vm15, %v496_v40, %v458_v18  ;;  %v497_v43 = vsel %vm483_vm15, %v494_v41, %v457_v19 }
 0x5ec   :  { %v526_v44 = vmul.f32 %v519_v38, %v497_v43  ;;  %v527_v45 = vmul.f32 %v520_v39, %v498_v42  ;;  %v529_v46 = vmul.f32 %v519_v38, %v498_v42  ;;  %v530_v47 = vmul.f32 %v520_v39, %v497_v43 }
 0x5ee   :  { %v528_v48 = vsub.f32 %v526_v44, %v527_v45  ;;  %v531_v49 = vadd.f32 %v530_v47, %v529_v46 }
 0x5f0   :  { %533 = vadd.xlane.f32.xlu1 %v528_v48  ;;  %535 = vadd.xlane.f32.xlu2 %v531_v49 }
 0x5f2   :  { %v511_v50 = vpop.xlane.xlu0 %510  ;;  %v509_v51 = vpop.xlane.xlu2 %508 }
 0x5f3   :  { %v513_v52 = vsel %vm483_vm15, %v511_v50, %v473_v29  ;;  %v512_v53 = vsel %vm483_vm15, %v509_v51, %v472_v28 }
 0x5f4   :  { %v544_v54 = vmul.f32 %v519_v38, %v513_v52  ;;  %v545_v55 = vmul.f32 %v520_v39, %v512_v53  ;;  %v541_v56 = vmul.f32 %v519_v38, %v512_v53  ;;  %v542_v57 = vmul.f32 %v520_v39, %v513_v52 }
 0x5f6   :  { %v546_v6 = vadd.f32 %v545_v55, %v544_v54  ;;  %v543_v58 = vsub.f32 %v541_v56, %v542_v57 }
 0x5f8   :  { %550 = vadd.xlane.f32.xlu1 %v546_v6  ;;  %548 = vadd.xlane.f32.xlu0 %v543_v58 }
 0x663   :  { %v534_v63 = vpop.xlane.xlu1 %533  ;;  %v536_v0 = vpop.xlane.xlu2 %535 }
 0x664   :  { %v537_v1 = vsel %vm523_vm1, %v534_v63, %v497_v43  ;;  %v538_v2 = vsel %vm523_vm1, %v536_v0, %v498_v42 }
 0x665   :  { %v569_v3 = vmul.f32 %v559_v61, %v538_v2  ;;  %v570_v4 = vmul.f32 %v560_v62, %v537_v1  ;;  %v566_v7 = vmul.f32 %v559_v61, %v537_v1  ;;  %v567_v8 = vmul.f32 %v560_v62, %v538_v2 }
 0x667   :  { %v571_v9 = vadd.f32 %v570_v4, %v569_v3  ;;  %v568_v10 = vsub.f32 %v566_v7, %v567_v8 }
 0x669   :  { %575 = vadd.xlane.f32.xlu0 %v571_v9  ;;  %573 = vadd.xlane.f32.xlu2 %v568_v10 }
 0x66b   :  { %v551_v11 = vpop.xlane.xlu1 %550  ;;  %v549_v12 = vpop.xlane.xlu0 %548 }
 0x66c   :  { %v553_v13 = vsel %vm523_vm1, %v551_v11, %v513_v52  ;;  %v552_v14 = vsel %vm523_vm1, %v549_v12, %v512_v53 }
 0x66d   :  { %v581_v15 = vmul.f32 %v559_v61, %v552_v14  ;;  %v582_v16 = vmul.f32 %v560_v62, %v553_v13  ;;  %v584_v17 = vmul.f32 %v559_v61, %v553_v13  ;;  %v585_v18 = vmul.f32 %v560_v62, %v552_v14 }
 0x66f   :  { %v583_v19 = vsub.f32 %v581_v15, %v582_v16  ;;  %v586_v20 = vadd.f32 %v585_v18, %v584_v17 }
 0x671   :  { %588 = vadd.xlane.f32.xlu1 %v583_v19  ;;  %590 = vadd.xlane.f32.xlu2 %v586_v20 }
 0x6dc   :  { %v576_v25 = vpop.xlane.xlu0 %575  ;;  %v574_v26 = vpop.xlane.xlu2 %573 }
 0x6dd   :  { %v578_v27 = vsel %vm563_vm2, %v576_v25, %v538_v2  ;;  %v577_v28 = vsel %vm563_vm2, %v574_v26, %v537_v1 }
 0x6de   :  { %v609_v29 = vmul.f32 %v599_v23, %v578_v27  ;;  %v610_v30 = vmul.f32 %v600_v24, %v577_v28  ;;  %v606_v31 = vmul.f32 %v599_v23, %v577_v28  ;;  %v607_v32 = vmul.f32 %v600_v24, %v578_v27 }
 0x6e0   :  { %v611_v33 = vadd.f32 %v610_v30, %v609_v29  ;;  %v608_v34 = vsub.f32 %v606_v31, %v607_v32 }
 0x6e2   :  { %615 = vadd.xlane.f32.xlu1 %v611_v33  ;;  %613 = vadd.xlane.f32.xlu0 %v608_v34 }
 0x6e4   :  { %v589_v35 = vpop.xlane.xlu1 %588  ;;  %v591_v36 = vpop.xlane.xlu2 %590 }
 0x6e5   :  { %v592_v37 = vsel %vm563_vm2, %v589_v35, %v552_v14  ;;  %v593_v38 = vsel %vm563_vm2, %v591_v36, %v553_v13 }
 0x6e6   :  { %v624_v39 = vmul.f32 %v599_v23, %v593_v38  ;;  %v625_v40 = vmul.f32 %v600_v24, %v592_v37  ;;  %v621_v41 = vmul.f32 %v599_v23, %v592_v37  ;;  %v622_v42 = vmul.f32 %v600_v24, %v593_v38 }
 0x6e8   :  { %v626_v43 = vadd.f32 %v625_v40, %v624_v39  ;;  %v623_v44 = vsub.f32 %v621_v41, %v622_v42 }
 0x6ea   :  { %630 = vadd.xlane.f32.xlu0 %v626_v43  ;;  %628 = vadd.xlane.f32.xlu2 %v623_v44 }
 0x755   :  { %v616_v45 = vpop.xlane.xlu1 %615  ;;  %v614_v46 = vpop.xlane.xlu0 %613 }
 0x756   :  { %v618_v47 = vsel %vm603_vm0, %v616_v45, %v578_v27  ;;  %v617_v48 = vsel %vm603_vm0, %v614_v46, %v577_v28  }
 0x757   :  { %635 = vst [vmem:[#allocation3] sm:$0xff] %v618_v47 }
 0x758   :  { %634 = vst [vmem:[#allocation2] sm:$0xff] %v617_v48 }
 0x75d   :  { %v631_v49 = vpop.xlane.xlu0 %630  ;;  %v629_v50 = vpop.xlane.xlu2 %628 }
 0x75e   :  { %v633_v51 = vsel %vm603_vm0, %v631_v49, %v593_v38  ;;  %v632_v52 = vsel %vm603_vm0, %v629_v50, %v592_v37 }
 0x75f   :  { %639 = vst [vmem:[#allocation3 + $0x8] sm:$0xff] %v633_v51 }
 0x760   :  { %638 = vst [vmem:[#allocation2 + $0x8] sm:$0xff] %v632_v52 }
 0x761 LB:  { %s1221_s4 = sphi %s1219_s4, %s685_s4   ;;  %s1217_s30 = sphi %s1215_s30, %s686_s30  }
 0x767   : > { %v683_v5 = vld [vmem:[%s1221_s4] sm:$0xff]  ;;  %s685_s4 = scalar_lea.vmem %s1221_s4, 8  }
 0x768   : > { %684 = vst [vmem:[%s1217_s30] sm:$0xff] %v683_v5  ;;  %s686_s30 = scalar_lea.vmem %s1217_s30, 8   ;;  %p680_p4 = scmp.gt.s32.totalorder %s685_s4, [#allocation2 + $0x8] }
 0x769   :  { %s1223_s7 = smov (%p680_p4), %s1389_s3   ;;  %s1227_s8 = smov (%p680_p4), [#allocation3]  }
 0x76a   :  { %682 = sbr.rel (!%p680_p4) target bundleno = 1889 (0x761), region = 214 }
 0x76f LB: > { %v739_v53 = vld [vmem:[%s1229_s8] sm:$0xff]  ;;  %s741_s8 = scalar_lea.vmem %s1229_s8, 8   ;;  %s1229_s8 = sphi %s1227_s8, %s741_s8   ;;  %s1225_s7 = sphi %s1223_s7, %s742_s7  }
 0x770   : > { %740 = vst [vmem:[%s1225_s7] sm:$0xff] %v739_v53  ;;  %s742_s7 = scalar_lea.vmem %s1225_s7, 8   ;;  %p736_p5 = scmp.gt.s32.totalorder %s741_s8, [#allocation3 + $0x8] }
 0x772   :  { %738 = sbr.rel (!%p736_p5) target bundleno = 1903 (0x76f), region = 236 }

// kernel: custom-call.48
= control target key start
LH: loop header
LB: loop body
LE: loop exit
PB: predicated region body
PF: predicated region fallthrough
CT: control target
= control target key end

     0   :  { %v1730_v0 = vmov 0.0   ;;  %vm85_vm3 = vcmask 7168   ;;  %vm192_vm7 = vcmask 15368   ;;  %vm256_vm8 = vcmask 1047553   ;;  %s2063_s0 = inlined_call_operand.vmem [shape: f32[16,16], index: 0, kind: input, shape index: {}]   ;;  %s2064_s1 = inlined_call_operand.vmem [shape: f32[16,16], index: 1, kind: input, shape index: {}]   ;;  %s2065_s2 = inlined_call_operand.vmem [shape: f32[16,16], index: 2, kind: output, shape index: {0}]   ;;  %s2066_s3 = inlined_call_operand.vmem [shape: f32[16,16], index: 3, kind: output, shape index: {1}]  }
   0x1   :  { %79 = vst [vmem:[#allocation1] sm:$0xff] %v1730_v0  ;;  %v1754_v11 = vld [vmem:[%s2063_s0] sm:$0xff]  ;;  %v1760_v12 = vld [vmem:[%s2063_s0 + $0x8] sm:$0xff]  ;;  %vm257_vm9 = vmand %vm192_vm7, %vm256_vm8  ;;  %vm305_vm13 = vcmask 23568   ;;  %vm369_vm14 = vcmask 1047554  }
   0x2   :  { %82 = vst [vmem:[#allocation3] sm:$0xff] %v1730_v0  ;;  %v1766_v20 = vld [vmem:[%s2064_s1] sm:$0xff]  ;;  %vm370_vm15 = vmand %vm305_vm13, %vm369_vm14 }
   0x3   :  { %36 = vst [vmem:[#allocation0] sm:$0xff] %v1754_v11 }
   0x4   :  { %38 = vst [vmem:[#allocation0 + $0x8] sm:$0xff] %v1760_v12 }
   0x8   :  { %v86_v1 = vld [vmem:[#allocation1] ss:$0 sm:$0xff] }
   0x9   :  { %v87_v2 = vld [vmem:[#allocation3] ss:$0 sm:$0xff]  ;;  %v93_v4 = vmul.f32 %v86_v1, %v86_v1  ;;  %v123_v6 = vmul.f32 0.0, %v86_v1 }
   0xa   :  { %v90_v3 = vxor.u32 2147483648, %v87_v2  ;;  %v88_v13 = vld [vmem:[#allocation0] ss:$0 sm:$0xff]  ;;  %v199_v48 = vld [vmem:[#allocation0 + $0x1] ss:$0 sm:$0xff] }
   0xc   :  { %v94_v5 = vmul.f32 %v90_v3, %v87_v2  ;;  %v124_v7 = vmul.f32 0.0, %v90_v3  ;;  %v1798_v2 = vld [vmem:[%s2064_s1 + $0x8] sm:$0xff] }
   0xe   :  { %v95_v8 = vsub.f32 %v93_v4, %v94_v5  ;;  %v128_v9 = vadd.f32 %v124_v7, %v123_v6  ;;  %v125_v10 = vsub.f32 %v123_v6, %v124_v7 }
  0x10   :  { %100 = vadd.xlane.f32.xlu0 %v95_v8  ;;  %132 = vadd.xlane.f32.xlu1 %v128_v9 }
  0x18   :  { %130 = vadd.xlane.f32.xlu0 %v125_v10 }
  0x20   :  { %169 = vadd.xlane.f32.xlu0 %v125_v10 }
  0x83   :  { %v101_v14 = vpop.xlane.xlu0 %100  ;;  %v133_v19 = vpop.xlane.xlu1 %132 }
  0x84   :  { %v104_v15 = vsub.f32 %v88_v13, %v101_v14  ;;  %v135_v24 = vsub.f32 %v1766_v20, %v133_v19 }
  0x86   :  { %1696 = vrsqrt.f32 %v104_v15  ;;  %vm112_vm1 = vweird.f32 %v104_v15  ;;  %v139_v28 = vmul.f32 0.0, %v135_v24 }
  0x8b   :  { %v131_v22 = vpop.xlane.xlu0 %130 }
  0x8c   :  { %v1697_v16 = vpop.eup %1696  ;;  %v134_v23 = vsub.f32 %v1754_v11, %v131_v22 }
  0x8d   :  { %v107_v17 = vmul.f32 %v1697_v16, %v104_v15  ;;  %vm113_vm0 = vweird.f32 %v1697_v16 }
  0x8e   :  { %vm114_vm2 = vmor %vm112_vm1, %vm113_vm0  ;;  %v141_v27 = vmul.f32 0.0, %v134_v23 }
  0x8f   :  { %v108_v18 = vmul.f32 %v1697_v16, %v107_v17 }
  0x91   :  { %v109_v21 = vmul.f32 0.5, %v108_v18 }
  0x93   :  { %v110_v25 = vsub.f32 1.5, %v109_v21  ;;  %v170_v6 = vpop.xlane.xlu0 %169 }
  0x94   :  { %v173_v14 = vsub.f32 %v1760_v12, %v170_v6 }
  0x95   :  { %v111_v26 = vmul.f32 %v1697_v16, %v110_v25 }
  0x97   :  { %v1770_v29 = vsel %vm114_vm2, %v1697_v16, %v111_v26  ;;  %v180_v16 = vmul.f32 0.0, %v173_v14  ;;  %vm418_vm2 = vcmask 31768  }
  0x98   :  { %v138_v30 = vmul.f32 %v134_v23, %v1770_v29  ;;  %v142_v31 = vmul.f32 %v135_v24, %v1770_v29  ;;  %v177_v18 = vmul.f32 %v173_v14, %v1770_v29 }
  0x9a   :  { %v140_v32 = vsub.f32 %v138_v30, %v139_v28  ;;  %v143_v33 = vadd.f32 %v142_v31, %v141_v27 }
  0x9c   :  { %v145_v34 = vsel %vm85_vm3, %v140_v32, 0.0  ;;  %v146_v35 = vsel %vm85_vm3, %v143_v33, 0.0 }
  0x9d   :  { %149 = vst [vmem:[#allocation1] sm:$0xff] %v145_v34 }
  0x9e   :  { %150 = vst [vmem:[#allocation3] sm:$0xff] %v146_v35 }
  0xa4   :  { %v1776_v36 = vld [vmem:[#allocation1 + $0x1] ss:$0 sm:$0xff] }
  0xa5   :  { %v196_v37 = vld [vmem:[#allocation3 + $0x1] ss:$0 sm:$0xff]  ;;  %v234_v39 = vmul.f32 %v1776_v36, %v145_v34  ;;  %v204_v41 = vmul.f32 %v1776_v36, %v1776_v36  ;;  %v238_v46 = vmul.f32 %v1776_v36, %v146_v35 }
  0xa6   :  { %v1778_v38 = vxor.u32 2147483648, %v196_v37 }
  0xa8   :  { %v235_v40 = vmul.f32 %v1778_v38, %v146_v35  ;;  %v205_v42 = vmul.f32 %v1778_v38, %v196_v37  ;;  %v237_v45 = vmul.f32 %v1778_v38, %v145_v34 }
  0xaa   :  { %v236_v43 = vsub.f32 %v234_v39, %v235_v40  ;;  %v206_v44 = vsub.f32 %v204_v41, %v205_v42  ;;  %v239_v47 = vadd.f32 %v238_v46, %v237_v45 }
  0xac   :  { %241 = vadd.xlane.f32.xlu2 %v236_v43  ;;  %211 = vadd.xlane.f32.xlu1 %v206_v44  ;;  %v312_v44 = vld [vmem:[#allocation0 + $0x2] ss:$0 sm:$0xff] }
  0xb4   :  { %243 = vadd.xlane.f32.xlu2 %v239_v47  ;;  %171 = vadd.xlane.f32.xlu1 %v128_v9 }
 0x11f   :  { %v212_v49 = vpop.xlane.xlu1 %211  ;;  %v242_v51 = vpop.xlane.xlu2 %241 }
 0x120   :  { %v215_v50 = vsub.f32 %v199_v48, %v212_v49  ;;  %v245_v58 = vsub.f32 %v1754_v11, %v242_v51 }
 0x122   :  { %1698 = vrsqrt.f32 %v215_v50  ;;  %vm223_vm5 = vweird.f32 %v215_v50  ;;  %v252_v62 = vmul.f32 0.0, %v245_v58 }
 0x127   :  { %v244_v56 = vpop.xlane.xlu2 %243  ;;  %v172_v3 = vpop.xlane.xlu1 %171 }
 0x128   :  { %v1699_v52 = vpop.eup %1698  ;;  %v246_v59 = vsub.f32 %v1766_v20, %v244_v56  ;;  %v174_v9 = vsub.f32 %v1798_v2, %v172_v3 }
 0x129   :  { %v218_v53 = vmul.f32 %v1699_v52, %v215_v50  ;;  %vm224_vm4 = vweird.f32 %v1699_v52 }
 0x12a   :  { %vm225_vm6 = vmor %vm223_vm5, %vm224_vm4  ;;  %v250_v0 = vmul.f32 0.0, %v246_v59  ;;  %v178_v15 = vmul.f32 0.0, %v174_v9  ;;  %v181_v17 = vmul.f32 %v174_v9, %v1770_v29 }
 0x12b   :  { %v219_v54 = vmul.f32 %v1699_v52, %v218_v53 }
 0x12c   :  { %v179_v19 = vsub.f32 %v177_v18, %v178_v15  ;;  %v182_v21 = vadd.f32 %v181_v17, %v180_v16 }
 0x12d   :  { %v220_v55 = vmul.f32 0.5, %v219_v54 }
 0x12e   :  { %v1813_v24 = vsel %vm85_vm3, %v179_v19, 0.0  ;;  %v1818_v26 = vsel %vm85_vm3, %v182_v21, 0.0  ;;  %vm482_vm3 = vcmask 1047555  }
 0x12f   :  { %v221_v57 = vsub.f32 1.5, %v220_v55  ;;  %v278_v37 = vmul.f32 %v1778_v38, %v1813_v24  ;;  %v279_v39 = vmul.f32 %v1776_v36, %v1818_v26  ;;  %v275_v40 = vmul.f32 %v1776_v36, %v1813_v24  ;;  %vm483_vm5 = vmand %vm418_vm2, %vm482_vm3 }
 0x130   :  { %v276_v41 = vmul.f32 %v1778_v38, %v1818_v26 }
 0x131   :  { %v222_v60 = vmul.f32 %v1699_v52, %v221_v57  ;;  %v280_v42 = vadd.f32 %v279_v39, %v278_v37 }
 0x132   :  { %v277_v43 = vsub.f32 %v275_v40, %v276_v41 }
 0x133   :  { %v1789_v61 = vsel %vm225_vm6, %v1699_v52, %v222_v60 }
 0x134   :  { %v249_v63 = vmul.f32 %v245_v58, %v1789_v61  ;;  %v253_v1 = vmul.f32 %v246_v59, %v1789_v61 }
 0x136   :  { %v251_v4 = vsub.f32 %v249_v63, %v250_v0  ;;  %v254_v5 = vadd.f32 %v253_v1, %v252_v62 }
 0x138   :  { %v258_v7 = vsel %vm257_vm9, %v251_v4, 0.0  ;;  %v259_v8 = vsel %vm257_vm9, %v254_v5, 0.0 }
 0x139   :  { %v1801_v10 = vadd.f32 %v258_v7, %v145_v34  ;;  %v1803_v13 = vadd.f32 %v259_v8, %v146_v35 }
 0x13b   :  { %262 = vst [vmem:[#allocation1] sm:$0xff] %v1801_v10 }
 0x13c   :  { %263 = vst [vmem:[#allocation3] sm:$0xff] %v1803_v13 }
 0x142   :  { %v1810_v22 = vld [vmem:[#allocation1 + $0x2] ss:$0 sm:$0xff] }
 0x143   :  { %v309_v23 = vld [vmem:[#allocation3 + $0x2] ss:$0 sm:$0xff]  ;;  %v351_v27 = vmul.f32 %v1810_v22, %v1803_v13  ;;  %v347_v28 = vmul.f32 %v1810_v22, %v1801_v10  ;;  %v317_v31 = vmul.f32 %v1810_v22, %v1810_v22 }
 0x144   :  { %v1815_v25 = vxor.u32 2147483648, %v309_v23 }
 0x146   :  { %v350_v29 = vmul.f32 %v1815_v25, %v1801_v10  ;;  %v348_v30 = vmul.f32 %v1815_v25, %v1803_v13  ;;  %v318_v32 = vmul.f32 %v1815_v25, %v309_v23 }
 0x148   :  { %v352_v33 = vadd.f32 %v351_v27, %v350_v29  ;;  %v349_v34 = vsub.f32 %v347_v28, %v348_v30  ;;  %v319_v35 = vsub.f32 %v317_v31, %v318_v32 }
 0x14a   :  { %356 = vadd.xlane.f32.xlu1 %v352_v33  ;;  %354 = vadd.xlane.f32.xlu0 %v349_v34 }
 0x14b   :  { %324 = vadd.xlane.f32.xlu2 %v319_v35 }
 0x152   :  { %284 = vadd.xlane.f32.xlu0 %v280_v42 }
 0x153   :  { %282 = vadd.xlane.f32.xlu2 %v277_v43 }
 0x1bd   :  { %v355_v49 = vpop.xlane.xlu0 %354  ;;  %v357_v52 = vpop.xlane.xlu1 %356 }
 0x1be   :  { %v325_v45 = vpop.xlane.xlu2 %324  ;;  %v358_v36 = vsub.f32 %v1754_v11, %v355_v49  ;;  %v359_v38 = vsub.f32 %v1766_v20, %v357_v52 }
 0x1bf   :  { %v328_v46 = vsub.f32 %v312_v44, %v325_v45 }
 0x1c0   :  { %v365_v56 = vmul.f32 0.0, %v358_v36  ;;  %v363_v58 = vmul.f32 0.0, %v359_v38 }
 0x1c1   :  { %1700 = vrsqrt.f32 %v328_v46  ;;  %vm336_vm11 = vweird.f32 %v328_v46 }
 0x1c5   :  { %v285_v60 = vpop.xlane.xlu0 %284 }
 0x1c6   :  { %v283_v62 = vpop.xlane.xlu2 %282  ;;  %v287_v4 = vsub.f32 %v1798_v2, %v285_v60 }
 0x1c7   :  { %v1701_v47 = vpop.eup %1700  ;;  %v286_v5 = vsub.f32 %v1760_v12, %v283_v62 }
 0x1c8   :  { %v331_v48 = vmul.f32 %v1701_v47, %v328_v46  ;;  %vm337_vm10 = vweird.f32 %v1701_v47  ;;  %v291_v8 = vmul.f32 0.0, %v287_v4  ;;  %v294_v14 = vmul.f32 %v287_v4, %v1789_v61 }
 0x1c9   :  { %vm338_vm12 = vmor %vm336_vm11, %vm337_vm10  ;;  %v290_v9 = vmul.f32 %v286_v5, %v1789_v61  ;;  %v293_v15 = vmul.f32 0.0, %v286_v5  ;;  %vm531_vm10 = vcmask 39968   ;;  %vm595_vm11 = vcmask 1047556  }
 0x1ca   :  { %v332_v50 = vmul.f32 %v1701_v47, %v331_v48 }
 0x1cb   :  { %v292_v16 = vsub.f32 %v290_v9, %v291_v8  ;;  %v295_v17 = vadd.f32 %v294_v14, %v293_v15 }
 0x1cc   :  { %v333_v51 = vmul.f32 0.5, %v332_v50 }
 0x1ce   :  { %v334_v53 = vsub.f32 1.5, %v333_v51 }
 0x1d0   :  { %v335_v54 = vmul.f32 %v1701_v47, %v334_v53 }
 0x1d2   :  { %v1841_v55 = vsel %vm338_vm12, %v1701_v47, %v335_v54  ;;  %vm596_vm12 = vmand %vm531_vm10, %vm595_vm11 }
 0x1d3   :  { %v362_v57 = vmul.f32 %v358_v36, %v1841_v55  ;;  %v366_v59 = vmul.f32 %v359_v38, %v1841_v55 }
 0x1d5   :  { %v364_v63 = vsub.f32 %v362_v57, %v363_v58  ;;  %v367_v0 = vadd.f32 %v366_v59, %v365_v56 }
 0x1d7   :  { %v371_v1 = vsel %vm370_vm15, %v364_v63, 0.0  ;;  %v372_v3 = vsel %vm370_vm15, %v367_v0, 0.0 }
 0x1d8   :  { %v1850_v6 = vadd.f32 %v371_v1, %v1801_v10  ;;  %v1853_v7 = vadd.f32 %v372_v3, %v1803_v13  ;;  %v297_v10 = vsel %vm192_vm7, %v292_v16, 0.0  ;;  %v298_v13 = vsel %vm192_vm7, %v295_v17, 0.0 }
 0x1d9   :  { %v299_v31 = vadd.f32 %v297_v10, %v1813_v24  ;;  %v300_v32 = vadd.f32 %v298_v13, %v1818_v26  ;;  %v425_v24 = vld [vmem:[#allocation0 + $0x3] ss:$0 sm:$0xff] }
 0x1da   :  { %375 = vst [vmem:[#allocation1] sm:$0xff] %v1850_v6 }
 0x1db   :  { %376 = vst [vmem:[#allocation3] sm:$0xff] %v1853_v7  ;;  %v391_v37 = vmul.f32 %v1815_v25, %v299_v31  ;;  %v392_v39 = vmul.f32 %v1810_v22, %v300_v32  ;;  %v388_v40 = vmul.f32 %v1810_v22, %v299_v31  ;;  %v389_v41 = vmul.f32 %v1815_v25, %v300_v32 }
 0x1dd   :  { %v393_v42 = vadd.f32 %v392_v39, %v391_v37  ;;  %v390_v43 = vsub.f32 %v388_v40, %v389_v41 }
 0x1e1   :  { %v421_v18 = vld [vmem:[#allocation1 + $0x3] ss:$0 sm:$0xff] }
 0x1e2   :  { %v422_v19 = vld [vmem:[#allocation3 + $0x3] ss:$0 sm:$0xff]  ;;  %v464_v23 = vmul.f32 %v421_v18, %v1853_v7  ;;  %v460_v27 = vmul.f32 %v421_v18, %v1850_v6  ;;  %v430_v30 = vmul.f32 %v421_v18, %v421_v18 }
 0x1e3   :  { %v427_v21 = vxor.u32 2147483648, %v422_v19 }
 0x1e5   :  { %v463_v28 = vmul.f32 %v427_v21, %v1850_v6  ;;  %v461_v29 = vmul.f32 %v427_v21, %v1853_v7  ;;  %v431_v61 = vmul.f32 %v427_v21, %v422_v19 }
 0x1e7   :  { %v465_v33 = vadd.f32 %v464_v23, %v463_v28  ;;  %v462_v34 = vsub.f32 %v460_v27, %v461_v29  ;;  %v432_v35 = vsub.f32 %v430_v30, %v431_v61 }
 0x1e9   :  { %469 = vadd.xlane.f32.xlu0 %v465_v33  ;;  %467 = vadd.xlane.f32.xlu2 %v462_v34 }
 0x1ea   :  { %437 = vadd.xlane.f32.xlu1 %v432_v35 }
 0x1f1   :  { %397 = vadd.xlane.f32.xlu2 %v393_v42 }
 0x1f2   :  { %395 = vadd.xlane.f32.xlu1 %v390_v43 }
 0x25c   :  { %v468_v26 = vpop.xlane.xlu2 %467  ;;  %v470_v36 = vpop.xlane.xlu0 %469 }
 0x25d   :  { %v438_v44 = vpop.xlane.xlu1 %437  ;;  %v472_v58 = vsub.f32 %v1766_v20, %v470_v36  ;;  %v471_v1 = vsub.f32 %v1754_v11, %v468_v26 }
 0x25e   :  { %v441_v45 = vsub.f32 %v425_v24, %v438_v44 }
 0x25f   :  { %v476_v9 = vmul.f32 0.0, %v472_v58  ;;  %v478_v16 = vmul.f32 0.0, %v471_v1 }
 0x260   :  { %1702 = vrsqrt.f32 %v441_v45  ;;  %vm449_vm1 = vweird.f32 %v441_v45 }
 0x264   :  { %v398_v46 = vpop.xlane.xlu2 %397 }
 0x265   :  { %v400_v47 = vsub.f32 %v1798_v2, %v398_v46  ;;  %v396_v48 = vpop.xlane.xlu1 %395 }
 0x266   :  { %v1703_v49 = vpop.eup %1702  ;;  %v399_v50 = vsub.f32 %v1760_v12, %v396_v48 }
 0x267   :  { %v444_v51 = vmul.f32 %v1703_v49, %v441_v45  ;;  %v404_v22 = vmul.f32 0.0, %v400_v47  ;;  %v407_v25 = vmul.f32 %v400_v47, %v1841_v55  ;;  %vm450_vm0 = vweird.f32 %v1703_v49 }
 0x268   :  { %v403_v52 = vmul.f32 %v399_v50, %v1841_v55  ;;  %v406_v53 = vmul.f32 0.0, %v399_v50  ;;  %vm451_vm4 = vmor %vm449_vm1, %vm450_vm0  ;;  %vm644_vm0 = vcmask 48168   ;;  %vm708_vm1 = vcmask 1047557  }
 0x269   :  { %v445_v38 = vmul.f32 %v1703_v49, %v444_v51 }
 0x26a   :  { %v405_v54 = vsub.f32 %v403_v52, %v404_v22  ;;  %v408_v56 = vadd.f32 %v407_v25, %v406_v53 }
 0x26b   :  { %v446_v57 = vmul.f32 0.5, %v445_v38 }
 0x26c   :  { %v410_v59 = vsel %vm305_vm13, %v405_v54, 0.0  ;;  %v411_v60 = vsel %vm305_vm13, %v408_v56, 0.0  ;;  %v538_v54 = vld [vmem:[#allocation0 + $0x4] ss:$0 sm:$0xff] }
 0x26d   :  { %v447_v62 = vsub.f32 1.5, %v446_v57  ;;  %v412_v63 = vadd.f32 %v410_v59, %v299_v31  ;;  %v413_v0 = vadd.f32 %v411_v60, %v300_v32 }
 0x26f   :  { %v448_v55 = vmul.f32 %v1703_v49, %v447_v62  ;;  %v504_v3 = vmul.f32 %v427_v21, %v412_v63  ;;  %v505_v4 = vmul.f32 %v421_v18, %v413_v0  ;;  %v501_v5 = vmul.f32 %v421_v18, %v412_v63 }
 0x270   :  { %v502_v8 = vmul.f32 %v427_v21, %v413_v0 }
 0x271   :  { %v452_v14 = vsel %vm451_vm4, %v1703_v49, %v448_v55  ;;  %v506_v15 = vadd.f32 %v505_v4, %v504_v3  ;;  %vm709_vm4 = vmand %vm644_vm0, %vm708_vm1 }
 0x272   :  { %v475_v17 = vmul.f32 %v471_v1, %v452_v14  ;;  %v479_v19 = vmul.f32 %v472_v58, %v452_v14  ;;  %v503_v10 = vsub.f32 %v501_v5, %v502_v8 }
 0x273   :  { %510 = vadd.xlane.f32.xlu2 %v506_v15 }
 0x274   :  { %v477_v13 = vsub.f32 %v475_v17, %v476_v9  ;;  %v480_v23 = vadd.f32 %v479_v19, %v478_v16  ;;  %508 = vadd.xlane.f32.xlu1 %v503_v10 }
 0x276   :  { %v484_v27 = vsel %vm483_vm5, %v477_v13, 0.0  ;;  %v485_v18 = vsel %vm483_vm5, %v480_v23, 0.0 }
 0x277   :  { %v1882_v28 = vadd.f32 %v484_v27, %v1850_v6  ;;  %v1885_v21 = vadd.f32 %v485_v18, %v1853_v7 }
 0x279   :  { %488 = vst [vmem:[#allocation1] sm:$0xff] %v1882_v28 }
 0x27a   :  { %489 = vst [vmem:[#allocation3] sm:$0xff] %v1885_v21 }
 0x280   :  { %v534_v29 = vld [vmem:[#allocation1 + $0x4] ss:$0 sm:$0xff] }
 0x281   :  { %v535_v30 = vld [vmem:[#allocation3 + $0x4] ss:$0 sm:$0xff]  ;;  %v543_v31 = vmul.f32 %v534_v29, %v534_v29  ;;  %v577_v34 = vmul.f32 %v534_v29, %v1885_v21  ;;  %v573_v7 = vmul.f32 %v534_v29, %v1882_v28 }
 0x282   :  { %v540_v61 = vxor.u32 2147483648, %v535_v30 }
 0x284   :  { %v544_v32 = vmul.f32 %v540_v61, %v535_v30  ;;  %v576_v33 = vmul.f32 %v540_v61, %v1882_v28  ;;  %v574_v6 = vmul.f32 %v540_v61, %v1885_v21 }
 0x286   :  { %v545_v35 = vsub.f32 %v543_v31, %v544_v32  ;;  %v578_v37 = vadd.f32 %v577_v34, %v576_v33  ;;  %v575_v39 = vsub.f32 %v573_v7, %v574_v6 }
 0x288   :  { %550 = vadd.xlane.f32.xlu0 %v545_v35  ;;  %582 = vadd.xlane.f32.xlu1 %v578_v37 }
 0x290   :  { %580 = vadd.xlane.f32.xlu0 %v575_v39 }
 0x2e6   :  { %v511_v40 = vpop.xlane.xlu2 %510 }
 0x2e7   :  { %v513_v41 = vsub.f32 %v1798_v2, %v511_v40  ;;  %v509_v42 = vpop.xlane.xlu1 %508 }
 0x2e8   :  { %v512_v43 = vsub.f32 %v1760_v12, %v509_v42 }
 0x2e9   :  { %v517_v24 = vmul.f32 0.0, %v513_v41  ;;  %v520_v26 = vmul.f32 %v513_v41, %v452_v14 }
 0x2ea   :  { %v516_v44 = vmul.f32 %v512_v43, %v452_v14  ;;  %v519_v45 = vmul.f32 0.0, %v512_v43 }
 0x2ec   :  { %v518_v46 = vsub.f32 %v516_v44, %v517_v24  ;;  %v521_v47 = vadd.f32 %v520_v26, %v519_v45 }
 0x2ee   :  { %v523_v48 = vsel %vm418_vm2, %v518_v46, 0.0  ;;  %v524_v49 = vsel %vm418_vm2, %v521_v47, 0.0 }
 0x2ef   :  { %v1897_v50 = vadd.f32 %v523_v48, %v412_v63  ;;  %v1899_v51 = vadd.f32 %v524_v49, %v413_v0 }
 0x2f1   :  { %v617_v22 = vmul.f32 %v540_v61, %v1897_v50  ;;  %v618_v25 = vmul.f32 %v534_v29, %v1899_v51  ;;  %v614_v52 = vmul.f32 %v534_v29, %v1897_v50  ;;  %v615_v53 = vmul.f32 %v540_v61, %v1899_v51 }
 0x2f3   :  { %v619_v36 = vadd.f32 %v618_v25, %v617_v22  ;;  %v616_v38 = vsub.f32 %v614_v52, %v615_v53 }
 0x2f5   :  { %623 = vadd.xlane.f32.xlu0 %v619_v36  ;;  %621 = vadd.xlane.f32.xlu2 %v616_v38  ;;  %v651_v36 = vld [vmem:[#allocation0 + $0x5] ss:$0 sm:$0xff] }
 0x2fb   :  { %v551_v56 = vpop.xlane.xlu0 %550  ;;  %v583_v63 = vpop.xlane.xlu1 %582 }
 0x2fc   :  { %v554_v57 = vsub.f32 %v538_v54, %v551_v56  ;;  %v585_v55 = vsub.f32 %v1766_v20, %v583_v63 }
 0x2fe   :  { %1704 = vrsqrt.f32 %v554_v57  ;;  %vm562_vm7 = vweird.f32 %v554_v57  ;;  %v589_v8 = vmul.f32 0.0, %v585_v55 }
 0x303   :  { %v581_v0 = vpop.xlane.xlu0 %580 }
 0x304   :  { %v1705_v58 = vpop.eup %1704  ;;  %v584_v3 = vsub.f32 %v1754_v11, %v581_v0 }
 0x305   :  { %v557_v59 = vmul.f32 %v1705_v58, %v554_v57  ;;  %vm563_vm6 = vweird.f32 %v1705_v58 }
 0x306   :  { %vm564_vm9 = vmor %vm562_vm7, %vm563_vm6  ;;  %v591_v15 = vmul.f32 0.0, %v584_v3 }
 0x307   :  { %v558_v60 = vmul.f32 %v1705_v58, %v557_v59 }
 0x309   :  { %v559_v62 = vmul.f32 0.5, %v558_v60 }
 0x30b   :  { %v560_v1 = vsub.f32 1.5, %v559_v62 }
 0x30d   :  { %v561_v4 = vmul.f32 %v1705_v58, %v560_v1 }
 0x30f   :  { %v565_v5 = vsel %vm564_vm9, %v1705_v58, %v561_v4  ;;  %vm757_vm9 = vcmask 56368  }
 0x310   :  { %v592_v9 = vmul.f32 %v585_v55, %v565_v5  ;;  %v588_v14 = vmul.f32 %v584_v3, %v565_v5 }
 0x312   :  { %v590_v16 = vsub.f32 %v588_v14, %v589_v8  ;;  %v593_v17 = vadd.f32 %v592_v9, %v591_v15 }
 0x314   :  { %v597_v19 = vsel %vm596_vm12, %v590_v16, 0.0  ;;  %v598_v10 = vsel %vm596_vm12, %v593_v17, 0.0 }
 0x315   :  { %v1910_v13 = vadd.f32 %v597_v19, %v1882_v28  ;;  %v1913_v23 = vadd.f32 %v598_v10, %v1885_v21 }
 0x317   :  { %601 = vst [vmem:[#allocation1] sm:$0xff] %v1910_v13 }
 0x318   :  { %602 = vst [vmem:[#allocation3] sm:$0xff] %v1913_v23 }
 0x31e   :  { %v647_v27 = vld [vmem:[#allocation1 + $0x5] ss:$0 sm:$0xff] }
 0x31f   :  { %v648_v18 = vld [vmem:[#allocation3 + $0x5] ss:$0 sm:$0xff]  ;;  %v690_v30 = vmul.f32 %v647_v27, %v1913_v23  ;;  %v686_v61 = vmul.f32 %v647_v27, %v1910_v13  ;;  %v656_v28 = vmul.f32 %v647_v27, %v647_v27 }
 0x320   :  { %v653_v29 = vxor.u32 2147483648, %v648_v18 }
 0x322   :  { %v689_v31 = vmul.f32 %v653_v29, %v1910_v13  ;;  %v687_v32 = vmul.f32 %v653_v29, %v1913_v23  ;;  %v657_v33 = vmul.f32 %v653_v29, %v648_v18 }
 0x324   :  { %v691_v34 = vadd.f32 %v690_v30, %v689_v31  ;;  %v688_v21 = vsub.f32 %v686_v61, %v687_v32  ;;  %v658_v35 = vsub.f32 %v656_v28, %v657_v33 }
 0x326   :  { %695 = vadd.xlane.f32.xlu0 %v691_v34  ;;  %693 = vadd.xlane.f32.xlu2 %v688_v21 }
 0x327   :  { %663 = vadd.xlane.f32.xlu1 %v658_v35 }
 0x368   :  { %v624_v37 = vpop.xlane.xlu0 %623  ;;  %v622_v6 = vpop.xlane.xlu2 %621 }
 0x369   :  { %v626_v7 = vsub.f32 %v1798_v2, %v624_v37  ;;  %v625_v39 = vsub.f32 %v1760_v12, %v622_v6 }
 0x36b   :  { %v630_v40 = vmul.f32 0.0, %v626_v7  ;;  %v633_v41 = vmul.f32 %v626_v7, %v565_v5  ;;  %v629_v42 = vmul.f32 %v625_v39, %v565_v5  ;;  %v632_v43 = vmul.f32 0.0, %v625_v39 }
 0x36d   :  { %v631_v24 = vsub.f32 %v629_v42, %v630_v40  ;;  %v634_v26 = vadd.f32 %v633_v41, %v632_v43 }
 0x36f   :  { %v636_v44 = vsel %vm531_vm10, %v631_v24, 0.0  ;;  %v637_v45 = vsel %vm531_vm10, %v634_v26, 0.0  ;;  %vm821_vm10 = vcmask 1047558  }
 0x370   :  { %v1926_v46 = vadd.f32 %v636_v44, %v1897_v50  ;;  %v1929_v47 = vadd.f32 %v637_v45, %v1899_v51  ;;  %vm822_vm12 = vmand %vm757_vm9, %vm821_vm10 }
 0x372   :  { %v730_v48 = vmul.f32 %v653_v29, %v1926_v46  ;;  %v731_v49 = vmul.f32 %v647_v27, %v1929_v47  ;;  %v727_v22 = vmul.f32 %v647_v27, %v1926_v46  ;;  %v728_v25 = vmul.f32 %v653_v29, %v1929_v47 }
 0x374   :  { %v732_v52 = vadd.f32 %v731_v49, %v730_v48  ;;  %v729_v53 = vsub.f32 %v727_v22, %v728_v25 }
 0x376   :  { %736 = vadd.xlane.f32.xlu2 %v732_v52  ;;  %734 = vadd.xlane.f32.xlu1 %v729_v53  ;;  %v764_v52 = vld [vmem:[#allocation0 + $0x6] ss:$0 sm:$0xff] }
 0x399   :  { %v696_v57 = vpop.xlane.xlu0 %695  ;;  %v694_v58 = vpop.xlane.xlu2 %693 }
 0x39a   :  { %v664_v38 = vpop.xlane.xlu1 %663  ;;  %v698_v62 = vsub.f32 %v1766_v20, %v696_v57  ;;  %v697_v63 = vsub.f32 %v1754_v11, %v694_v58 }
 0x39b   :  { %v667_v54 = vsub.f32 %v651_v36, %v664_v38 }
 0x39c   :  { %v702_v55 = vmul.f32 0.0, %v698_v62  ;;  %v704_v3 = vmul.f32 0.0, %v697_v63 }
 0x39d   :  { %1706 = vrsqrt.f32 %v667_v54  ;;  %vm675_vm15 = vweird.f32 %v667_v54 }
 0x3a3   :  { %v1707_v50 = vpop.eup %1706 }
 0x3a4   :  { %v670_v56 = vmul.f32 %v1707_v50, %v667_v54  ;;  %vm676_vm13 = vweird.f32 %v1707_v50 }
 0x3a5   :  { %vm677_vm2 = vmor %vm675_vm15, %vm676_vm13 }
 0x3a6   :  { %v671_v51 = vmul.f32 %v1707_v50, %v670_v56 }
 0x3a8   :  { %v672_v59 = vmul.f32 0.5, %v671_v51 }
 0x3aa   :  { %v673_v60 = vsub.f32 1.5, %v672_v59 }
 0x3ac   :  { %v674_v0 = vmul.f32 %v1707_v50, %v673_v60 }
 0x3ae   :  { %v678_v1 = vsel %vm677_vm2, %v1707_v50, %v674_v0  ;;  %vm870_vm2 = vcmask 64568  }
 0x3af   :  { %v701_v4 = vmul.f32 %v697_v63, %v678_v1  ;;  %v705_v5 = vmul.f32 %v698_v62, %v678_v1 }
 0x3b1   :  { %v703_v8 = vsub.f32 %v701_v4, %v702_v55  ;;  %v706_v9 = vadd.f32 %v705_v5, %v704_v3 }
 0x3b3   :  { %v710_v14 = vsel %vm709_vm4, %v703_v8, 0.0  ;;  %v711_v15 = vsel %vm709_vm4, %v706_v9, 0.0 }
 0x3b4   :  { %v1940_v16 = vadd.f32 %v710_v14, %v1910_v13  ;;  %v1943_v17 = vadd.f32 %v711_v15, %v1913_v23 }
 0x3b6   :  { %714 = vst [vmem:[#allocation1] sm:$0xff] %v1940_v16 }
 0x3b7   :  { %715 = vst [vmem:[#allocation3] sm:$0xff] %v1943_v17 }
 0x3bd   :  { %v760_v19 = vld [vmem:[#allocation1 + $0x6] ss:$0 sm:$0xff] }
 0x3be   :  { %v761_v10 = vld [vmem:[#allocation3 + $0x6] ss:$0 sm:$0xff]  ;;  %v803_v18 = vmul.f32 %v760_v19, %v1943_v17  ;;  %v799_v29 = vmul.f32 %v760_v19, %v1940_v16  ;;  %v769_v13 = vmul.f32 %v760_v19, %v760_v19 }
 0x3bf   :  { %v766_v27 = vxor.u32 2147483648, %v761_v10 }
 0x3c1   :  { %v802_v30 = vmul.f32 %v766_v27, %v1940_v16  ;;  %v800_v61 = vmul.f32 %v766_v27, %v1943_v17  ;;  %v770_v31 = vmul.f32 %v766_v27, %v761_v10 }
 0x3c3   :  { %v804_v32 = vadd.f32 %v803_v18, %v802_v30  ;;  %v801_v23 = vsub.f32 %v799_v29, %v800_v61  ;;  %v771_v28 = vsub.f32 %v769_v13, %v770_v31 }
 0x3c5   :  { %808 = vadd.xlane.f32.xlu2 %v804_v32  ;;  %806 = vadd.xlane.f32.xlu1 %v801_v23 }
 0x3c6   :  { %776 = vadd.xlane.f32.xlu0 %v771_v28 }
 0x3e9   :  { %v737_v33 = vpop.xlane.xlu2 %736  ;;  %v735_v34 = vpop.xlane.xlu1 %734 }
 0x3ea   :  { %v739_v21 = vsub.f32 %v1798_v2, %v737_v33  ;;  %v738_v35 = vsub.f32 %v1760_v12, %v735_v34 }
 0x3ec   :  { %v743_v37 = vmul.f32 0.0, %v739_v21  ;;  %v746_v6 = vmul.f32 %v739_v21, %v678_v1  ;;  %v742_v7 = vmul.f32 %v738_v35, %v678_v1  ;;  %v745_v39 = vmul.f32 0.0, %v738_v35 }
 0x3ee   :  { %v744_v40 = vsub.f32 %v742_v7, %v743_v37  ;;  %v747_v41 = vadd.f32 %v746_v6, %v745_v39  ;;  %v877_v39 = vld [vmem:[#allocation0 + $0x7] ss:$0 sm:$0xff] }
 0x3f0   :  { %v749_v42 = vsel %vm644_vm0, %v744_v40, 0.0  ;;  %v750_v43 = vsel %vm644_vm0, %v747_v41, 0.0 }
 0x3f1   :  { %v751_v24 = vadd.f32 %v749_v42, %v1926_v46  ;;  %v752_v26 = vadd.f32 %v750_v43, %v1929_v47 }
 0x3f3   :  { %v843_v44 = vmul.f32 %v766_v27, %v751_v24  ;;  %v844_v45 = vmul.f32 %v760_v19, %v752_v26  ;;  %v840_v48 = vmul.f32 %v760_v19, %v751_v24  ;;  %v841_v49 = vmul.f32 %v766_v27, %v752_v26 }
 0x3f5   :  { %v845_v22 = vadd.f32 %v844_v45, %v843_v44  ;;  %v842_v25 = vsub.f32 %v840_v48, %v841_v49  ;;  %v1984_v48 = vld [vmem:[#allocation0 + $0x8] sm:$0xff] }
 0x3f7   :  { %849 = vadd.xlane.f32.xlu1 %v845_v22  ;;  %847 = vadd.xlane.f32.xlu0 %v842_v25 }
 0x438   :  { %v809_v56 = vpop.xlane.xlu2 %808  ;;  %v807_v46 = vpop.xlane.xlu1 %806 }
 0x439   :  { %v777_v53 = vpop.xlane.xlu0 %776  ;;  %v811_v47 = vsub.f32 %v1766_v20, %v809_v56  ;;  %v810_v58 = vsub.f32 %v1754_v11, %v807_v46 }
 0x43a   :  { %v780_v36 = vsub.f32 %v764_v52, %v777_v53 }
 0x43b   :  { %v815_v62 = vmul.f32 0.0, %v811_v47  ;;  %v817_v1 = vmul.f32 0.0, %v810_v58 }
 0x43c   :  { %1708 = vrsqrt.f32 %v780_v36  ;;  %vm788_vm6 = vweird.f32 %v780_v36 }
 0x442   :  { %v1709_v38 = vpop.eup %1708 }
 0x443   :  { %v783_v54 = vmul.f32 %v1709_v38, %v780_v36  ;;  %vm789_vm5 = vweird.f32 %v1709_v38 }
 0x444   :  { %vm790_vm7 = vmor %vm788_vm6, %vm789_vm5 }
 0x445   :  { %v784_v50 = vmul.f32 %v1709_v38, %v783_v54 }
 0x447   :  { %v785_v51 = vmul.f32 0.5, %v784_v50 }
 0x449   :  { %v786_v57 = vsub.f32 1.5, %v785_v51 }
 0x44b   :  { %v787_v59 = vmul.f32 %v1709_v38, %v786_v57 }
 0x44d   :  { %v791_v60 = vsel %vm790_vm7, %v1709_v38, %v787_v59  ;;  %vm983_vm7 = vcmask 72768  }
 0x44e   :  { %v818_v63 = vmul.f32 %v811_v47, %v791_v60  ;;  %v814_v0 = vmul.f32 %v810_v58, %v791_v60 }
 0x450   :  { %v816_v55 = vsub.f32 %v814_v0, %v815_v62  ;;  %v819_v3 = vadd.f32 %v818_v63, %v817_v1 }
 0x452   :  { %v823_v4 = vsel %vm822_vm12, %v816_v55, 0.0  ;;  %v824_v5 = vsel %vm822_vm12, %v819_v3, 0.0 }
 0x453   :  { %v1962_v20 = vadd.f32 %v823_v4, %v1940_v16  ;;  %v1965_v11 = vadd.f32 %v824_v5, %v1943_v17 }
 0x455   :  { %827 = vst [vmem:[#allocation1] sm:$0xff] %v1962_v20 }
 0x456   :  { %828 = vst [vmem:[#allocation3] sm:$0xff] %v1965_v11 }
 0x45c   :  { %v1969_v8 = vld [vmem:[#allocation1 + $0x7] ss:$0 sm:$0xff] }
 0x45d   :  { %v874_v9 = vld [vmem:[#allocation3 + $0x7] ss:$0 sm:$0xff]  ;;  %v882_v15 = vmul.f32 %v1969_v8, %v1969_v8 }
 0x45e   :  { %v1971_v14 = vxor.u32 2147483648, %v874_v9 }
 0x460   :  { %v883_v19 = vmul.f32 %v1971_v14, %v874_v9 }
 0x462   :  { %v884_v10 = vsub.f32 %v882_v15, %v883_v19  ;;  %v990_v19 = vld [vmem:[#allocation0 + $0x8] ss:$0 sm:$0xff] }
 0x464   :  { %889 = vadd.xlane.f32.xlu2 %v884_v10 }
 0x46a   :  { %v848_v16 = vpop.xlane.xlu0 %847  ;;  %v850_v27 = vpop.xlane.xlu1 %849 }
 0x46b   :  { %v851_v17 = vsub.f32 %v1760_v12, %v848_v16  ;;  %v852_v18 = vsub.f32 %v1798_v2, %v850_v27 }
 0x46d   :  { %v855_v29 = vmul.f32 %v851_v17, %v791_v60  ;;  %v858_v30 = vmul.f32 0.0, %v851_v17  ;;  %v856_v61 = vmul.f32 0.0, %v852_v18  ;;  %v859_v13 = vmul.f32 %v852_v18, %v791_v60 }
 0x46f   :  { %v857_v31 = vsub.f32 %v855_v29, %v856_v61  ;;  %v860_v32 = vadd.f32 %v859_v13, %v858_v30 }
 0x471   :  { %v862_v23 = vsel %vm757_vm9, %v857_v31, 0.0  ;;  %v863_v28 = vsel %vm757_vm9, %v860_v32, 0.0 }
 0x472   :  { %v864_v33 = vadd.f32 %v862_v23, %v751_v24  ;;  %v865_v34 = vadd.f32 %v863_v28, %v752_v26 }
 0x474   :  { %v956_v21 = vmul.f32 %v1971_v14, %v864_v33  ;;  %v957_v35 = vmul.f32 %v1969_v8, %v865_v34  ;;  %v953_v12 = vmul.f32 %v1969_v8, %v864_v33  ;;  %v954_v37 = vmul.f32 %v1971_v14, %v865_v34 }
 0x476   :  { %v958_v6 = vadd.f32 %v957_v35, %v956_v21  ;;  %v955_v7 = vsub.f32 %v953_v12, %v954_v37 }
 0x478   :  { %962 = vadd.xlane.f32.xlu1 %v958_v6  ;;  %960 = vadd.xlane.f32.xlu0 %v955_v7 }
 0x4d7   :  { %v890_v40 = vpop.xlane.xlu2 %889 }
 0x4d8   :  { %v893_v41 = vsub.f32 %v877_v39, %v890_v40 }
 0x4da   :  { %1710 = vrsqrt.f32 %v893_v41  ;;  %vm901_vm15 = vweird.f32 %v893_v41 }
 0x4e0   :  { %v1711_v42 = vpop.eup %1710 }
 0x4e1   :  { %v896_v43 = vmul.f32 %v1711_v42, %v893_v41  ;;  %vm902_vm13 = vweird.f32 %v1711_v42 }
 0x4e2   :  { %vm903_vm0 = vmor %vm901_vm15, %vm902_vm13  ;;  %vm1059_vm13 = vcmask 80968  }
 0x4e3   :  { %v897_v24 = vmul.f32 %v1711_v42, %v896_v43 }
 0x4e5   :  { %v898_v26 = vmul.f32 0.5, %v897_v24 }
 0x4e7   :  { %v899_v44 = vsub.f32 1.5, %v898_v26 }
 0x4e9   :  { %v900_v45 = vmul.f32 %v1711_v42, %v899_v44 }
 0x4eb   :  { %v963_v49 = vpop.xlane.xlu1 %962  ;;  %v961_v22 = vpop.xlane.xlu0 %960  ;;  %v1988_v53 = vsel %vm903_vm0, %v1711_v42, %v900_v45  ;;  %vm1128_vm0 = vmand %vm1059_vm13, %vm256_vm8 }
 0x4ec   :  { %v965_v25 = vsub.f32 %v1798_v2, %v963_v49  ;;  %v964_v52 = vsub.f32 %v1984_v48, %v961_v22 }
 0x4ee   :  { %v969_v36 = vmul.f32 0.0, %v965_v25  ;;  %v972_v38 = vmul.f32 %v965_v25, %v1988_v53  ;;  %v968_v54 = vmul.f32 %v964_v52, %v1988_v53  ;;  %v971_v50 = vmul.f32 0.0, %v964_v52 }
 0x4f0   :  { %v970_v56 = vsub.f32 %v968_v54, %v969_v36  ;;  %v973_v51 = vadd.f32 %v972_v38, %v971_v50  ;;  %v1066_v36 = vld [vmem:[#allocation0 + $0x9] ss:$0 sm:$0xff] }
 0x4f2   :  { %v975_v46 = vsel %vm870_vm2, %v970_v56, 0.0  ;;  %v976_v57 = vsel %vm870_vm2, %v973_v51, 0.0 }
 0x4f3   :  { %v977_v47 = vadd.f32 %v975_v46, %v864_v33  ;;  %v978_v58 = vadd.f32 %v976_v57, %v865_v34 }
 0x4f5   :  { %981 = vst [vmem:[#allocation1 + $0x8] sm:$0xff] %v977_v47 }
 0x4f6   :  { %982 = vst [vmem:[#allocation3 + $0x8] sm:$0xff] %v978_v58 }
 0x4fc   :  { %v986_v59 = vld [vmem:[#allocation1 + $0x8] ss:$0 sm:$0xff] }
 0x4fd   :  { %v987_v60 = vld [vmem:[#allocation3 + $0x8] ss:$0 sm:$0xff]  ;;  %v1033_v63 = vmul.f32 %v986_v59, %v978_v58  ;;  %v1029_v0 = vmul.f32 %v986_v59, %v977_v47  ;;  %v995_v3 = vmul.f32 %v986_v59, %v986_v59 }
 0x4fe   :  { %v992_v62 = vxor.u32 2147483648, %v987_v60  ;;  %v1999_v59 = vld [vmem:[%s2064_s1 + $0x8] sm:$0xff] }
 0x500   :  { %v1032_v1 = vmul.f32 %v992_v62, %v977_v47  ;;  %v1030_v55 = vmul.f32 %v992_v62, %v978_v58  ;;  %v996_v4 = vmul.f32 %v992_v62, %v987_v60 }
 0x502   :  { %v1034_v5 = vadd.f32 %v1033_v63, %v1032_v1  ;;  %v1031_v9 = vsub.f32 %v1029_v0, %v1030_v55  ;;  %v997_v15 = vsub.f32 %v995_v3, %v996_v4 }
 0x504   :  { %1038 = vadd.xlane.f32.xlu1 %v1034_v5  ;;  %1036 = vadd.xlane.f32.xlu0 %v1031_v9 }
 0x505   :  { %1002 = vadd.xlane.f32.xlu2 %v997_v15 }
 0x577   :  { %v1039_v29 = vpop.xlane.xlu1 %1038  ;;  %v1037_v30 = vpop.xlane.xlu0 %1036 }
 0x578   :  { %v1003_v10 = vpop.xlane.xlu2 %1002  ;;  %v1041_v31 = vsub.f32 %v1798_v2, %v1039_v29  ;;  %v1040_v32 = vsub.f32 %v1984_v48, %v1037_v30 }
 0x579   :  { %v1006_v16 = vsub.f32 %v990_v19, %v1003_v10 }
 0x57a   :  { %v1045_v33 = vmul.f32 0.0, %v1041_v31  ;;  %v1047_v34 = vmul.f32 0.0, %v1040_v32 }
 0x57b   :  { %1712 = vrsqrt.f32 %v1006_v16  ;;  %vm1014_vm5 = vweird.f32 %v1006_v16 }
 0x581   :  { %v1713_v27 = vpop.eup %1712 }
 0x582   :  { %v1009_v17 = vmul.f32 %v1713_v27, %v1006_v16  ;;  %vm1015_vm4 = vweird.f32 %v1713_v27 }
 0x583   :  { %vm1016_vm6 = vmor %vm1014_vm5, %vm1015_vm4  ;;  %vm1137_vm5 = vcmask 89168  }
 0x584   :  { %v1010_v18 = vmul.f32 %v1713_v27, %v1009_v17 }
 0x586   :  { %v1011_v61 = vmul.f32 0.5, %v1010_v18 }
 0x588   :  { %v1012_v13 = vsub.f32 1.5, %v1011_v61 }
 0x58a   :  { %v1013_v23 = vmul.f32 %v1713_v27, %v1012_v13 }
 0x58c   :  { %v1017_v28 = vsel %vm1016_vm6, %v1713_v27, %v1013_v23 }
 0x58d   :  { %v1044_v21 = vmul.f32 %v1040_v32, %v1017_v28  ;;  %v1048_v35 = vmul.f32 %v1041_v31, %v1017_v28 }
 0x58f   :  { %v1046_v12 = vsub.f32 %v1044_v21, %v1045_v33  ;;  %v1049_v37 = vadd.f32 %v1048_v35, %v1047_v34  ;;  %v1144_v34 = vld [vmem:[#allocation0 + $0xa] ss:$0 sm:$0xff] }
 0x591   :  { %v1051_v6 = vsel %vm983_vm7, %v1046_v12, 0.0  ;;  %v1052_v7 = vsel %vm983_vm7, %v1049_v37, 0.0  ;;  %vm1206_vm7 = vmand %vm1137_vm5, %vm369_vm14 }
 0x592   :  { %v1053_v39 = vadd.f32 %v1051_v6, %v977_v47  ;;  %v1054_v40 = vadd.f32 %v1052_v7, %v978_v58 }
 0x594   :  { %1057 = vst [vmem:[#allocation1 + $0x8] sm:$0xff] %v1053_v39 }
 0x595   :  { %1058 = vst [vmem:[#allocation3 + $0x8] sm:$0xff] %v1054_v40 }
 0x59b   :  { %v1062_v2 = vld [vmem:[#allocation1 + $0x9] ss:$0 sm:$0xff] }
 0x59c   :  { %v1063_v41 = vld [vmem:[#allocation3 + $0x9] ss:$0 sm:$0xff]  ;;  %v1109_v43 = vmul.f32 %v1062_v2, %v1054_v40  ;;  %v1105_v24 = vmul.f32 %v1062_v2, %v1053_v39  ;;  %v1071_v45 = vmul.f32 %v1062_v2, %v1062_v2 }
 0x59d   :  { %v1068_v42 = vxor.u32 2147483648, %v1063_v41 }
 0x59f   :  { %v1108_v26 = vmul.f32 %v1068_v42, %v1053_v39  ;;  %v1106_v44 = vmul.f32 %v1068_v42, %v1054_v40  ;;  %v1072_v49 = vmul.f32 %v1068_v42, %v1063_v41 }
 0x5a1   :  { %v1110_v22 = vadd.f32 %v1109_v43, %v1108_v26  ;;  %v1107_v25 = vsub.f32 %v1105_v24, %v1106_v44  ;;  %v1073_v52 = vsub.f32 %v1071_v45, %v1072_v49 }
 0x5a3   :  { %1114 = vadd.xlane.f32.xlu1 %v1110_v22  ;;  %1112 = vadd.xlane.f32.xlu0 %v1107_v25 }
 0x5a4   :  { %1078 = vadd.xlane.f32.xlu2 %v1073_v52 }
 0x616   :  { %v1115_v46 = vpop.xlane.xlu1 %1114  ;;  %v1113_v57 = vpop.xlane.xlu0 %1112 }
 0x617   :  { %v1079_v38 = vpop.xlane.xlu2 %1078  ;;  %v1117_v60 = vsub.f32 %v1999_v59, %v1115_v46  ;;  %v1116_v62 = vsub.f32 %v1984_v48, %v1113_v57 }
 0x618   :  { %v1082_v54 = vsub.f32 %v1066_v36, %v1079_v38 }
 0x619   :  { %v1121_v1 = vmul.f32 0.0, %v1117_v60  ;;  %v1123_v55 = vmul.f32 0.0, %v1116_v62 }
 0x61a   :  { %1714 = vrsqrt.f32 %v1082_v54  ;;  %vm1090_vm12 = vweird.f32 %v1082_v54 }
 0x620   :  { %v1715_v50 = vpop.eup %1714 }
 0x621   :  { %v1085_v56 = vmul.f32 %v1715_v50, %v1082_v54  ;;  %vm1091_vm9 = vweird.f32 %v1715_v50 }
 0x622   :  { %vm1092_vm15 = vmor %vm1090_vm12, %vm1091_vm9  ;;  %vm1215_vm12 = vcmask 97368  }
 0x623   :  { %v1086_v51 = vmul.f32 %v1715_v50, %v1085_v56 }
 0x625   :  { %v1087_v47 = vmul.f32 0.5, %v1086_v51 }
 0x627   :  { %v1088_v58 = vsub.f32 1.5, %v1087_v47 }
 0x629   :  { %v1089_v63 = vmul.f32 %v1715_v50, %v1088_v58 }
 0x62b   :  { %v1093_v0 = vsel %vm1092_vm15, %v1715_v50, %v1089_v63  ;;  %vm1284_vm15 = vmand %vm1215_vm12, %vm482_vm3 }
 0x62c   :  { %v1120_v3 = vmul.f32 %v1116_v62, %v1093_v0  ;;  %v1124_v4 = vmul.f32 %v1117_v60, %v1093_v0 }
 0x62e   :  { %v1122_v5 = vsub.f32 %v1120_v3, %v1121_v1  ;;  %v1125_v9 = vadd.f32 %v1124_v4, %v1123_v55  ;;  %v1222_v55 = vld [vmem:[#allocation0 + $0xb] ss:$0 sm:$0xff] }
 0x630   :  { %v1129_v15 = vsel %vm1128_vm0, %v1122_v5, 0.0  ;;  %v1130_v19 = vsel %vm1128_vm0, %v1125_v9, 0.0 }
 0x631   :  { %v1131_v10 = vadd.f32 %v1129_v15, %v1053_v39  ;;  %v1132_v16 = vadd.f32 %v1130_v19, %v1054_v40 }
 0x633   :  { %1135 = vst [vmem:[#allocation1 + $0x8] sm:$0xff] %v1131_v10 }
 0x634   :  { %1136 = vst [vmem:[#allocation3 + $0x8] sm:$0xff] %v1132_v16 }
 0x63a   :  { %v1140_v27 = vld [vmem:[#allocation1 + $0xa] ss:$0 sm:$0xff] }
 0x63b   :  { %v1141_v17 = vld [vmem:[#allocation3 + $0xa] ss:$0 sm:$0xff]  ;;  %v1187_v29 = vmul.f32 %v1140_v27, %v1132_v16  ;;  %v1183_v30 = vmul.f32 %v1140_v27, %v1131_v10  ;;  %v1149_v31 = vmul.f32 %v1140_v27, %v1140_v27 }
 0x63c   :  { %v1146_v18 = vxor.u32 2147483648, %v1141_v17 }
 0x63e   :  { %v1186_v61 = vmul.f32 %v1146_v18, %v1131_v10  ;;  %v1184_v13 = vmul.f32 %v1146_v18, %v1132_v16  ;;  %v1150_v32 = vmul.f32 %v1146_v18, %v1141_v17 }
 0x640   :  { %v1188_v23 = vadd.f32 %v1187_v29, %v1186_v61  ;;  %v1185_v28 = vsub.f32 %v1183_v30, %v1184_v13  ;;  %v1151_v33 = vsub.f32 %v1149_v31, %v1150_v32 }
 0x642   :  { %1192 = vadd.xlane.f32.xlu1 %v1188_v23  ;;  %1190 = vadd.xlane.f32.xlu0 %v1185_v28 }
 0x643   :  { %1156 = vadd.xlane.f32.xlu2 %v1151_v33 }
 0x6b5   :  { %v1193_v7 = vpop.xlane.xlu1 %1192  ;;  %v1191_v39 = vpop.xlane.xlu0 %1190 }
 0x6b6   :  { %v1157_v21 = vpop.xlane.xlu2 %1156  ;;  %v1195_v41 = vsub.f32 %v1999_v59, %v1193_v7  ;;  %v1194_v42 = vsub.f32 %v1984_v48, %v1191_v39 }
 0x6b7   :  { %v1160_v35 = vsub.f32 %v1144_v34, %v1157_v21 }
 0x6b8   :  { %v1199_v26 = vmul.f32 0.0, %v1195_v41  ;;  %v1201_v44 = vmul.f32 0.0, %v1194_v42 }
 0x6b9   :  { %1716 = vrsqrt.f32 %v1160_v35  ;;  %vm1168_vm4 = vweird.f32 %v1160_v35 }
 0x6bf   :  { %v1717_v12 = vpop.eup %1716 }
 0x6c0   :  { %v1163_v37 = vmul.f32 %v1717_v12, %v1160_v35  ;;  %vm1169_vm8 = vweird.f32 %v1717_v12 }
 0x6c1   :  { %vm1170_vm6 = vmor %vm1168_vm4, %vm1169_vm8  ;;  %vm1293_vm8 = vcmask 105568  }
 0x6c2   :  { %v1164_v6 = vmul.f32 %v1717_v12, %v1163_v37  ;;  %vm1362_vm5 = vmand %vm1293_vm8, %vm595_vm11 }
 0x6c4   :  { %v1165_v40 = vmul.f32 0.5, %v1164_v6 }
 0x6c6   :  { %v1166_v2 = vsub.f32 1.5, %v1165_v40 }
 0x6c8   :  { %v1167_v43 = vmul.f32 %v1717_v12, %v1166_v2 }
 0x6ca   :  { %v1171_v24 = vsel %vm1170_vm6, %v1717_v12, %v1167_v43 }
 0x6cb   :  { %v1198_v45 = vmul.f32 %v1194_v42, %v1171_v24  ;;  %v1202_v49 = vmul.f32 %v1195_v41, %v1171_v24 }
 0x6cd   :  { %v1200_v22 = vsub.f32 %v1198_v45, %v1199_v26  ;;  %v1203_v25 = vadd.f32 %v1202_v49, %v1201_v44  ;;  %v1300_v44 = vld [vmem:[#allocation0 + $0xc] ss:$0 sm:$0xff] }
 0x6cf   :  { %v1207_v52 = vsel %vm1206_vm7, %v1200_v22, 0.0  ;;  %v1208_v36 = vsel %vm1206_vm7, %v1203_v25, 0.0  ;;  %vm1371_vm7 = vcmask 113768  }
 0x6d0   :  { %v1209_v38 = vadd.f32 %v1207_v52, %v1131_v10  ;;  %v1210_v54 = vadd.f32 %v1208_v36, %v1132_v16 }
 0x6d2   :  { %1213 = vst [vmem:[#allocation1 + $0x8] sm:$0xff] %v1209_v38 }
 0x6d3   :  { %1214 = vst [vmem:[#allocation3 + $0x8] sm:$0xff] %v1210_v54 }
 0x6d9   :  { %v1218_v50 = vld [vmem:[#allocation1 + $0xb] ss:$0 sm:$0xff] }
 0x6da   :  { %v1219_v56 = vld [vmem:[#allocation3 + $0xb] ss:$0 sm:$0xff]  ;;  %v1265_v46 = vmul.f32 %v1218_v50, %v1210_v54  ;;  %v1261_v57 = vmul.f32 %v1218_v50, %v1209_v38  ;;  %v1227_v60 = vmul.f32 %v1218_v50, %v1218_v50 }
 0x6db   :  { %v1224_v51 = vxor.u32 2147483648, %v1219_v56 }
 0x6dd   :  { %v1264_v47 = vmul.f32 %v1224_v51, %v1209_v38  ;;  %v1262_v58 = vmul.f32 %v1224_v51, %v1210_v54  ;;  %v1228_v62 = vmul.f32 %v1224_v51, %v1219_v56 }
 0x6df   :  { %v1266_v63 = vadd.f32 %v1265_v46, %v1264_v47  ;;  %v1263_v0 = vsub.f32 %v1261_v57, %v1262_v58  ;;  %v1229_v1 = vsub.f32 %v1227_v60, %v1228_v62 }
 0x6e1   :  { %1270 = vadd.xlane.f32.xlu1 %v1266_v63  ;;  %1268 = vadd.xlane.f32.xlu0 %v1263_v0 }
 0x6e2   :  { %1234 = vadd.xlane.f32.xlu2 %v1229_v1 }
 0x754   :  { %v1271_v19 = vpop.xlane.xlu1 %1270  ;;  %v1269_v10 = vpop.xlane.xlu0 %1268 }
 0x755   :  { %v1235_v3 = vpop.xlane.xlu2 %1234  ;;  %v1273_v17 = vsub.f32 %v1999_v59, %v1271_v19  ;;  %v1272_v18 = vsub.f32 %v1984_v48, %v1269_v10 }
 0x756   :  { %v1238_v4 = vsub.f32 %v1222_v55, %v1235_v3 }
 0x757   :  { %v1277_v61 = vmul.f32 0.0, %v1273_v17  ;;  %v1279_v13 = vmul.f32 0.0, %v1272_v18 }
 0x758   :  { %1718 = vrsqrt.f32 %v1238_v4  ;;  %vm1246_vm9 = vweird.f32 %v1238_v4 }
 0x75e   :  { %v1719_v5 = vpop.eup %1718 }
 0x75f   :  { %v1241_v9 = vmul.f32 %v1719_v5, %v1238_v4  ;;  %vm1247_vm14 = vweird.f32 %v1719_v5 }
 0x760   :  { %vm1248_vm13 = vmor %vm1246_vm9, %vm1247_vm14 }
 0x761   :  { %v1242_v15 = vmul.f32 %v1719_v5, %v1241_v9  ;;  %vm1440_vm9 = vmand %vm1371_vm7, %vm708_vm1  ;;  %vm934_vm1 = vcmask 1047559  }
 0x762   :  { %vm935_vm12 = vmand %vm870_vm2, %vm934_vm1 }
 0x763   :  { %v1243_v16 = vmul.f32 0.5, %v1242_v15 }
 0x765   :  { %v1244_v27 = vsub.f32 1.5, %v1243_v16 }
 0x767   :  { %v1245_v29 = vmul.f32 %v1719_v5, %v1244_v27 }
 0x769   :  { %v1249_v30 = vsel %vm1248_vm13, %v1719_v5, %v1245_v29 }
 0x76a   :  { %v1276_v31 = vmul.f32 %v1272_v18, %v1249_v30  ;;  %v1280_v32 = vmul.f32 %v1273_v17, %v1249_v30 }
 0x76c   :  { %v1278_v23 = vsub.f32 %v1276_v31, %v1277_v61  ;;  %v1281_v28 = vadd.f32 %v1280_v32, %v1279_v13  ;;  %v1378_v13 = vld [vmem:[#allocation0 + $0xd] ss:$0 sm:$0xff] }
 0x76e   :  { %v1285_v33 = vsel %vm1284_vm15, %v1278_v23, 0.0  ;;  %v1286_v34 = vsel %vm1284_vm15, %v1281_v28, 0.0 }
 0x76f   :  { %v1287_v21 = vadd.f32 %v1285_v33, %v1209_v38  ;;  %v1288_v35 = vadd.f32 %v1286_v34, %v1210_v54 }
 0x771   :  { %1291 = vst [vmem:[#allocation1 + $0x8] sm:$0xff] %v1287_v21 }
 0x772   :  { %1292 = vst [vmem:[#allocation3 + $0x8] sm:$0xff] %v1288_v35 }
 0x778   :  { %v1296_v12 = vld [vmem:[#allocation1 + $0xc] ss:$0 sm:$0xff] }
 0x779   :  { %v1297_v37 = vld [vmem:[#allocation3 + $0xc] ss:$0 sm:$0xff]  ;;  %v1343_v7 = vmul.f32 %v1296_v12, %v1288_v35  ;;  %v1339_v39 = vmul.f32 %v1296_v12, %v1287_v21  ;;  %v1305_v41 = vmul.f32 %v1296_v12, %v1296_v12 }
 0x77a   :  { %v1302_v6 = vxor.u32 2147483648, %v1297_v37 }
 0x77c   :  { %v1342_v40 = vmul.f32 %v1302_v6, %v1287_v21  ;;  %v1340_v2 = vmul.f32 %v1302_v6, %v1288_v35  ;;  %v1306_v42 = vmul.f32 %v1302_v6, %v1297_v37 }
 0x77e   :  { %v1344_v43 = vadd.f32 %v1343_v7, %v1342_v40  ;;  %v1341_v24 = vsub.f32 %v1339_v39, %v1340_v2  ;;  %v1307_v26 = vsub.f32 %v1305_v41, %v1306_v42 }
 0x780   :  { %1348 = vadd.xlane.f32.xlu1 %v1344_v43  ;;  %1346 = vadd.xlane.f32.xlu0 %v1341_v24 }
 0x781   :  { %1312 = vadd.xlane.f32.xlu2 %v1307_v26 }
 0x7f3   :  { %v1349_v36 = vpop.xlane.xlu1 %1348  ;;  %v1347_v38 = vpop.xlane.xlu0 %1346 }
 0x7f4   :  { %v1313_v45 = vpop.xlane.xlu2 %1312  ;;  %v1351_v56 = vsub.f32 %v1999_v59, %v1349_v36  ;;  %v1350_v51 = vsub.f32 %v1984_v48, %v1347_v38 }
 0x7f5   :  { %v1316_v49 = vsub.f32 %v1300_v44, %v1313_v45 }
 0x7f6   :  { %v1355_v47 = vmul.f32 0.0, %v1351_v56  ;;  %v1357_v58 = vmul.f32 0.0, %v1350_v51 }
 0x7f7   :  { %1720 = vrsqrt.f32 %v1316_v49  ;;  %vm1324_vm0 = vweird.f32 %v1316_v49 }
 0x7fd   :  { %v1721_v22 = vpop.eup %1720 }
 0x7fe   :  { %v1319_v25 = vmul.f32 %v1721_v22, %v1316_v49  ;;  %vm1325_vm3 = vweird.f32 %v1721_v22 }
 0x7ff   :  { %vm1326_vm4 = vmor %vm1324_vm0, %vm1325_vm3  ;;  %vm1449_vm3 = vcmask 121968  }
 0x800   :  { %v1320_v52 = vmul.f32 %v1721_v22, %v1319_v25  ;;  %vm1518_vm0 = vmand %vm1449_vm3, %vm821_vm10 }
 0x802   :  { %v1321_v54 = vmul.f32 0.5, %v1320_v52 }
 0x804   :  { %v1322_v50 = vsub.f32 1.5, %v1321_v54 }
 0x806   :  { %v1323_v46 = vmul.f32 %v1721_v22, %v1322_v50 }
 0x808   :  { %v1327_v57 = vsel %vm1326_vm4, %v1721_v22, %v1323_v46  ;;  %vm1527_vm4 = vcmask 130168  }
 0x809   :  { %v1354_v60 = vmul.f32 %v1350_v51, %v1327_v57  ;;  %v1358_v62 = vmul.f32 %v1351_v56, %v1327_v57 }
 0x80b   :  { %v1356_v63 = vsub.f32 %v1354_v60, %v1355_v47  ;;  %v1359_v0 = vadd.f32 %v1358_v62, %v1357_v58  ;;  %v915_v58 = vmul.f32 %v1971_v14, %v1962_v20  ;;  %v913_v60 = vmul.f32 %v1971_v14, %v1965_v11  ;;  %v1729_v14 = vld [vmem:[%s2064_s1] sm:$0xff] }
 0x80c   :  { %v916_v62 = vmul.f32 %v1969_v8, %v1965_v11 }
 0x80d   :  { %v1363_v1 = vsel %vm1362_vm5, %v1356_v63, 0.0  ;;  %v1364_v55 = vsel %vm1362_vm5, %v1359_v0, 0.0  ;;  %v912_v63 = vmul.f32 %v1969_v8, %v1962_v20 }
 0x80e   :  { %v1365_v3 = vadd.f32 %v1363_v1, %v1287_v21  ;;  %v1366_v4 = vadd.f32 %v1364_v55, %v1288_v35  ;;  %v917_v0 = vadd.f32 %v916_v62, %v915_v58  ;;  %v1456_v55 = vld [vmem:[#allocation0 + $0xe] ss:$0 sm:$0xff] }
 0x80f   :  { %v914_v1 = vsub.f32 %v912_v63, %v913_v60 }
 0x810   :  { %1369 = vst [vmem:[#allocation1 + $0x8] sm:$0xff] %v1365_v3 }
 0x811   :  { %1370 = vst [vmem:[#allocation3 + $0x8] sm:$0xff] %v1366_v4 }
 0x817   :  { %v1374_v5 = vld [vmem:[#allocation1 + $0xd] ss:$0 sm:$0xff] }
 0x818   :  { %v1375_v9 = vld [vmem:[#allocation3 + $0xd] ss:$0 sm:$0xff]  ;;  %v1421_v19 = vmul.f32 %v1374_v5, %v1366_v4  ;;  %v1417_v10 = vmul.f32 %v1374_v5, %v1365_v3  ;;  %v1383_v17 = vmul.f32 %v1374_v5, %v1374_v5 }
 0x819   :  { %v1380_v15 = vxor.u32 2147483648, %v1375_v9 }
 0x81b   :  { %v1420_v16 = vmul.f32 %v1380_v15, %v1365_v3  ;;  %v1418_v27 = vmul.f32 %v1380_v15, %v1366_v4  ;;  %v1384_v18 = vmul.f32 %v1380_v15, %v1375_v9  ;;  %v905_v15 = vld [vmem:[#allocation0] sm:$0xff] }
 0x81d   :  { %v1422_v29 = vadd.f32 %v1421_v19, %v1420_v16  ;;  %v1419_v30 = vsub.f32 %v1417_v10, %v1418_v27  ;;  %v1385_v61 = vsub.f32 %v1383_v17, %v1384_v18 }
 0x81f   :  { %1426 = vadd.xlane.f32.xlu1 %v1422_v29  ;;  %1424 = vadd.xlane.f32.xlu0 %v1419_v30 }
 0x820   :  { %1390 = vadd.xlane.f32.xlu2 %v1385_v61 }
 0x892   :  { %v1427_v34 = vpop.xlane.xlu1 %1426  ;;  %v1425_v21 = vpop.xlane.xlu0 %1424 }
 0x893   :  { %v1391_v31 = vpop.xlane.xlu2 %1390  ;;  %v1429_v37 = vsub.f32 %v1999_v59, %v1427_v34  ;;  %v1428_v6 = vsub.f32 %v1984_v48, %v1425_v21 }
 0x894   :  { %v1394_v32 = vsub.f32 %v1378_v13, %v1391_v31 }
 0x895   :  { %v1433_v40 = vmul.f32 0.0, %v1429_v37  ;;  %v1435_v2 = vmul.f32 0.0, %v1428_v6 }
 0x896   :  { %1722 = vrsqrt.f32 %v1394_v32  ;;  %vm1402_vm6 = vweird.f32 %v1394_v32 }
 0x89c   :  { %v1723_v23 = vpop.eup %1722 }
 0x89d   :  { %v1397_v28 = vmul.f32 %v1723_v23, %v1394_v32  ;;  %vm1403_vm11 = vweird.f32 %v1723_v23 }
 0x89e   :  { %vm1404_vm14 = vmor %vm1402_vm6, %vm1403_vm11 }
 0x89f   :  { %v1398_v33 = vmul.f32 %v1723_v23, %v1397_v28  ;;  %vm1596_vm11 = vmand %vm1527_vm4, %vm934_vm1 }
 0x8a1   :  { %v1399_v35 = vmul.f32 0.5, %v1398_v33 }
 0x8a3   :  { %v1400_v12 = vsub.f32 1.5, %v1399_v35 }
 0x8a5   :  { %v1401_v7 = vmul.f32 %v1723_v23, %v1400_v12 }
 0x8a7   :  { %v1405_v39 = vsel %vm1404_vm14, %v1723_v23, %v1401_v7 }
 0x8a8   :  { %v1432_v41 = vmul.f32 %v1428_v6, %v1405_v39  ;;  %v1436_v42 = vmul.f32 %v1429_v37, %v1405_v39 }
 0x8aa   :  { %v1434_v43 = vsub.f32 %v1432_v41, %v1433_v40  ;;  %v1437_v24 = vadd.f32 %v1436_v42, %v1435_v2 }
 0x8ac   :  { %v1441_v26 = vsel %vm1440_vm9, %v1434_v43, 0.0  ;;  %v1442_v44 = vsel %vm1440_vm9, %v1437_v24, 0.0 }
 0x8ad   :  { %v2016_v45 = vadd.f32 %v1441_v26, %v1365_v3  ;;  %v2018_v49 = vadd.f32 %v1442_v44, %v1366_v4 }
 0x8af   :  { %1447 = vst [vmem:[#allocation1 + $0x8] sm:$0xff] %v2016_v45 }
 0x8b0   :  { %1448 = vst [vmem:[#allocation3 + $0x8] sm:$0xff] %v2018_v49 }
 0x8b6   :  { %v1452_v22 = vld [vmem:[#allocation1 + $0xe] ss:$0 sm:$0xff] }
 0x8b7   :  { %v1453_v25 = vld [vmem:[#allocation3 + $0xe] ss:$0 sm:$0xff]  ;;  %v1499_v36 = vmul.f32 %v1452_v22, %v2018_v49  ;;  %v1495_v38 = vmul.f32 %v1452_v22, %v2016_v45  ;;  %v1461_v56 = vmul.f32 %v1452_v22, %v1452_v22 }
 0x8b8   :  { %v1458_v52 = vxor.u32 2147483648, %v1453_v25 }
 0x8ba   :  { %v1498_v54 = vmul.f32 %v1458_v52, %v2016_v45  ;;  %v1496_v50 = vmul.f32 %v1458_v52, %v2018_v49  ;;  %v1462_v51 = vmul.f32 %v1458_v52, %v1453_v25 }
 0x8bc   :  { %v1500_v46 = vadd.f32 %v1499_v36, %v1498_v54  ;;  %v1497_v57 = vsub.f32 %v1495_v38, %v1496_v50  ;;  %v1463_v47 = vsub.f32 %v1461_v56, %v1462_v51 }
 0x8be   :  { %1504 = vadd.xlane.f32.xlu1 %v1500_v46  ;;  %1502 = vadd.xlane.f32.xlu0 %v1497_v57 }
 0x8bf   :  { %1468 = vadd.xlane.f32.xlu2 %v1463_v47 }
 0x8c6   :  { %921 = vadd.xlane.f32.xlu1 %v917_v0  ;;  %919 = vadd.xlane.f32.xlu0 %v914_v1 }
 0x931   :  { %v1505_v3 = vpop.xlane.xlu1 %1504  ;;  %v1503_v4 = vpop.xlane.xlu0 %1502 }
 0x932   :  { %v1469_v5 = vpop.xlane.xlu2 %1468  ;;  %v1507_v12 = vsub.f32 %v1999_v59, %v1505_v3 }
 0x933   :  { %v1472_v9 = vsub.f32 %v1456_v55, %v1469_v5 }
 0x934   :  { %v1511_v7 = vmul.f32 0.0, %v1507_v12 }
 0x935   :  { %1724 = vrsqrt.f32 %v1472_v9  ;;  %vm1480_vm15 = vweird.f32 %v1472_v9 }
 0x939   :  { %v922_v19 = vpop.xlane.xlu1 %921  ;;  %v920_v10 = vpop.xlane.xlu0 %919 }
 0x93a   :  { %v924_v16 = vsub.f32 %v1729_v14, %v922_v19  ;;  %v923_v27 = vsub.f32 %v905_v15, %v920_v10 }
 0x93b   :  { %v1725_v8 = vpop.eup %1724 }
 0x93c   :  { %v1475_v17 = vmul.f32 %v1725_v8, %v1472_v9  ;;  %v928_v18 = vmul.f32 0.0, %v924_v16  ;;  %v931_v29 = vmul.f32 %v924_v16, %v1988_v53  ;;  %v927_v30 = vmul.f32 %v923_v27, %v1988_v53 }
 0x93d   :  { %v930_v61 = vmul.f32 0.0, %v923_v27  ;;  %vm1481_vm13 = vweird.f32 %v1725_v8  ;;  %v1506_v53 = vsub.f32 %v1984_v48, %v1503_v4 }
 0x93e   :  { %v1476_v13 = vmul.f32 %v1725_v8, %v1475_v17  ;;  %v929_v31 = vsub.f32 %v927_v30, %v928_v18  ;;  %vm1482_vm2 = vmor %vm1480_vm15, %vm1481_vm13 }
 0x93f   :  { %v932_v32 = vadd.f32 %v931_v29, %v930_v61  ;;  %v1513_v39 = vmul.f32 0.0, %v1506_v53 }
 0x940   :  { %v1477_v23 = vmul.f32 0.5, %v1476_v13  ;;  %v936_v28 = vsel %vm935_vm12, %v929_v31, 0.0 }
 0x941   :  { %v937_v33 = vsel %vm935_vm12, %v932_v32, 0.0  ;;  %v938_v21 = vadd.f32 %v936_v28, %v1962_v20 }
 0x942   :  { %v1478_v34 = vsub.f32 1.5, %v1477_v23  ;;  %v939_v35 = vadd.f32 %v937_v33, %v1965_v11 }
 0x943   :  { %940 = vst [vmem:[#allocation1] sm:$0xff] %v938_v21 }
 0x944   :  { %v1479_v37 = vmul.f32 %v1725_v8, %v1478_v34  ;;  %941 = vst [vmem:[#allocation3] sm:$0xff] %v939_v35 }
 0x945   :  { %1636 = vst [vmem:[%s2065_s2] sm:$0xff] %v938_v21 }
 0x946   :  { %v1483_v6 = vsel %vm1482_vm2, %v1725_v8, %v1479_v37  ;;  %1673 = vst [vmem:[%s2066_s3] sm:$0xff] %v939_v35 }
 0x947   :  { %v1510_v20 = vmul.f32 %v1506_v53, %v1483_v6  ;;  %v1514_v40 = vmul.f32 %v1507_v12, %v1483_v6 }
 0x949   :  { %v1512_v11 = vsub.f32 %v1510_v20, %v1511_v7  ;;  %v1515_v2 = vadd.f32 %v1514_v40, %v1513_v39 }
 0x94b   :  { %v1519_v41 = vsel %vm1518_vm0, %v1512_v11, 0.0  ;;  %v1520_v42 = vsel %vm1518_vm0, %v1515_v2, 0.0 }
 0x94c   :  { %v1521_v43 = vadd.f32 %v1519_v41, %v2016_v45  ;;  %v1522_v24 = vadd.f32 %v1520_v42, %v2018_v49  ;;  %v1534_v45 = vld [vmem:[#allocation0 + $0xf] ss:$0 sm:$0xff] }
 0x94e   :  { %1525 = vst [vmem:[#allocation1 + $0x8] sm:$0xff] %v1521_v43 }
 0x94f   :  { %1526 = vst [vmem:[#allocation3 + $0x8] sm:$0xff] %v1522_v24 }
 0x955   :  { %v1530_v26 = vld [vmem:[#allocation1 + $0xf] ss:$0 sm:$0xff] }
 0x956   :  { %v1531_v44 = vld [vmem:[#allocation3 + $0xf] ss:$0 sm:$0xff]  ;;  %v1577_v52 = vmul.f32 %v1530_v26, %v1522_v24  ;;  %v1539_v36 = vmul.f32 %v1530_v26, %v1530_v26  ;;  %v1573_v51 = vmul.f32 %v1530_v26, %v1521_v43 }
 0x957   :  { %v1536_v22 = vxor.u32 2147483648, %v1531_v44 }
 0x959   :  { %v1576_v25 = vmul.f32 %v1536_v22, %v1521_v43  ;;  %v1540_v38 = vmul.f32 %v1536_v22, %v1531_v44  ;;  %v1574_v56 = vmul.f32 %v1536_v22, %v1522_v24 }
 0x95b   :  { %v1578_v54 = vadd.f32 %v1577_v52, %v1576_v25  ;;  %v1541_v50 = vsub.f32 %v1539_v36, %v1540_v38  ;;  %v1575_v46 = vsub.f32 %v1573_v51, %v1574_v56 }
 0x95d   :  { %1582 = vadd.xlane.f32.xlu0 %v1578_v54  ;;  %1546 = vadd.xlane.f32.xlu2 %v1541_v50 }
 0x965   :  { %1580 = vadd.xlane.f32.xlu2 %v1575_v46 }
 0x9d0   :  { %v1547_v57 = vpop.xlane.xlu2 %1546  ;;  %v1583_v62 = vpop.xlane.xlu0 %1582 }
 0x9d1   :  { %v1550_v49 = vsub.f32 %v1534_v45, %v1547_v57  ;;  %v1585_v55 = vsub.f32 %v1999_v59, %v1583_v62 }
 0x9d3   :  { %1726 = vrsqrt.f32 %v1550_v49  ;;  %vm1558_vm8 = vweird.f32 %v1550_v49  ;;  %v1589_v9 = vmul.f32 0.0, %v1585_v55 }
 0x9d8   :  { %v1581_v0 = vpop.xlane.xlu2 %1580 }
 0x9d9   :  { %v1727_v47 = vpop.eup %1726  ;;  %v1584_v3 = vsub.f32 %v1984_v48, %v1581_v0 }
 0x9da   :  { %v1553_v58 = vmul.f32 %v1727_v47, %v1550_v49  ;;  %vm1559_vm10 = vweird.f32 %v1727_v47 }
 0x9db   :  { %vm1560_vm5 = vmor %vm1558_vm8, %vm1559_vm10  ;;  %v1591_v10 = vmul.f32 0.0, %v1584_v3 }
 0x9dc   :  { %v1554_v60 = vmul.f32 %v1727_v47, %v1553_v58 }
 0x9de   :  { %v1555_v63 = vmul.f32 0.5, %v1554_v60 }
 0x9e0   :  { %v1556_v1 = vsub.f32 1.5, %v1555_v63 }
 0x9e2   :  { %v1557_v4 = vmul.f32 %v1727_v47, %v1556_v1 }
 0x9e4   :  { %v1561_v5 = vsel %vm1560_vm5, %v1727_v47, %v1557_v4 }
 0x9e5   :  { %v1592_v15 = vmul.f32 %v1585_v55, %v1561_v5  ;;  %v1588_v19 = vmul.f32 %v1584_v3, %v1561_v5 }
 0x9e7   :  { %v1590_v14 = vsub.f32 %v1588_v19, %v1589_v9  ;;  %v1593_v16 = vadd.f32 %v1592_v15, %v1591_v10 }
 0x9e9   :  { %v1597_v27 = vsel %vm1596_vm11, %v1590_v14, 0.0  ;;  %v1598_v8 = vsel %vm1596_vm11, %v1593_v16, 0.0 }
 0x9ea   :  { %v1599_v17 = vadd.f32 %v1597_v27, %v1521_v43  ;;  %v1600_v18 = vadd.f32 %v1598_v8, %v1522_v24 }
 0x9ec   :  { %1603 = vst [vmem:[#allocation1 + $0x8] sm:$0xff] %v1599_v17 }
 0x9ed   :  { %1604 = vst [vmem:[#allocation3 + $0x8] sm:$0xff] %v1600_v18 }
 0x9ee   :  { %1638 = vst [vmem:[%s2065_s2 + $0x8] sm:$0xff] %v1599_v17 }
 0x9ef   :  { %1675 = vst [vmem:[%s2066_s3 + $0x8] sm:$0xff] %v1600_v18 }

// kernel: custom-call.49
= control target key start
LH: loop header
LB: loop body
LE: loop exit
PB: predicated region body
PF: predicated region fallthrough
CT: control target
= control target key end

     0   :  { %v79_v0 = vlaneseq  ;;  %v1004_v61 = vmov -1.0   ;;  %s1298_s0 = inlined_call_operand.vmem [shape: f32[1,16,16], index: 0, kind: input, shape index: {}]   ;;  %s1299_s1 = inlined_call_operand.vmem [shape: f32[1,16,16], index: 1, kind: input, shape index: {}]   ;;  %s1300_s2 = inlined_call_operand.vmem [shape: f32[1,16,16], index: 2, kind: output, shape index: {0}]   ;;  %s1301_s3 = inlined_call_operand.vmem [shape: f32[1,16,16], index: 3, kind: output, shape index: {1}]  }
   0x1   :  { %v35_v1 = vld [vmem:[%s1298_s0] sm:$0xff] }
   0x2   :  { %v1029_v2 = vand.u32 127, %v79_v0  ;;  %v1031_v3 = vshrl.u32 %v79_v0, 7  ;;  %v72_v5 = vld [vmem:[%s1299_s1] sm:$0xff] }
   0x4   :  { %vm85_vm0 = vcmp.eq.s32.totalorder %v1031_v3, %v1029_v2  ;;  %vm81_vm2 = vcmp.lt.s32.totalorder %v1029_v2, 16  ;;  %vm94_vm3 = vcmp.ge.s32.totalorder %v1031_v3, %v1029_v2 }
   0x5   :  { %v88_v4 = vsel %vm85_vm0, %v35_v1, 0.0  ;;  %v89_v6 = vsel %vm85_vm0, %v72_v5, 0.0  ;;  %vm95_vm5 = vmand %vm94_vm3, %vm81_vm2 }
   0x6   :  { %90 = vadd.xlane.f32.xlu0 %v88_v4  ;;  %v96_v22 = vsel %vm95_vm5, %v35_v1, 0.0  ;;  %v97_v23 = vsel %vm95_vm5, %v72_v5, 0.0  ;;  %vm261_vm5 = vcmp.eq.s32.totalorder %v1029_v2, %v1031_v3 }
   0x7   :  { %v154_v42 = vand.u32 2147483648, %v96_v22  ;;  %v156_v43 = vand.u32 2147483648, %v97_v23  ;;  %vm158_vm10 = vcmp.eq.f32.partialorder %v96_v22, 0.0  ;;  %vm160_vm11 = vcmp.eq.f32.partialorder %v97_v23, 0.0 }
   0x9   :  { %v155_v48 = vor.u32 inf, %v154_v42  ;;  %v157_v49 = vor.u32 inf, %v156_v43 }
   0xb   :  { %v159_v53 = vsel %vm158_vm10, nan, %v155_v48  ;;  %v161_v54 = vsel %vm160_vm11, nan, %v157_v49  ;;  %vm354_vm10 = vcmp.eq.s32.totalorder %v1029_v2, 4  ;;  %vm378_vm11 = vcmp.eq.s32.totalorder %v1029_v2, 5 }
   0xe   :  { %92 = vadd.xlane.f32.xlu0 %v89_v6 }
  0x79   :  { %v1038_v7 = vpop.xlane.xlu0 %90 }
  0x7a   :  { %v100_v9 = vand.u32 2147483647, %v1038_v7  ;;  %vm151_vm0 = vcmp.eq.f32.partialorder %v1038_v7, 0.0 }
  0x81   :  { %v1040_v8 = vpop.xlane.xlu0 %92 }
  0x82   :  { %v101_v10 = vand.u32 2147483647, %v1040_v8  ;;  %vm152_vm15 = vcmp.eq.f32.partialorder %v1040_v8, 0.0 }
  0x83   :  { %vm1083_vm3 = vmand %vm151_vm0, %vm152_vm15 }
  0x84   :  { %vm1044_vm1 = vcmp.lt.f32.partialorder %v100_v9, %v101_v10 }
  0x85   :  { %v104_v12 = vsel %vm1044_vm1, %v1040_v8, %v1038_v7  ;;  %v103_v24 = vsel %vm1044_vm1, %v1038_v7, %v1040_v8 }
  0x86   :  { %996 = vrcp.f32 %v104_v12  ;;  %v116_v16 = vand.u32 2147483648, %v104_v12  ;;  %v114_v18 = vand.u32 2147483647, %v104_v12  ;;  %vm110_vm6 = vweird.f32 %v104_v12 }
  0x88   :  { %v117_v20 = vor.u32 1.1754944e-38, %v116_v16  ;;  %vm115_vm8 = vcmp.eq.f32.partialorder %v114_v18, 8.507059e+37 }
  0x8c   :  { %v997_v13 = vpop.eup %996 }
  0x8d   :  { %v106_v14 = vmul.f32 %v997_v13, %v104_v12  ;;  %vm111_vm4 = vweird.f32 %v997_v13 }
  0x8e   :  { %vm112_vm7 = vmor %vm110_vm6, %vm111_vm4  ;;  %vm264_vm4 = vcmp.eq.s32.totalorder %v1029_v2, 0  ;;  %vm282_vm6 = vcmp.eq.s32.totalorder %v1029_v2, 1 }
  0x8f   :  { %v107_v15 = vsub.f32 1.0, %v106_v14  ;;  %v265_v62 = vsel %vm264_vm4, 1.0, %v1004_v61  ;;  %v1103_v61 = vadd.s32 8, %v1031_v3 }
  0x90   :  { %v266_v63 = vsel %vm261_vm5, %v265_v62, 0.0 }
  0x91   :  { %v108_v17 = vmul.f32 %v997_v13, %v107_v15  ;;  %vm183_vm15 = vcmp.ge.s32.totalorder %v1103_v61, %v1029_v2 }
  0x92   :  { %vm184_vm4 = vmand %vm183_vm15, %vm81_vm2  ;;  %vm402_vm15 = vcmp.eq.s32.totalorder %v1029_v2, 6 }
  0x93   :  { %v109_v19 = vadd.f32 %v997_v13, %v108_v17 }
  0x95   :  { %v113_v21 = vsel %vm112_vm7, %v997_v13, %v109_v19  ;;  %vm306_vm7 = vcmp.eq.s32.totalorder %v1029_v2, 2 }
  0x96   :  { %v118_v25 = vsel %vm115_vm8, %v117_v20, %v113_v21  ;;  %vm330_vm8 = vcmp.eq.s32.totalorder %v1029_v2, 3 }
  0x97   :  { %v1061_v26 = vmul.f32 %v118_v25, %v103_v24 }
  0x99   :  { %v120_v27 = vmul.f32 %v1061_v26, %v1038_v7  ;;  %v122_v28 = vmul.f32 %v1061_v26, %v1040_v8  ;;  %v124_v29 = vmul.f32 %v1061_v26, %v96_v22  ;;  %v126_v30 = vmul.f32 %v1061_v26, %v97_v23 }
  0x9b   :  { %v121_v31 = vadd.f32 %v120_v27, %v1040_v8  ;;  %v123_v32 = vadd.f32 %v122_v28, %v1038_v7  ;;  %v125_v33 = vadd.f32 %v124_v29, %v97_v23  ;;  %v127_v34 = vadd.f32 %v126_v30, %v96_v22 }
  0x9c   :  { %v146_v35 = vsub.f32 %v126_v30, %v96_v22  ;;  %v148_v36 = vsub.f32 %v97_v23, %v124_v29 }
  0x9d   :  { %v128_v37 = vsel %vm1044_vm1, %v125_v33, %v127_v34  ;;  %v129_v38 = vsel %vm1044_vm1, %v121_v31, %v123_v32 }
  0x9e   :  { %998 = vrcp.f32 %v129_v38  ;;  %v149_v39 = vsel %vm1044_vm1, %v146_v35, %v148_v36  ;;  %v141_v45 = vand.u32 2147483648, %v129_v38  ;;  %v139_v47 = vand.u32 2147483647, %v129_v38 }
  0x9f   :  { %vm135_vm12 = vweird.f32 %v129_v38 }
  0xa0   :  { %v142_v51 = vor.u32 1.1754944e-38, %v141_v45  ;;  %vm140_vm14 = vcmp.eq.f32.partialorder %v139_v47, 8.507059e+37 }
  0xa4   :  { %v999_v40 = vpop.eup %998 }
  0xa5   :  { %v131_v41 = vmul.f32 %v999_v40, %v129_v38  ;;  %vm136_vm9 = vweird.f32 %v999_v40 }
  0xa6   :  { %vm137_vm13 = vmor %vm135_vm12, %vm136_vm9  ;;  %vm174_vm9 = vcmp.eq.s32.totalorder %v1103_v61, %v1029_v2 }
  0xa7   :  { %v132_v44 = vsub.f32 1.0, %v131_v41 }
  0xa9   :  { %v133_v46 = vmul.f32 %v999_v40, %v132_v44 }
  0xab   :  { %v134_v50 = vadd.f32 %v999_v40, %v133_v46 }
  0xad   :  { %v138_v52 = vsel %vm137_vm13, %v999_v40, %v134_v50 }
  0xae   :  { %v1078_v55 = vsel %vm140_vm14, %v142_v51, %v138_v52 }
  0xaf   :  { %v144_v56 = vmul.f32 %v1078_v55, %v128_v37  ;;  %v150_v57 = vmul.f32 %v149_v39, %v1078_v55 }
  0xb1   :  { %v162_v59 = vsel %vm1083_vm3, %v159_v53, %v144_v56  ;;  %v163_v60 = vsel %vm1083_vm3, %v161_v54, %v150_v57 }
  0xb2   :  { %165 = vst [vmem:[#allocation4] sm:$0xff] %v162_v59 }
  0xb3   :  { %166 = vst [vmem:[#allocation5] sm:$0xff] %v163_v60  ;;  %v1100_v60 = vld [vmem:[%s1298_s0 + $0x8] sm:$0xff] }
  0xb4   :  { %v177_v62 = vsel %vm174_vm9, %v1100_v60, 0.0 }
  0xb9   :  { %v276_v0 = vld [vmem:[#allocation4 + $0x1] ss:$0 sm:$0xff]  ;;  %v300_v16 = vld [vmem:[#allocation4 + $0x2] ss:$0 sm:$0xff]  ;;  %v324_v31 = vld [vmem:[#allocation4 + $0x3] ss:$0 sm:$0xff] }
  0xba   :  { %v277_v1 = vld [vmem:[#allocation5 + $0x1] ss:$0 sm:$0xff]  ;;  %v278_v4 = vxor.u32 2147483648, %v276_v0  ;;  %v301_v17 = vld [vmem:[#allocation5 + $0x2] ss:$0 sm:$0xff]  ;;  %v302_v19 = vxor.u32 2147483648, %v300_v16 }
  0xbb   :  { %v279_v5 = vxor.u32 2147483648, %v277_v1  ;;  %v303_v21 = vxor.u32 2147483648, %v301_v17  ;;  %v325_v32 = vld [vmem:[#allocation5 + $0x3] ss:$0 sm:$0xff]  ;;  %v326_v35 = vxor.u32 2147483648, %v324_v31  ;;  %v74_v17 = vld [vmem:[%s1299_s1 + $0x8] sm:$0xff] }
  0xbc   :  { %v285_v6 = vmul.f32 %v278_v4, %v266_v63  ;;  %v288_v12 = vmul.f32 0.0, %v278_v4  ;;  %v327_v36 = vxor.u32 2147483648, %v325_v32  ;;  %v348_v44 = vld [vmem:[#allocation4 + $0x4] ss:$0 sm:$0xff]  ;;  %v349_v45 = vld [vmem:[#allocation5 + $0x4] ss:$0 sm:$0xff] }
  0xbd   :  { %v286_v9 = vmul.f32 0.0, %v279_v5  ;;  %v289_v13 = vmul.f32 %v279_v5, %v266_v63  ;;  %v350_v48 = vxor.u32 2147483648, %v348_v44  ;;  %v351_v49 = vxor.u32 2147483648, %v349_v45  ;;  %v373_v0 = vld [vmem:[#allocation5 + $0x5] ss:$0 sm:$0xff] }
  0xbf   :  { %v287_v10 = vsub.f32 %v285_v6, %v286_v9  ;;  %v290_v14 = vadd.f32 %v289_v13, %v288_v12  ;;  %v375_v6 = vxor.u32 2147483648, %v373_v0 }
  0xc1   :  { %292 = vadd.xlane.f32.xlu1 %v287_v10 }
  0xc9   :  { %294 = vadd.xlane.f32.xlu1 %v290_v14 }
 0x134   :  { %v293_v15 = vpop.xlane.xlu1 %292 }
 0x135   :  { %v296_v18 = vsel %vm282_vm6, %v293_v15, %v266_v63  ;;  %v372_v63 = vld [vmem:[#allocation4 + $0x5] ss:$0 sm:$0xff] }
 0x136   :  { %v309_v23 = vmul.f32 %v302_v19, %v296_v18  ;;  %v313_v28 = vmul.f32 %v303_v21, %v296_v18  ;;  %v374_v5 = vxor.u32 2147483648, %v372_v63 }
 0x13c   :  { %v295_v20 = vpop.xlane.xlu1 %294 }
 0x13d   :  { %v297_v22 = vsel %vm282_vm6, %v295_v20, 0.0  ;;  %v397_v20 = vld [vmem:[#allocation5 + $0x6] ss:$0 sm:$0xff] }
 0x13e   :  { %v310_v24 = vmul.f32 %v303_v21, %v297_v22  ;;  %v312_v27 = vmul.f32 %v302_v19, %v297_v22  ;;  %v396_v19 = vld [vmem:[#allocation4 + $0x6] ss:$0 sm:$0xff] }
 0x140   :  { %v311_v25 = vsub.f32 %v309_v23, %v310_v24  ;;  %v314_v29 = vadd.f32 %v313_v28, %v312_v27  ;;  %v398_v23 = vxor.u32 2147483648, %v396_v19  ;;  %v399_v24 = vxor.u32 2147483648, %v397_v20 }
 0x142   :  { %316 = vadd.xlane.f32.xlu2 %v311_v25 }
 0x14a   :  { %318 = vadd.xlane.f32.xlu2 %v314_v29 }
 0x1b5   :  { %v317_v30 = vpop.xlane.xlu2 %316 }
 0x1b6   :  { %v320_v33 = vsel %vm306_vm7, %v317_v30, %v296_v18  ;;  %v178_v18 = vsel %vm174_vm9, %v74_v17, 0.0 }
 0x1b7   :  { %v337_v39 = vmul.f32 %v327_v36, %v320_v33  ;;  %v333_v40 = vmul.f32 %v326_v35, %v320_v33 }
 0x1bd   :  { %v319_v34 = vpop.xlane.xlu2 %318 }
 0x1be   :  { %v321_v37 = vsel %vm306_vm7, %v319_v34, %v297_v22 }
 0x1bf   :  { %v336_v38 = vmul.f32 %v326_v35, %v321_v37  ;;  %v334_v41 = vmul.f32 %v327_v36, %v321_v37 }
 0x1c1   :  { %v338_v42 = vadd.f32 %v337_v39, %v336_v38  ;;  %v335_v43 = vsub.f32 %v333_v40, %v334_v41 }
 0x1c3   :  { %342 = vadd.xlane.f32.xlu1 %v338_v42  ;;  %340 = vadd.xlane.f32.xlu0 %v335_v43 }
 0x236   :  { %v343_v46 = vpop.xlane.xlu1 %342  ;;  %v341_v47 = vpop.xlane.xlu0 %340 }
 0x237   :  { %v345_v50 = vsel %vm330_vm8, %v343_v46, %v321_v37  ;;  %v344_v51 = vsel %vm330_vm8, %v341_v47, %v320_v33 }
 0x238   :  { %v360_v52 = vmul.f32 %v350_v48, %v345_v50  ;;  %v361_v53 = vmul.f32 %v351_v49, %v344_v51  ;;  %v357_v54 = vmul.f32 %v350_v48, %v344_v51  ;;  %v358_v56 = vmul.f32 %v351_v49, %v345_v50 }
 0x23a   :  { %v362_v57 = vadd.f32 %v361_v53, %v360_v52  ;;  %v359_v59 = vsub.f32 %v357_v54, %v358_v56 }
 0x23c   :  { %366 = vadd.xlane.f32.xlu0 %v362_v57  ;;  %364 = vadd.xlane.f32.xlu2 %v359_v59 }
 0x244   :  { %179 = vadd.xlane.f32.xlu0 %v177_v62 }
 0x2af   :  { %v367_v1 = vpop.xlane.xlu0 %366  ;;  %v365_v4 = vpop.xlane.xlu2 %364 }
 0x2b0   :  { %v369_v9 = vsel %vm354_vm10, %v367_v1, %v345_v50  ;;  %v368_v3 = vsel %vm354_vm10, %v365_v4, %v344_v51  ;;  %v185_v50 = vsel %vm184_vm4, %v1100_v60, 0.0  ;;  %v186_v51 = vsel %vm184_vm4, %v74_v17, 0.0 }
 0x2b1   :  { %v384_v10 = vmul.f32 %v374_v5, %v369_v9  ;;  %v385_v12 = vmul.f32 %v375_v6, %v368_v3  ;;  %v381_v13 = vmul.f32 %v374_v5, %v368_v3  ;;  %v382_v14 = vmul.f32 %v375_v6, %v369_v9 }
 0x2b2   :  { %vm247_vm7 = vcmp.eq.f32.partialorder %v185_v50, 0.0  ;;  %vm249_vm8 = vcmp.eq.f32.partialorder %v186_v51, 0.0  ;;  %vm426_vm4 = vcmp.eq.s32.totalorder %v1029_v2, 7 }
 0x2b3   :  { %v386_v15 = vadd.f32 %v385_v12, %v384_v10  ;;  %v383_v16 = vsub.f32 %v381_v13, %v382_v14  ;;  %v243_v12 = vand.u32 2147483648, %v185_v50  ;;  %v245_v13 = vand.u32 2147483648, %v186_v51 }
 0x2b5   :  { %390 = vadd.xlane.f32.xlu2 %v386_v15  ;;  %388 = vadd.xlane.f32.xlu1 %v383_v16  ;;  %v246_v19 = vor.u32 inf, %v245_v13 }
 0x2b7   :  { %v1127_v34 = vpop.xlane.xlu0 %179 }
 0x2b8   :  { %v189_v35 = vand.u32 2147483647, %v1127_v34  ;;  %vm240_vm10 = vcmp.eq.f32.partialorder %v1127_v34, 0.0 }
 0x2bd   :  { %181 = vadd.xlane.f32.xlu1 %v178_v18  ;;  %v244_v18 = vor.u32 inf, %v243_v12 }
 0x328   :  { %v391_v21 = vpop.xlane.xlu2 %390  ;;  %v389_v22 = vpop.xlane.xlu1 %388 }
 0x329   :  { %v1119_v25 = vsel %vm378_vm11, %v391_v21, %v369_v9  ;;  %v1121_v27 = vsel %vm378_vm11, %v389_v22, %v368_v3 }
 0x32a   :  { %v408_v28 = vmul.f32 %v398_v23, %v1119_v25  ;;  %v409_v29 = vmul.f32 %v399_v24, %v1121_v27  ;;  %v405_v30 = vmul.f32 %v398_v23, %v1121_v27  ;;  %v406_v31 = vmul.f32 %v399_v24, %v1119_v25 }
 0x32b   :  { %v248_v23 = vsel %vm247_vm7, nan, %v244_v18  ;;  %v250_v24 = vsel %vm249_vm8, nan, %v246_v19  ;;  %vm567_vm7 = vcmp.eq.s32.totalorder %v1029_v2, 11  ;;  %vm606_vm8 = vcmp.eq.s32.totalorder %v1029_v2, 12 }
 0x32c   :  { %v410_v32 = vadd.f32 %v409_v29, %v408_v28  ;;  %v407_v33 = vsub.f32 %v405_v30, %v406_v31 }
 0x32e   :  { %414 = vadd.xlane.f32.xlu0 %v410_v32  ;;  %412 = vadd.xlane.f32.xlu2 %v407_v33 }
 0x330   :  { %v1130_v36 = vpop.xlane.xlu1 %181 }
 0x331   :  { %v190_v37 = vand.u32 2147483647, %v1130_v36 }
 0x333   :  { %vm1133_vm12 = vcmp.lt.f32.partialorder %v189_v35, %v190_v37  ;;  %v420_v35 = vld [vmem:[#allocation4 + $0x7] ss:$0 sm:$0xff]  ;;  %v421_v37 = vld [vmem:[#allocation5 + $0x7] ss:$0 sm:$0xff] }
 0x334   :  { %v193_v39 = vsel %vm1133_vm12, %v1130_v36, %v1127_v34  ;;  %v192_v48 = vsel %vm1133_vm12, %v1127_v34, %v1130_v36 }
 0x335   :  { %1000 = vrcp.f32 %v193_v39  ;;  %v205_v42 = vand.u32 2147483648, %v193_v39  ;;  %vm199_vm13 = vweird.f32 %v193_v39  ;;  %v203_v44 = vand.u32 2147483647, %v193_v39 }
 0x337   :  { %v206_v46 = vor.u32 1.1754944e-38, %v205_v42  ;;  %vm204_vm5 = vcmp.eq.f32.partialorder %v203_v44, 8.507059e+37  ;;  %v423_v42 = vxor.u32 2147483648, %v421_v37 }
 0x33b   :  { %v1001_v40 = vpop.eup %1000 }
 0x33c   :  { %v195_v41 = vmul.f32 %v1001_v40, %v193_v39  ;;  %vm200_vm14 = vweird.f32 %v1001_v40 }
 0x33d   :  { %vm201_vm0 = vmor %vm199_vm13, %vm200_vm14  ;;  %vm241_vm13 = vcmp.eq.f32.partialorder %v1130_v36, 0.0 }
 0x33e   :  { %v196_v43 = vsub.f32 1.0, %v195_v41  ;;  %vm1170_vm14 = vmand %vm240_vm10, %vm241_vm13  ;;  %v422_v41 = vxor.u32 2147483648, %v420_v35  ;;  %vm684_vm10 = vcmp.eq.s32.totalorder %v1029_v2, 14  ;;  %vm822_vm13 = vweird.f32 %v1040_v8 }
 0x340   :  { %v197_v45 = vmul.f32 %v1001_v40, %v196_v43 }
 0x342   :  { %v198_v47 = vadd.f32 %v1001_v40, %v197_v45 }
 0x344   :  { %v202_v49 = vsel %vm201_vm0, %v1001_v40, %v198_v47  ;;  %vm272_vm0 = vcmp.eq.s32.totalorder %v1029_v2, %v1103_v61 }
 0x345   :  { %v207_v52 = vsel %vm204_vm5, %v206_v46, %v202_v49  ;;  %vm450_vm5 = vcmp.eq.s32.totalorder %v1029_v2, 8 }
 0x346   :  { %v1150_v53 = vmul.f32 %v207_v52, %v192_v48 }
 0x348   :  { %v209_v54 = vmul.f32 %v1150_v53, %v1127_v34  ;;  %v211_v56 = vmul.f32 %v1150_v53, %v1130_v36  ;;  %v213_v57 = vmul.f32 %v1150_v53, %v185_v50  ;;  %v215_v59 = vmul.f32 %v1150_v53, %v186_v51 }
 0x34a   :  { %v210_v62 = vadd.f32 %v209_v54, %v1130_v36  ;;  %v212_v63 = vadd.f32 %v211_v56, %v1127_v34  ;;  %v214_v0 = vadd.f32 %v213_v57, %v186_v51  ;;  %v216_v60 = vadd.f32 %v215_v59, %v185_v50 }
 0x34b   :  { %v235_v1 = vsub.f32 %v215_v59, %v185_v50  ;;  %v237_v4 = vsub.f32 %v186_v51, %v213_v57  ;;  %v1005_v57 = vmov 0.0  }
 0x34c   :  { %v217_v5 = vsel %vm1133_vm12, %v214_v0, %v216_v60  ;;  %v218_v6 = vsel %vm1133_vm12, %v210_v62, %v212_v63  ;;  %v273_v59 = vsel %vm272_vm0, -1.0, %v1005_v57 }
 0x34d   :  { %1002 = vrcp.f32 %v218_v6  ;;  %v238_v9 = vsel %vm1133_vm12, %v235_v1, %v237_v4  ;;  %v230_v14 = vand.u32 2147483648, %v218_v6  ;;  %vm224_vm2 = vweird.f32 %v218_v6 }
 0x34e   :  { %v228_v16 = vand.u32 2147483647, %v218_v6 }
 0x34f   :  { %v231_v20 = vor.u32 1.1754944e-38, %v230_v14 }
 0x350   :  { %vm229_vm11 = vcmp.eq.f32.partialorder %v228_v16, 8.507059e+37 }
 0x353   :  { %v1003_v3 = vpop.eup %1002 }
 0x354   :  { %v220_v10 = vmul.f32 %v1003_v3, %v218_v6  ;;  %vm225_vm6 = vweird.f32 %v1003_v3 }
 0x355   :  { %vm226_vm9 = vmor %vm224_vm2, %vm225_vm6  ;;  %vm489_vm2 = vcmp.eq.s32.totalorder %v1029_v2, 9  ;;  %vm528_vm6 = vcmp.eq.s32.totalorder %v1029_v2, 10 }
 0x356   :  { %v221_v15 = vsub.f32 1.0, %v220_v10 }
 0x358   :  { %v222_v17 = vmul.f32 %v1003_v3, %v221_v15 }
 0x35a   :  { %v223_v21 = vadd.f32 %v1003_v3, %v222_v17 }
 0x35c   :  { %v227_v22 = vsel %vm226_vm9, %v1003_v3, %v223_v21  ;;  %vm645_vm9 = vcmp.eq.s32.totalorder %v1029_v2, 13 }
 0x35d   :  { %v1168_v28 = vsel %vm229_vm11, %v231_v20, %v227_v22  ;;  %vm723_vm11 = vcmp.eq.s32.totalorder %v1029_v2, 15 }
 0x35e   :  { %v233_v30 = vmul.f32 %v1168_v28, %v217_v5  ;;  %v239_v31 = vmul.f32 %v238_v9, %v1168_v28 }
 0x360   :  { %v251_v32 = vsel %vm1170_vm14, %v248_v23, %v233_v30  ;;  %v252_v33 = vsel %vm1170_vm14, %v250_v24, %v239_v31 }
 0x361   :  { %254 = vst [vmem:[#allocation4 + $0x8] sm:$0xff] %v251_v32 }
 0x362   :  { %255 = vst [vmem:[#allocation5 + $0x8] sm:$0xff] %v252_v33 }
 0x368   :  { %v444_v45 = vld [vmem:[#allocation4 + $0x8] ss:$0 sm:$0xff]  ;;  %v483_v14 = vld [vmem:[#allocation4 + $0x9] ss:$0 sm:$0xff] }
 0x369   :  { %v445_v46 = vld [vmem:[#allocation5 + $0x8] ss:$0 sm:$0xff]  ;;  %v446_v54 = vxor.u32 2147483648, %v444_v45  ;;  %v484_v15 = vld [vmem:[#allocation5 + $0x9] ss:$0 sm:$0xff]  ;;  %v485_v18 = vxor.u32 2147483648, %v483_v14 }
 0x36a   :  { %v447_v56 = vxor.u32 2147483648, %v445_v46  ;;  %v486_v19 = vxor.u32 2147483648, %v484_v15  ;;  %v522_v46 = vld [vmem:[#allocation4 + $0xa] ss:$0 sm:$0xff] }
 0x36b   :  { %v471_v10 = vmul.f32 0.0, %v446_v54 }
 0x36c   :  { %v469_v62 = vmul.f32 0.0, %v447_v56  ;;  %v472_v12 = vmul.f32 %v447_v56, %v273_v59 }
 0x36e   :  { %v473_v13 = vadd.f32 %v472_v12, %v471_v10  ;;  %v561_v10 = vld [vmem:[#allocation4 + $0xb] ss:$0 sm:$0xff]  ;;  %v562_v12 = vld [vmem:[#allocation5 + $0xb] ss:$0 sm:$0xff] }
 0x36f   :  { %v563_v15 = vxor.u32 2147483648, %v561_v10 }
 0x3a1   :  { %v415_v39 = vpop.xlane.xlu0 %414  ;;  %v413_v40 = vpop.xlane.xlu2 %412 }
 0x3a2   :  { %v417_v43 = vsel %vm402_vm15, %v415_v39, %v1119_v25  ;;  %v416_v44 = vsel %vm402_vm15, %v413_v40, %v1121_v27  ;;  %v468_v25 = vmul.f32 %v446_v54, %v273_v59 }
 0x3a3   :  { %v432_v47 = vmul.f32 %v422_v41, %v417_v43  ;;  %v433_v48 = vmul.f32 %v423_v42, %v416_v44  ;;  %v429_v49 = vmul.f32 %v422_v41, %v416_v44  ;;  %v430_v50 = vmul.f32 %v423_v42, %v417_v43 }
 0x3a4   :  { %v470_v27 = vsub.f32 %v468_v25, %v469_v62 }
 0x3a5   :  { %v434_v51 = vadd.f32 %v433_v48, %v432_v47  ;;  %v431_v52 = vsub.f32 %v429_v49, %v430_v50  ;;  %v523_v47 = vld [vmem:[#allocation5 + $0xa] ss:$0 sm:$0xff]  ;;  %v524_v50 = vxor.u32 2147483648, %v522_v46 }
 0x3a7   :  { %438 = vadd.xlane.f32.xlu2 %v434_v51  ;;  %436 = vadd.xlane.f32.xlu1 %v431_v52  ;;  %v525_v51 = vxor.u32 2147483648, %v523_v47 }
 0x3af   :  { %475 = vadd.xlane.f32.xlu2 %v470_v27 }
 0x41a   :  { %v439_v61 = vpop.xlane.xlu2 %438  ;;  %v437_v63 = vpop.xlane.xlu1 %436 }
 0x41b   :  { %v441_v0 = vsel %vm426_vm4, %v439_v61, %v417_v43  ;;  %v440_v60 = vsel %vm426_vm4, %v437_v63, %v416_v44  ;;  %vm821_vm4 = vweird.f32 %v1038_v7 }
 0x41c   :  { %v456_v1 = vmul.f32 %v446_v54, %v441_v0  ;;  %v457_v4 = vmul.f32 %v447_v56, %v440_v60  ;;  %v453_v5 = vmul.f32 %v446_v54, %v440_v60  ;;  %v454_v6 = vmul.f32 %v447_v56, %v441_v0 }
 0x41e   :  { %v458_v9 = vadd.f32 %v457_v4, %v456_v1  ;;  %v455_v3 = vsub.f32 %v453_v5, %v454_v6 }
 0x420   :  { %462 = vadd.xlane.f32.xlu1 %v458_v9  ;;  %460 = vadd.xlane.f32.xlu0 %v455_v3 }
 0x422   :  { %v476_v31 = vpop.xlane.xlu2 %475 }
 0x423   :  { %v479_v35 = vsel %vm450_vm5, %v476_v31, %v273_v59 }
 0x424   :  { %v511_v42 = vmul.f32 %v486_v19, %v479_v35  ;;  %v507_v43 = vmul.f32 %v485_v18, %v479_v35 }
 0x428   :  { %477 = vadd.xlane.f32.xlu0 %v473_v13 }
 0x493   :  { %v463_v16 = vpop.xlane.xlu1 %462  ;;  %v461_v17 = vpop.xlane.xlu0 %460 }
 0x494   :  { %v465_v20 = vsel %vm450_vm5, %v463_v16, %v441_v0  ;;  %v464_v21 = vsel %vm450_vm5, %v461_v17, %v440_v60  ;;  %v564_v16 = vxor.u32 2147483648, %v562_v12 }
 0x495   :  { %v495_v22 = vmul.f32 %v485_v18, %v465_v20  ;;  %v496_v23 = vmul.f32 %v486_v19, %v464_v21  ;;  %v492_v24 = vmul.f32 %v485_v18, %v464_v21  ;;  %v493_v30 = vmul.f32 %v486_v19, %v465_v20 }
 0x497   :  { %v497_v32 = vadd.f32 %v496_v23, %v495_v22  ;;  %v494_v33 = vsub.f32 %v492_v24, %v493_v30 }
 0x499   :  { %501 = vadd.xlane.f32.xlu2 %v497_v32  ;;  %499 = vadd.xlane.f32.xlu1 %v494_v33 }
 0x49b   :  { %v478_v37 = vpop.xlane.xlu0 %477 }
 0x49c   :  { %v480_v39 = vsel %vm450_vm5, %v478_v37, 0.0  ;;  %vm823_vm5 = vmor %vm821_vm4, %vm822_vm13 }
 0x49d   :  { %v508_v40 = vmul.f32 %v486_v19, %v480_v39  ;;  %v510_v41 = vmul.f32 %v485_v18, %v480_v39 }
 0x49f   :  { %v512_v44 = vadd.f32 %v511_v42, %v510_v41  ;;  %v509_v45 = vsub.f32 %v507_v43, %v508_v40  ;;  %v600_v43 = vld [vmem:[#allocation4 + $0xc] ss:$0 sm:$0xff] }
 0x4a0   :  { %v602_v47 = vxor.u32 2147483648, %v600_v43 }
 0x4a1   :  { %516 = vadd.xlane.f32.xlu1 %v512_v44  ;;  %514 = vadd.xlane.f32.xlu0 %v509_v45  ;;  %v601_v44 = vld [vmem:[#allocation5 + $0xc] ss:$0 sm:$0xff] }
 0x50c   :  { %v502_v48 = vpop.xlane.xlu2 %501  ;;  %v500_v49 = vpop.xlane.xlu1 %499 }
 0x50d   :  { %v504_v52 = vsel %vm489_vm2, %v502_v48, %v465_v20  ;;  %v503_v54 = vsel %vm489_vm2, %v500_v49, %v464_v21  ;;  %v603_v48 = vxor.u32 2147483648, %v601_v44 }
 0x50e   :  { %v531_v56 = vmul.f32 %v524_v50, %v503_v54  ;;  %v532_v57 = vmul.f32 %v525_v51, %v504_v52  ;;  %v534_v59 = vmul.f32 %v524_v50, %v504_v52  ;;  %v535_v25 = vmul.f32 %v525_v51, %v503_v54 }
 0x510   :  { %v533_v62 = vsub.f32 %v531_v56, %v532_v57  ;;  %v536_v27 = vadd.f32 %v535_v25, %v534_v59 }
 0x512   :  { %538 = vadd.xlane.f32.xlu2 %v533_v62  ;;  %540 = vadd.xlane.f32.xlu0 %v536_v27 }
 0x514   :  { %v517_v61 = vpop.xlane.xlu1 %516  ;;  %v515_v63 = vpop.xlane.xlu0 %514 }
 0x515   :  { %v519_v0 = vsel %vm489_vm2, %v517_v61, %v480_v39  ;;  %v518_v60 = vsel %vm489_vm2, %v515_v63, %v479_v35 }
 0x516   :  { %v549_v1 = vmul.f32 %v524_v50, %v519_v0  ;;  %v550_v4 = vmul.f32 %v525_v51, %v518_v60  ;;  %v546_v5 = vmul.f32 %v524_v50, %v518_v60  ;;  %v547_v6 = vmul.f32 %v525_v51, %v519_v0 }
 0x518   :  { %v551_v9 = vadd.f32 %v550_v4, %v549_v1  ;;  %v548_v3 = vsub.f32 %v546_v5, %v547_v6  ;;  %v639_v6 = vld [vmem:[#allocation4 + $0xd] ss:$0 sm:$0xff] }
 0x519   :  { %v641_v12 = vxor.u32 2147483648, %v639_v6 }
 0x51a   :  { %555 = vadd.xlane.f32.xlu2 %v551_v9  ;;  %553 = vadd.xlane.f32.xlu1 %v548_v3  ;;  %v640_v9 = vld [vmem:[#allocation5 + $0xd] ss:$0 sm:$0xff] }
 0x585   :  { %v539_v13 = vpop.xlane.xlu2 %538  ;;  %v541_v14 = vpop.xlane.xlu0 %540 }
 0x586   :  { %v542_v17 = vsel %vm528_vm6, %v539_v13, %v503_v54  ;;  %v543_v18 = vsel %vm528_vm6, %v541_v14, %v504_v52  ;;  %v642_v13 = vxor.u32 2147483648, %v640_v9 }
 0x587   :  { %v573_v19 = vmul.f32 %v563_v15, %v543_v18  ;;  %v574_v20 = vmul.f32 %v564_v16, %v542_v17  ;;  %v570_v21 = vmul.f32 %v563_v15, %v542_v17  ;;  %v571_v22 = vmul.f32 %v564_v16, %v543_v18 }
 0x589   :  { %v575_v23 = vadd.f32 %v574_v20, %v573_v19  ;;  %v572_v24 = vsub.f32 %v570_v21, %v571_v22 }
 0x58b   :  { %579 = vadd.xlane.f32.xlu1 %v575_v23  ;;  %577 = vadd.xlane.f32.xlu0 %v572_v24 }
 0x58d   :  { %v556_v30 = vpop.xlane.xlu2 %555  ;;  %v554_v31 = vpop.xlane.xlu1 %553 }
 0x58e   :  { %v558_v32 = vsel %vm528_vm6, %v556_v30, %v519_v0  ;;  %v557_v33 = vsel %vm528_vm6, %v554_v31, %v518_v60 }
 0x58f   :  { %v585_v35 = vmul.f32 %v563_v15, %v557_v33  ;;  %v586_v37 = vmul.f32 %v564_v16, %v558_v32  ;;  %v588_v39 = vmul.f32 %v563_v15, %v558_v32  ;;  %v589_v40 = vmul.f32 %v564_v16, %v557_v33 }
 0x591   :  { %v587_v41 = vsub.f32 %v585_v35, %v586_v37  ;;  %v590_v42 = vadd.f32 %v589_v40, %v588_v39  ;;  %v678_v40 = vld [vmem:[#allocation4 + $0xe] ss:$0 sm:$0xff] }
 0x592   :  { %v680_v44 = vxor.u32 2147483648, %v678_v40 }
 0x593   :  { %592 = vadd.xlane.f32.xlu2 %v587_v41  ;;  %594 = vadd.xlane.f32.xlu0 %v590_v42  ;;  %v679_v41 = vld [vmem:[#allocation5 + $0xe] ss:$0 sm:$0xff] }
 0x5fe   :  { %v580_v45 = vpop.xlane.xlu1 %579  ;;  %v578_v46 = vpop.xlane.xlu0 %577 }
 0x5ff   :  { %v582_v49 = vsel %vm567_vm7, %v580_v45, %v543_v18  ;;  %v581_v50 = vsel %vm567_vm7, %v578_v46, %v542_v17  ;;  %v681_v45 = vxor.u32 2147483648, %v679_v41 }
 0x600   :  { %v612_v51 = vmul.f32 %v602_v47, %v582_v49  ;;  %v613_v52 = vmul.f32 %v603_v48, %v581_v50  ;;  %v609_v54 = vmul.f32 %v602_v47, %v581_v50  ;;  %v610_v56 = vmul.f32 %v603_v48, %v582_v49 }
 0x602   :  { %v614_v57 = vadd.f32 %v613_v52, %v612_v51  ;;  %v611_v59 = vsub.f32 %v609_v54, %v610_v56 }
 0x604   :  { %618 = vadd.xlane.f32.xlu2 %v614_v57  ;;  %616 = vadd.xlane.f32.xlu1 %v611_v59 }
 0x606   :  { %v593_v25 = vpop.xlane.xlu2 %592  ;;  %v595_v62 = vpop.xlane.xlu0 %594 }
 0x607   :  { %v596_v27 = vsel %vm567_vm7, %v593_v25, %v557_v33  ;;  %v597_v61 = vsel %vm567_vm7, %v595_v62, %v558_v32 }
 0x608   :  { %v627_v63 = vmul.f32 %v602_v47, %v597_v61  ;;  %v628_v0 = vmul.f32 %v603_v48, %v596_v27  ;;  %v624_v60 = vmul.f32 %v602_v47, %v596_v27  ;;  %v625_v1 = vmul.f32 %v603_v48, %v597_v61 }
 0x60a   :  { %v629_v4 = vadd.f32 %v628_v0, %v627_v63  ;;  %v626_v5 = vsub.f32 %v624_v60, %v625_v1  ;;  %v717_v1 = vld [vmem:[#allocation4 + $0xf] ss:$0 sm:$0xff] }
 0x60b   :  { %v719_v9 = vxor.u32 2147483648, %v717_v1 }
 0x60c   :  { %633 = vadd.xlane.f32.xlu1 %v629_v4  ;;  %631 = vadd.xlane.f32.xlu0 %v626_v5  ;;  %v718_v4 = vld [vmem:[#allocation5 + $0xf] ss:$0 sm:$0xff] }
 0x677   :  { %v619_v3 = vpop.xlane.xlu2 %618  ;;  %v617_v10 = vpop.xlane.xlu1 %616 }
 0x678   :  { %v621_v14 = vsel %vm606_vm8, %v619_v3, %v582_v49  ;;  %v620_v15 = vsel %vm606_vm8, %v617_v10, %v581_v50  ;;  %v720_v3 = vxor.u32 2147483648, %v718_v4 }
 0x679   :  { %v648_v16 = vmul.f32 %v641_v12, %v620_v15  ;;  %v649_v17 = vmul.f32 %v642_v13, %v621_v14  ;;  %v651_v18 = vmul.f32 %v641_v12, %v621_v14  ;;  %v652_v19 = vmul.f32 %v642_v13, %v620_v15 }
 0x67b   :  { %v650_v20 = vsub.f32 %v648_v16, %v649_v17  ;;  %v653_v21 = vadd.f32 %v652_v19, %v651_v18 }
 0x67d   :  { %655 = vadd.xlane.f32.xlu2 %v650_v20  ;;  %657 = vadd.xlane.f32.xlu0 %v653_v21 }
 0x67f   :  { %v634_v22 = vpop.xlane.xlu1 %633  ;;  %v632_v23 = vpop.xlane.xlu0 %631 }
 0x680   :  { %v636_v24 = vsel %vm606_vm8, %v634_v22, %v597_v61  ;;  %v635_v30 = vsel %vm606_vm8, %v632_v23, %v596_v27 }
 0x681   :  { %v666_v31 = vmul.f32 %v641_v12, %v636_v24  ;;  %v667_v32 = vmul.f32 %v642_v13, %v635_v30  ;;  %v663_v33 = vmul.f32 %v641_v12, %v635_v30  ;;  %v664_v35 = vmul.f32 %v642_v13, %v636_v24 }
 0x683   :  { %v668_v37 = vadd.f32 %v667_v32, %v666_v31  ;;  %v665_v39 = vsub.f32 %v663_v33, %v664_v35 }
 0x685   :  { %672 = vadd.xlane.f32.xlu2 %v668_v37  ;;  %670 = vadd.xlane.f32.xlu1 %v665_v39 }
 0x6f0   :  { %v656_v42 = vpop.xlane.xlu2 %655  ;;  %v658_v43 = vpop.xlane.xlu0 %657 }
 0x6f1   :  { %v659_v46 = vsel %vm645_vm9, %v656_v42, %v620_v15  ;;  %v660_v47 = vsel %vm645_vm9, %v658_v43, %v621_v14 }
 0x6f2   :  { %v690_v48 = vmul.f32 %v680_v44, %v660_v47  ;;  %v691_v49 = vmul.f32 %v681_v45, %v659_v46  ;;  %v687_v50 = vmul.f32 %v680_v44, %v659_v46  ;;  %v688_v51 = vmul.f32 %v681_v45, %v660_v47 }
 0x6f4   :  { %v692_v52 = vadd.f32 %v691_v49, %v690_v48  ;;  %v689_v54 = vsub.f32 %v687_v50, %v688_v51 }
 0x6f6   :  { %696 = vadd.xlane.f32.xlu1 %v692_v52  ;;  %694 = vadd.xlane.f32.xlu0 %v689_v54 }
 0x6f8   :  { %v673_v56 = vpop.xlane.xlu2 %672  ;;  %v671_v57 = vpop.xlane.xlu1 %670 }
 0x6f9   :  { %v675_v59 = vsel %vm645_vm9, %v673_v56, %v636_v24  ;;  %v674_v25 = vsel %vm645_vm9, %v671_v57, %v635_v30 }
 0x6fa   :  { %v702_v62 = vmul.f32 %v680_v44, %v674_v25  ;;  %v703_v27 = vmul.f32 %v681_v45, %v675_v59  ;;  %v705_v61 = vmul.f32 %v680_v44, %v675_v59  ;;  %v706_v63 = vmul.f32 %v681_v45, %v674_v25 }
 0x6fc   :  { %v704_v0 = vsub.f32 %v702_v62, %v703_v27  ;;  %v707_v60 = vadd.f32 %v706_v63, %v705_v61 }
 0x6fe   :  { %709 = vadd.xlane.f32.xlu2 %v704_v0  ;;  %711 = vadd.xlane.f32.xlu0 %v707_v60 }
 0x769   :  { %v697_v5 = vpop.xlane.xlu1 %696  ;;  %v695_v6 = vpop.xlane.xlu0 %694 }
 0x76a   :  { %v699_v10 = vsel %vm684_vm10, %v697_v5, %v660_v47  ;;  %v698_v12 = vsel %vm684_vm10, %v695_v6, %v659_v46 }
 0x76b   :  { %v729_v13 = vmul.f32 %v719_v9, %v699_v10  ;;  %v730_v14 = vmul.f32 %v720_v3, %v698_v12  ;;  %v726_v15 = vmul.f32 %v719_v9, %v698_v12  ;;  %v727_v16 = vmul.f32 %v720_v3, %v699_v10 }
 0x76d   :  { %v731_v17 = vadd.f32 %v730_v14, %v729_v13  ;;  %v728_v18 = vsub.f32 %v726_v15, %v727_v16 }
 0x76f   :  { %735 = vadd.xlane.f32.xlu2 %v731_v17  ;;  %733 = vadd.xlane.f32.xlu1 %v728_v18 }
 0x771   :  { %v710_v19 = vpop.xlane.xlu2 %709  ;;  %v712_v20 = vpop.xlane.xlu0 %711 }
 0x772   :  { %v713_v21 = vsel %vm684_vm10, %v710_v19, %v674_v25  ;;  %v714_v22 = vsel %vm684_vm10, %v712_v20, %v675_v59 }
 0x773   :  { %v744_v23 = vmul.f32 %v719_v9, %v714_v22  ;;  %v745_v24 = vmul.f32 %v720_v3, %v713_v21  ;;  %v741_v30 = vmul.f32 %v719_v9, %v713_v21  ;;  %v742_v31 = vmul.f32 %v720_v3, %v714_v22 }
 0x775   :  { %v746_v32 = vadd.f32 %v745_v24, %v744_v23  ;;  %v743_v33 = vsub.f32 %v741_v30, %v742_v31 }
 0x777   :  { %750 = vadd.xlane.f32.xlu1 %v746_v32  ;;  %748 = vadd.xlane.f32.xlu0 %v743_v33 }
 0x7e2   :  { %v736_v35 = vpop.xlane.xlu2 %735  ;;  %v734_v37 = vpop.xlane.xlu1 %733 }
 0x7e3   :  { %v738_v39 = vsel %vm723_vm11, %v736_v35, %v699_v10  ;;  %v737_v40 = vsel %vm723_vm11, %v734_v37, %v698_v12 }
 0x7e4   :  { %v782_v41 = vmul.f32 %v738_v39, %v1061_v26  ;;  %v812_v42 = vand.u32 2147483648, %v738_v39  ;;  %v780_v43 = vmul.f32 %v737_v40, %v1061_v26  ;;  %v810_v44 = vand.u32 2147483648, %v737_v40 }
 0x7e5   :  { %vm814_vm15 = vcmp.eq.f32.partialorder %v737_v40, 0.0  ;;  %vm816_vm0 = vcmp.eq.f32.partialorder %v738_v39, 0.0 }
 0x7e6   :  { %v781_v45 = vadd.f32 %v780_v43, %v738_v39  ;;  %v783_v46 = vadd.f32 %v782_v41, %v737_v40  ;;  %v802_v47 = vsub.f32 %v782_v41, %v737_v40  ;;  %v813_v48 = vor.u32 inf, %v812_v42 }
 0x7e7   :  { %v804_v49 = vsub.f32 %v738_v39, %v780_v43  ;;  %v811_v50 = vor.u32 inf, %v810_v44 }
 0x7e8   :  { %v784_v51 = vsel %vm1044_vm1, %v781_v45, %v783_v46  ;;  %v817_v25 = vsel %vm816_vm0, nan, %v813_v48 }
 0x7e9   :  { %v800_v52 = vmul.f32 %v784_v51, %v1078_v55  ;;  %v805_v54 = vsel %vm1044_vm1, %v802_v47, %v804_v49  ;;  %v815_v56 = vsel %vm814_vm15, nan, %v811_v50  ;;  %vm895_vm1 = vweird.f32 %v1127_v34 }
 0x7ea   :  { %v806_v26 = vmul.f32 %v805_v54, %v1078_v55  ;;  %v751_v57 = vpop.xlane.xlu1 %750  ;;  %v749_v59 = vpop.xlane.xlu0 %748 }
 0x7eb   :  { %v818_v8 = vsel %vm1083_vm3, %v815_v56, %v800_v52  ;;  %v753_v62 = vsel %vm723_vm11, %v751_v57, %v714_v22  ;;  %v752_v11 = vsel %vm723_vm11, %v749_v59, %v713_v21 }
 0x7ec   :  { %v819_v27 = vsel %vm1083_vm3, %v817_v25, %v806_v26  ;;  %v824_v7 = vsel %vm823_vm5, %v737_v40, %v818_v8  ;;  %v856_v55 = vmul.f32 %v753_v62, %v1150_v53  ;;  %v886_v61 = vand.u32 2147483648, %v753_v62 }
 0x7ed   :  { %v825_v63 = vsel %vm823_vm5, %v738_v39, %v819_v27  ;;  %935 = vst [vmem:[%s1300_s2] sm:$0xff] %v824_v7  ;;  %v854_v0 = vmul.f32 %v752_v11, %v1150_v53  ;;  %v884_v60 = vand.u32 2147483648, %v752_v11  ;;  %vm896_vm3 = vweird.f32 %v1130_v36 }
 0x7ee   :  { %972 = vst [vmem:[%s1301_s3] sm:$0xff] %v825_v63  ;;  %v857_v2 = vadd.f32 %v856_v55, %v752_v11  ;;  %v876_v1 = vsub.f32 %v856_v55, %v752_v11  ;;  %v887_v58 = vor.u32 inf, %v886_v61  ;;  %vm890_vm2 = vcmp.eq.f32.partialorder %v753_v62, 0.0  ;;  %vm897_vm7 = vmor %vm895_vm1, %vm896_vm3 }
 0x7ef   :  { %v855_v4 = vadd.f32 %v854_v0, %v753_v62  ;;  %v878_v5 = vsub.f32 %v753_v62, %v854_v0  ;;  %v885_v6 = vor.u32 inf, %v884_v60  ;;  %vm888_vm6 = vcmp.eq.f32.partialorder %v752_v11, 0.0 }
 0x7f0   :  { %v891_v12 = vsel %vm890_vm2, nan, %v887_v58 }
 0x7f1   :  { %v858_v9 = vsel %vm1133_vm12, %v855_v4, %v857_v2  ;;  %v879_v53 = vsel %vm1133_vm12, %v876_v1, %v878_v5  ;;  %v889_v13 = vsel %vm888_vm6, nan, %v885_v6 }
 0x7f2   :  { %v874_v3 = vmul.f32 %v858_v9, %v1168_v28  ;;  %v880_v10 = vmul.f32 %v879_v53, %v1168_v28 }
 0x7f4   :  { %v892_v34 = vsel %vm1170_vm14, %v889_v13, %v874_v3  ;;  %v893_v36 = vsel %vm1170_vm14, %v891_v12, %v880_v10 }
 0x7f5   :  { %v898_v14 = vsel %vm897_vm7, %v752_v11, %v892_v34  ;;  %v899_v15 = vsel %vm897_vm7, %v753_v62, %v893_v36 }
 0x7f6   :  { %937 = vst [vmem:[%s1300_s2 + $0x8] sm:$0xff] %v898_v14 }
 0x7f7   :  { %974 = vst [vmem:[%s1301_s3 + $0x8] sm:$0xff] %v899_v15 }

// kernel: custom-call.7
= control target key start
LH: loop header
LB: loop body
LE: loop exit
PB: predicated region body
PF: predicated region fallthrough
CT: control target
= control target key end

     0   :  { %s105_s0 = inlined_call_operand.vmem [shape: f32[2,16], index: 0, kind: input, shape index: {}]   ;;  %s106_s1 = inlined_call_operand.vmem [shape: f32[2,16], index: 1, kind: input, shape index: {}]   ;;  %s107_s2 = inlined_call_operand.hbm [shape: c64[2,16], index: 2, kind: output, shape index: {}]  }
   0x1   :  { %s3_s11 = scalar_lea.hbm %s107_s2, 2 }
   0x2   :  { %4 = vsyncpa [#allocation0], 0  ;;  %s6_s14 = sshll.u32 %s105_s0, 4  ;;  %s8_s17 = sshll.u32 %s107_s2, 4  ;;  %s7_s14 = int_to_ptr.vmem [resolvable:$true] %s6_s14  ;;  %s9_s17 = int_to_ptr.hbm [resolvable:$true] %s8_s17 }
   0x3   :  { %11 = dma.vmem_to_hbm [thread:$0]  %s7_s14, 32, %s9_s17, [#allocation0] }
   0x4   :  { %74 = dma.done.wait [#allocation0], 32  }
   0x5   :  { %75 = vsyncadd [#allocation0], 4294967264 }
   0x6   :  { %14 = vsyncpa [#allocation0], 1 }
   0x7   :  { %15 = vsyncpa [#allocation1], 0  ;;  %s17_s20 = sshll.u32 %s106_s1, 4  ;;  %s19_s21 = sshll.u32 %s3_s11, 4  ;;  %s18_s20 = int_to_ptr.vmem [resolvable:$true] %s17_s20  ;;  %s20_s21 = int_to_ptr.hbm [resolvable:$true] %s19_s21 }
   0x8   :  { %22 = dma.vmem_to_hbm [thread:$0]  %s18_s20, 32, %s20_s21, [#allocation1] }
   0x9   :  { %76 = dma.done.wait [#allocation1], 32  }
   0xa   :  { %77 = vsyncadd [#allocation1], 4294967264 }
   0xb   :  { %25 = vsyncpa [#allocation1], 1 }

// kernel: _forward_impl.1
= control target key start
LH: loop header
LB: loop body
LE: loop exit
PB: predicated region body
PF: predicated region fallthrough
CT: control target
= control target key end

     0   :  { %s342_s2 = inlined_call_operand.vmem [shape: f32[8,128], index: 2, kind: input, shape index: {}]   ;;  %s343_s3 = inlined_call_operand.vmem [shape: f32[8,128], index: 3, kind: input, shape index: {}]   ;;  %s344_s0 = inlined_call_operand.vmem [shape: f32[128,128], index: 0, kind: input, shape index: {}]   ;;  %s345_s1 = inlined_call_operand.vmem [shape: f32[128,128], index: 1, kind: input, shape index: {}]   ;;  %s346_s4 = inlined_call_operand.vmem [shape: f32[8,256], index: 4, kind: output, shape index: {}]  }
   0x1   :  { %v227_v0 = vld [vmem:[%s342_s2] sm:$0xff]  ;;  %v52_v2 = vld [vmem:[%s344_s0 + $0x78] sm:$0xff]  ;;  %v51_v6 = vld [vmem:[%s344_s0 + $0x70] sm:$0xff] }
   0x2   :  { %v232_v1 = vld [vmem:[%s343_s3] sm:$0xff]  ;;  %v19_v3 = vmul.f32 %v227_v0, %v227_v0  ;;  %69 = vmatpush.msra.mxu0 %v52_v2  ;;  %v68_v5 = vld [vmem:[%s345_s1 + $0x78] sm:$0xff]  ;;  %110 = vmatpush.msra.mxu2 %v52_v2  ;;  %v67_v7 = vld [vmem:[%s345_s1 + $0x70] sm:$0xff] }
   0x3   :  { %v20_v4 = vmul.f32 %v232_v1, %v232_v1  ;;  %89 = vmatpush.msra.mxu1 %v68_v5  ;;  %130 = vmatpush.msra.mxu3 %v68_v5  ;;  %v50_v8 = vld [vmem:[%s344_s0 + $0x68] sm:$0xff]  ;;  %v49_v11 = vld [vmem:[%s344_s0 + $0x60] sm:$0xff]  ;;  %v48_v13 = vld [vmem:[%s344_s0 + $0x58] sm:$0xff] }
   0x4   :  { %70 = vmatpush.msra.mxu0 %v51_v6  ;;  %111 = vmatpush.msra.mxu2 %v51_v6  ;;  %v66_v10 = vld [vmem:[%s345_s1 + $0x68] sm:$0xff]  ;;  %v65_v12 = vld [vmem:[%s345_s1 + $0x60] sm:$0xff]  ;;  %v64_v14 = vld [vmem:[%s345_s1 + $0x58] sm:$0xff] }
   0x5   :  { %v21_v9 = vadd.f32 %v20_v4, %v19_v3  ;;  %90 = vmatpush.msra.mxu1 %v67_v7  ;;  %131 = vmatpush.msra.mxu3 %v67_v7  ;;  %v47_v15 = vld [vmem:[%s344_s0 + $0x50] sm:$0xff]  ;;  %v46_v17 = vld [vmem:[%s344_s0 + $0x48] sm:$0xff]  ;;  %v45_v19 = vld [vmem:[%s344_s0 + $0x40] sm:$0xff] }
   0x6   :  { %71 = vmatpush.msra.mxu0 %v50_v8  ;;  %112 = vmatpush.msra.mxu2 %v50_v8  ;;  %v63_v16 = vld [vmem:[%s345_s1 + $0x50] sm:$0xff]  ;;  %v62_v18 = vld [vmem:[%s345_s1 + $0x48] sm:$0xff]  ;;  %v61_v20 = vld [vmem:[%s345_s1 + $0x40] sm:$0xff] }
   0x7   :  { %22 = vadd.xlane.f32.xlu0 %v21_v9  ;;  %91 = vmatpush.msra.mxu1 %v66_v10  ;;  %v44_v21 = vld [vmem:[%s344_s0 + $0x38] sm:$0xff]  ;;  %v43_v23 = vld [vmem:[%s344_s0 + $0x30] sm:$0xff]  ;;  %v42_v25 = vld [vmem:[%s344_s0 + $0x28] sm:$0xff] }
   0x8   :  { %132 = vmatpush.msra.mxu3 %v66_v10  ;;  %72 = vmatpush.msra.mxu0 %v49_v11  ;;  %v60_v22 = vld [vmem:[%s345_s1 + $0x38] sm:$0xff]  ;;  %v59_v24 = vld [vmem:[%s345_s1 + $0x30] sm:$0xff]  ;;  %v58_v26 = vld [vmem:[%s345_s1 + $0x28] sm:$0xff] }
   0x9   :  { %92 = vmatpush.msra.mxu1 %v65_v12  ;;  %113 = vmatpush.msra.mxu2 %v49_v11  ;;  %v41_v27 = vld [vmem:[%s344_s0 + $0x20] sm:$0xff]  ;;  %v40_v29 = vld [vmem:[%s344_s0 + $0x18] sm:$0xff]  ;;  %v39_v31 = vld [vmem:[%s344_s0 + $0x10] sm:$0xff] }
   0xa   :  { %133 = vmatpush.msra.mxu3 %v65_v12  ;;  %73 = vmatpush.msra.mxu0 %v48_v13  ;;  %v57_v28 = vld [vmem:[%s345_s1 + $0x20] sm:$0xff]  ;;  %v56_v30 = vld [vmem:[%s345_s1 + $0x18] sm:$0xff]  ;;  %v55_v32 = vld [vmem:[%s345_s1 + $0x10] sm:$0xff] }
   0xb   :  { %93 = vmatpush.msra.mxu1 %v64_v14  ;;  %114 = vmatpush.msra.mxu2 %v48_v13  ;;  %v38_v33 = vld [vmem:[%s344_s0 + $0x8] sm:$0xff]  ;;  %v37_v35 = vld [vmem:[%s344_s0] sm:$0xff] }
   0xc   :  { %134 = vmatpush.msra.mxu3 %v64_v14  ;;  %74 = vmatpush.msra.mxu0 %v47_v15  ;;  %v54_v34 = vld [vmem:[%s345_s1 + $0x8] sm:$0xff]  ;;  %v53_v36 = vld [vmem:[%s345_s1] sm:$0xff] }
   0xd   :  { %94 = vmatpush.msra.mxu1 %v63_v16  ;;  %115 = vmatpush.msra.mxu2 %v47_v15 }
   0xe   :  { %135 = vmatpush.msra.mxu3 %v63_v16  ;;  %75 = vmatpush.msra.mxu0 %v46_v17 }
   0xf   :  { %95 = vmatpush.msra.mxu1 %v62_v18  ;;  %116 = vmatpush.msra.mxu2 %v46_v17 }
  0x10   :  { %136 = vmatpush.msra.mxu3 %v62_v18  ;;  %76 = vmatpush.msra.mxu0 %v45_v19 }
  0x11   :  { %96 = vmatpush.msra.mxu1 %v61_v20  ;;  %117 = vmatpush.msra.mxu2 %v45_v19 }
  0x12   :  { %137 = vmatpush.msra.mxu3 %v61_v20  ;;  %77 = vmatpush.msra.mxu0 %v44_v21 }
  0x13   :  { %97 = vmatpush.msra.mxu1 %v60_v22  ;;  %118 = vmatpush.msra.mxu2 %v44_v21 }
  0x14   :  { %138 = vmatpush.msra.mxu3 %v60_v22  ;;  %78 = vmatpush.msra.mxu0 %v43_v23 }
  0x15   :  { %98 = vmatpush.msra.mxu1 %v59_v24  ;;  %119 = vmatpush.msra.mxu2 %v43_v23 }
  0x16   :  { %139 = vmatpush.msra.mxu3 %v59_v24  ;;  %79 = vmatpush.msra.mxu0 %v42_v25 }
  0x17   :  { %99 = vmatpush.msra.mxu1 %v58_v26  ;;  %120 = vmatpush.msra.mxu2 %v42_v25 }
  0x18   :  { %140 = vmatpush.msra.mxu3 %v58_v26  ;;  %80 = vmatpush.msra.mxu0 %v41_v27 }
  0x19   :  { %100 = vmatpush.msra.mxu1 %v57_v28  ;;  %121 = vmatpush.msra.mxu2 %v41_v27 }
  0x1a   :  { %141 = vmatpush.msra.mxu3 %v57_v28  ;;  %81 = vmatpush.msra.mxu0 %v40_v29 }
  0x1b   :  { %101 = vmatpush.msra.mxu1 %v56_v30  ;;  %122 = vmatpush.msra.mxu2 %v40_v29 }
  0x1c   :  { %142 = vmatpush.msra.mxu3 %v56_v30  ;;  %82 = vmatpush.msra.mxu0 %v39_v31 }
  0x1d   :  { %102 = vmatpush.msra.mxu1 %v55_v32  ;;  %123 = vmatpush.msra.mxu2 %v39_v31 }
  0x1e   :  { %143 = vmatpush.msra.mxu3 %v55_v32  ;;  %83 = vmatpush.msra.mxu0 %v38_v33 }
  0x1f   :  { %103 = vmatpush.msra.mxu1 %v54_v34  ;;  %124 = vmatpush.msra.mxu2 %v38_v33 }
  0x20   :  { %144 = vmatpush.msra.mxu3 %v54_v34  ;;  %84 = vmatpush.msra.mxu0 %v37_v35 }
  0x21   :  { %104 = vmatpush.msra.mxu1 %v53_v36  ;;  %125 = vmatpush.msra.mxu2 %v37_v35 }
  0x22   :  { %145 = vmatpush.msra.mxu3 %v53_v36 }
  0x7a   :  { %v23_v37 = vpop.xlane.xlu0 %22 }
  0x7b   :  { %v24_v38 = vmax.f32 %v23_v37, 1e-30 }
  0x7d   :  { %195 = vrsqrt.f32 %v24_v38  ;;  %vm31_vm1 = vweird.f32 %v24_v38 }
  0x83   :  { %v196_v39 = vpop.eup %195 }
  0x84   :  { %v26_v40 = vmul.f32 %v196_v39, %v24_v38  ;;  %vm32_vm0 = vweird.f32 %v196_v39 }
  0x85   :  { %vm33_vm2 = vmor %vm31_vm1, %vm32_vm0 }
  0x86   :  { %v27_v41 = vmul.f32 %v196_v39, %v26_v40 }
  0x88   :  { %v28_v42 = vmul.f32 0.5, %v27_v41 }
  0x8a   :  { %v29_v43 = vsub.f32 1.5, %v28_v42 }
  0x8c   :  { %v30_v44 = vmul.f32 %v196_v39, %v29_v43 }
  0x8e   :  { %v34_v45 = vsel %vm33_vm2, %v196_v39, %v30_v44 }
  0x8f   :  { %v35_v46 = vmul.f32 %v34_v45, %v227_v0  ;;  %v36_v47 = vmul.f32 %v34_v45, %v232_v1 }
  0x91   :  { %85 = vmatmul.f32.vlgmr.msra.gmra.mxu0 %v35_v46  ;;  %105 = vmatmul.f32.vlgmr.msra.gmra.mxu1 %v36_v47 }
  0x92   :  { %126 = vmatmul.f32.vlgmr.msra.gmra.mxu2 %v36_v47  ;;  %146 = vmatmul.f32.vlgmr.msra.gmra.mxu3 %v35_v46 }
 0x10e   :  { %v86_v48 = vpop.f32.mrf.mxu0  ;;  %v106_v49 = vpop.f32.mrf.mxu1 }
 0x10f   :  { %v109_v50 = vsub.f32 %v86_v48, %v106_v49 }
 0x111   :  { %v171_v54 = vmul.f32 %v109_v50, %v109_v50 }
 0x115   :  { %v127_v51 = vpop.f32.mrf.mxu2  ;;  %v147_v52 = vpop.f32.mrf.mxu3 }
 0x116   :  { %v148_v53 = vadd.f32 %v147_v52, %v127_v51 }
 0x118   :  { %v172_v55 = vmul.f32 %v148_v53, %v148_v53 }
 0x11a   :  { %v173_v56 = vadd.f32 %v172_v55, %v171_v54 }
 0x11c   :  { %174 = vadd.xlane.f32.xlu0 %v173_v56 }
 0x18f   :  { %v175_v57 = vpop.xlane.xlu0 %174 }
 0x190   :  { %v176_v58 = vmax.f32 %v175_v57, 1e-30 }
 0x192   :  { %197 = vrsqrt.f32 %v176_v58  ;;  %vm183_vm4 = vweird.f32 %v176_v58 }
 0x198   :  { %v198_v59 = vpop.eup %197 }
 0x199   :  { %v178_v60 = vmul.f32 %v198_v59, %v176_v58  ;;  %vm184_vm3 = vweird.f32 %v198_v59 }
 0x19a   :  { %vm185_vm5 = vmor %vm183_vm4, %vm184_vm3 }
 0x19b   :  { %v179_v61 = vmul.f32 %v198_v59, %v178_v60 }
 0x19d   :  { %v180_v62 = vmul.f32 0.5, %v179_v61 }
 0x19f   :  { %v181_v63 = vsub.f32 1.5, %v180_v62 }
 0x1a1   :  { %v182_v0 = vmul.f32 %v198_v59, %v181_v63 }
 0x1a3   :  { %v186_v1 = vsel %vm185_vm5, %v198_v59, %v182_v0 }
 0x1a4   :  { %v187_v2 = vmul.f32 %v186_v1, %v109_v50  ;;  %v188_v3 = vmul.f32 %v186_v1, %v148_v53 }
 0x1a6   :  { %189 = vst [vmem:[%s346_s4] sm:$0xff] %v187_v2 }
 0x1a7   :  { %190 = vst [vmem:[%s346_s4 + $0x8] sm:$0xff] %v188_v3 }

</bundles_post_ra>
